<compile_context>
chip_gen: v5e
topology: v5e:2x2
jax: 0.10.0
libtpu: 0.0.40
codegen_flags: <defaults>
</compile_context>

<pallas_src>
import jax
import jax.numpy as jnp
from jax.experimental import pallas as pl
from jax.experimental.pallas import tpu as pltpu


# --------------------------------------------------------------------------
# Fused Pallas kernel
# --------------------------------------------------------------------------
def _make_kernel(tb: int):
    # tb must be a multiple of 8 (f32 sublane tile); 16+ keeps bf16 slices
    # sublane-aligned too.  Default below is 32.
    assert tb % 8 == 0

    def kernel(xw_ref, a1w_ref, b1_ref, b2f_ref, b2_ref, w3_ref, b3_ref, o_ref):
        f32 = jnp.float32
        bf16 = jnp.bfloat16

        # ---- conv1 (1->10, k=5) as ONE wide-K bf16 MXU matmul -------------
        # xw rows: oh*tb + b (oh in 0..23); lanes: kh*32 + w_in.
        # Output lanes: (ow&1)*128 + 10*(ow//2) + co  (even/odd ow columns in
        # separate 128-lane halves so the width pool is an aligned slice+max).
        y1 = jnp.dot(xw_ref[...], a1w_ref[...],
                     preferred_element_type=f32) + b1_ref[...]    # (24*tb, 256)

        # ---- 2x2 max-pool + relu, compacting rows (only valid oh kept) -----
        mw = jnp.maximum(y1[:, :128], y1[:, 128:])                # (24*tb, 128)
        a1 = jnp.concatenate(
            [jnp.maximum(mw[(2 * g) * tb:(2 * g + 1) * tb, :],
                         mw[(2 * g + 1) * tb:(2 * g + 2) * tb, :])
             for g in range(12)], axis=0)                         # (12*tb, 128)
        a1 = jnp.maximum(a1, 0.0).astype(bf16)
        # a1 rows: h*tb + b (h in 0..11); lanes: 10*w + c (0..119 valid).

        # ---- conv2 (10->20, k=5) as 5 banded bf16 matmuls ------------------
        r2 = 8 * tb
        y2 = jnp.dot(a1[0:r2, :], b2f_ref[0], preferred_element_type=f32)
        for kh in range(1, 5):
            y2 = y2 + jnp.dot(a1[kh * tb: kh * tb + r2, :], b2f_ref[kh],
                              preferred_element_type=f32)
        y2 = y2 + b2_ref[...]                                     # (8*tb, 256)

        # ---- 2x2 max-pool + relu, compacted straight into fc layout --------
        mw2 = jnp.maximum(y2[:, :128], y2[:, 128:])               # (8*tb, 128)
        a2 = jnp.concatenate(
            [jnp.maximum(
                jnp.maximum(mw2[(2 * g) * tb:(2 * g + 1) * tb, :],
                            mw2[(2 * g + 1) * tb:(2 * g + 2) * tb, :]), 0.0)
             for g in range(4)], axis=1)                          # (tb, 512)
        # a2 lanes: 128*h2 + 20*w2 + c  (0..79 valid per 128-lane group).

        # ---- Linear(320, 10): one K=512 matmul, lane-dense 128-wide output --
        out = jnp.dot(a2.astype(bf16), w3_ref[...], preferred_element_type=f32)
        o_ref[...] = out + b3_ref[...]                            # (tb, 128)

    return kernel


# --------------------------------------------------------------------------
# Host-side weight preparation (tiny, layout-only, runs under jit)
# --------------------------------------------------------------------------
def _prepare_weights(params):
    w1, b1, w2, b2, w3, b3 = params
    f32, bf16 = jnp.float32, jnp.bfloat16
    w1, b1, w2, b2, w3, b3 = (a.astype(f32) for a in (w1, b1, w2, b2, w3, b3))

    # conv1 banded matrix, stacked over kh into one K=160 matrix:
    #   A1[32*kh + w_in, (ow&1)*128 + 10*(ow//2) + co] = w1[co, 0, kh, w_in-ow]
    wi = jnp.arange(28)[:, None]
    ow = jnp.arange(24)[None, :]
    d = wi - ow
    valid = (d >= 0) & (d <= 4)
    w1k = jnp.transpose(w1[:, 0], (1, 2, 0))                    # (5,5,10) [kh,kw,co]
    g = jnp.where(valid[None, :, :, None], w1k[:, jnp.clip(d, 0, 4)], 0.0)
    g = g.reshape(5, 28, 12, 2, 10).transpose(0, 1, 3, 2, 4)    # (5,28,2,12,10)
    a1m = jnp.zeros((5, 28, 2, 128), f32).at[..., :120].set(
        g.reshape(5, 28, 2, 120)).reshape(5, 28, 256)
    a1w = jnp.zeros((5, 32, 256), f32).at[:, :28, :].set(a1m)
    a1w = a1w.reshape(160, 256).astype(bf16)
    bias1 = (jnp.zeros((2, 128), f32)
             .at[:, :120].set(jnp.tile(b1, 12)[None, :])).reshape(1, 256)

    # conv2 banded matrices (per kh):
    #   b2f[kh][10*win + c, (ow2&1)*128 + 20*(ow2//2) + co] = w2[co, c, kh, win-ow2]
    win = jnp.arange(12)[:, None]
    ow2 = jnp.arange(8)[None, :]
    d2 = win - ow2
    valid2 = (d2 >= 0) & (d2 <= 4)
    w2k = jnp.transpose(w2, (2, 3, 1, 0))                       # (5,5,10,20) [kh,kw,c,co]
    g2 = jnp.where(valid2[None, :, :, None, None], w2k[:, jnp.clip(d2, 0, 4)], 0.0)
    g2 = g2.transpose(0, 1, 3, 2, 4)                            # (5,12,10,8,20)
    g2 = g2.reshape(5, 120, 4, 2, 20).transpose(0, 1, 3, 2, 4)  # (5,120,2,4,20)
    b2f = (jnp.zeros((5, 128, 2, 128), f32)
           .at[:, :120, :, :80].set(g2.reshape(5, 120, 2, 80)))
    b2f = b2f.reshape(5, 128, 256).astype(bf16)
    bias2 = (jnp.zeros((2, 128), f32)
             .at[:, :80].set(jnp.tile(b2, 4)[None, :])).reshape(1, 256)

    # fc: torch flatten order is (c, h, w); kernel layout lane = 128*h + 20*w + c.
    wt = jnp.transpose(w3.reshape(10, 20, 4, 4), (2, 3, 1, 0))  # (4,4,20,10) [h,w,c,o]
    w3w = (jnp.zeros((4, 128, 128), f32)
           .at[:, :80, :10].set(wt.reshape(4, 80, 10)))
    w3w = w3w.reshape(512, 128).astype(bf16)
    b3r = jnp.zeros((1, 128), f32).at[0, :10].set(b3)

    return a1w, bias1, b2f, bias2, w3w, b3r


# --------------------------------------------------------------------------
# Public forward: (B, 1, 28, 28) float32 -> (B, 10) float32
# --------------------------------------------------------------------------
def mnist_cnn_forward(x_nchw, params, *, tb=32):
    b = x_nchw.shape[0]
    nb = -(-b // tb)
    bpad = nb * tb

    x = x_nchw.astype(jnp.float32).reshape(b, 28, 28)
    if bpad != b:
        x = jnp.concatenate([x, jnp.zeros((bpad - b, 28, 28), jnp.float32)], 0)
    xt = x.reshape(nb, tb, 28, 28)
    # Prepack conv1's 5 height-shifted 28-wide windows side by side (each
    # padded to 32 lanes) so conv1 is a single K=160 bf16 matmul in-kernel.
    xw = jnp.stack([xt[:, :, kh:kh + 24, :] for kh in range(5)], axis=3)
    xw = jnp.pad(xw, ((0, 0), (0, 0), (0, 0), (0, 0), (0, 4)))    # (nb,tb,24,5,32)
    xw = xw.transpose(0, 2, 1, 3, 4).reshape(nb * 24 * tb, 160)   # rows (tile, oh, b)
    xw = xw.astype(jnp.bfloat16)

    a1w, bias1, b2f, bias2, w3w, b3r = _prepare_weights(params)

    out = pl.pallas_call(
        _make_kernel(tb),
        out_shape=jax.ShapeDtypeStruct((bpad, 128), jnp.float32),
        grid=(nb,),
        in_specs=[
            pl.BlockSpec((24 * tb, 160), lambda i: (i, 0)),       # packed input
            pl.BlockSpec((160, 256), lambda i: (0, 0)),           # conv1 matrix
            pl.BlockSpec((1, 256), lambda i: (0, 0)),             # bias1
            pl.BlockSpec((5, 128, 256), lambda i: (0, 0, 0)),     # conv2 matrices
            pl.BlockSpec((1, 256), lambda i: (0, 0)),             # bias2
            pl.BlockSpec((512, 128), lambda i: (0, 0)),           # fc weight
            pl.BlockSpec((1, 128), lambda i: (0, 0)),             # fc bias
        ],
        out_specs=pl.BlockSpec((tb, 128), lambda i: (i, 0)),
        compiler_params=pltpu.CompilerParams(
            dimension_semantics=("parallel",),
            vmem_limit_bytes=32 * 1024 * 1024),
    )(xw, a1w, bias1, b2f, bias2, w3w, b3r)

    # TODO(synk): torch `print('x_shape', x.shape)` is a host-side debug print; omitted.
    return out[:b, :10]


# --------------------------------------------------------------------------
# Deterministic parameter init (shapes from MNISTCNN.__init__)
# --------------------------------------------------------------------------
def init_params(key):
    ks = jax.random.split(key, 6)
    w1 = 0.1 * jax.random.normal(ks[0], (10, 1, 5, 5), jnp.float32)
    b1 = 0.1 * jax.random.normal(ks[1], (10,), jnp.float32)
    w2 = 0.1 * jax.random.normal(ks[2], (20, 10, 5, 5), jnp.float32)
    b2 = 0.1 * jax.random.normal(ks[3], (20,), jnp.float32)
    w3 = 0.1 * jax.random.normal(ks[4], (10, 320), jnp.float32)
    b3 = 0.1 * jax.random.normal(ks[5], (10,), jnp.float32)
    return (w1, b1, w2, b2, w3, b3)


# --------------------------------------------------------------------------
# Pure-JAX reference (sanity check only)
# --------------------------------------------------------------------------
def reference_forward(x, params):
    w1, b1, w2, b2, w3, b3 = params
    dn = ("NCHW", "OIHW", "NCHW")
    hi = jax.lax.Precision.HIGHEST
    y = jax.lax.conv_general_dilated(x, w1, (1, 1), "VALID",
                                     dimension_numbers=dn, precision=hi)
    y = y + b1[None, :, None, None]
    y = jax.lax.reduce_window(y, -jnp.inf, jax.lax.max,
                              (1, 1, 2, 2), (1, 1, 2, 2), "VALID")
    y = jnp.maximum(y, 0.0)
    y = jax.lax.conv_general_dilated(y, w2, (1, 1), "VALID",
                                     dimension_numbers=dn, precision=hi)
    y = y + b2[None, :, None, None]
    y = jax.lax.reduce_window(y, -jnp.inf, jax.lax.max,
                              (1, 1, 2, 2), (1, 1, 2, 2), "VALID")
    y = jnp.maximum(y, 0.0)
    y = y.reshape(y.shape[0], -1)
    return jnp.dot(y, w3.T, precision=hi) + b3


if __name__ == "__main__":
    key = jax.random.PRNGKey(0)
    kx, kp = jax.random.split(key)

    batch = 64  # module's batch_size; grid=(2,) parallel tiles of 32 images
    x = jax.random.normal(kx, (batch, 1, 28, 28), jnp.float32)
    params = init_params(kp)

    out = jax.jit(mnist_cnn_forward)(x, params)
    out = jax.block_until_ready(out)
    assert out.shape == (batch, 10), out.shape

    ref = reference_forward(x, params)
    max_err = float(jnp.max(jnp.abs(out - ref)))
    # bf16 MXU operands vs. HIGHEST-precision f32 reference -> loosened tol.
    assert jnp.allclose(out, ref, atol=5e-2, rtol=5e-2), f"max abs diff {max_err}"

    print("KERNEL_OK")
</pallas_src>

<mosaic_0001>
module attributes {stable_mosaic.version = 11 : i64} {
  func.func @kernel(%arg0: i32, %arg1: memref<768x160xbf16, #tpu.memory_space<vmem>>, %arg2: memref<160x256xbf16, #tpu.memory_space<vmem>>, %arg3: memref<1x256xf32, #tpu.memory_space<vmem>>, %arg4: memref<5x128x256xbf16, #tpu.memory_space<vmem>>, %arg5: memref<1x256xf32, #tpu.memory_space<vmem>>, %arg6: memref<512x128xbf16, #tpu.memory_space<vmem>>, %arg7: memref<1x128xf32, #tpu.memory_space<vmem>>, %arg8: memref<32x128xf32, #tpu.memory_space<vmem>>) attributes {dimension_semantics = [#tpu.dimension_semantics<parallel>], iteration_bounds = array<i64: 2>, scalar_prefetch = 0 : i64, scratch_operands = 0 : i64, tpu.core_type = #tpu.core_type<tc>, window_params = [{transform_indices = @transform_0, window_bounds = array<i64: 768, 160>}, {pipeline_mode = #tpu.pipeline_mode<synchronous>, transform_indices = @transform_1, window_bounds = array<i64: 160, 256>}, {pipeline_mode = #tpu.pipeline_mode<synchronous>, transform_indices = @transform_2, window_bounds = array<i64: 1, 256>}, {pipeline_mode = #tpu.pipeline_mode<synchronous>, transform_indices = @transform_3, window_bounds = array<i64: 5, 128, 256>}, {pipeline_mode = #tpu.pipeline_mode<synchronous>, transform_indices = @transform_4, window_bounds = array<i64: 1, 256>}, {pipeline_mode = #tpu.pipeline_mode<synchronous>, transform_indices = @transform_5, window_bounds = array<i64: 512, 128>}, {pipeline_mode = #tpu.pipeline_mode<synchronous>, transform_indices = @transform_6, window_bounds = array<i64: 1, 128>}, {transform_indices = @transform_7, window_bounds = array<i64: 32, 128>}]} {
    %c0 = arith.constant 0 : index
    %c0_0 = arith.constant 0 : index
    %0 = vector.load %arg1[%c0, %c0_0] : memref<768x160xbf16, #tpu.memory_space<vmem>>, vector<768x160xbf16>
    %c0_1 = arith.constant 0 : index
    %c0_2 = arith.constant 0 : index
    %1 = vector.load %arg2[%c0_1, %c0_2] : memref<160x256xbf16, #tpu.memory_space<vmem>>, vector<160x256xbf16>
    %cst = arith.constant dense<0.000000e+00> : vector<768x256xf32>
    %2 = tpu.matmul %0, %1, %cst {dimension_numbers = #tpu.dot_dimension_numbers<[1], [0], [0], [1], [0, 0, 1, 1], [], []>} : vector<768x160xbf16>, vector<160x256xbf16>, vector<768x256xf32> -> vector<768x256xf32>
    %c0_3 = arith.constant 0 : index
    %c0_4 = arith.constant 0 : index
    %3 = vector.load %arg3[%c0_3, %c0_4] : memref<1x256xf32, #tpu.memory_space<vmem>>, vector<1x256xf32>
    %4 = vector.broadcast %3 : vector<1x256xf32> to vector<768x256xf32>
    %5 = arith.addf %2, %4 : vector<768x256xf32>
    %6 = vector.extract_strided_slice %5 {offsets = [0, 0], sizes = [768, 128], strides = [1, 1]} : vector<768x256xf32> to vector<768x128xf32>
    %7 = vector.extract_strided_slice %5 {offsets = [0, 128], sizes = [768, 128], strides = [1, 1]} : vector<768x256xf32> to vector<768x128xf32>
    %8 = arith.maximumf %6, %7 : vector<768x128xf32>
    %9 = vector.extract_strided_slice %8 {offsets = [0, 0], sizes = [32, 128], strides = [1, 1]} : vector<768x128xf32> to vector<32x128xf32>
    %10 = vector.extract_strided_slice %8 {offsets = [32, 0], sizes = [32, 128], strides = [1, 1]} : vector<768x128xf32> to vector<32x128xf32>
    %11 = arith.maximumf %9, %10 : vector<32x128xf32>
    %12 = vector.extract_strided_slice %8 {offsets = [64, 0], sizes = [32, 128], strides = [1, 1]} : vector<768x128xf32> to vector<32x128xf32>
    %13 = vector.extract_strided_slice %8 {offsets = [96, 0], sizes = [32, 128], strides = [1, 1]} : vector<768x128xf32> to vector<32x128xf32>
    %14 = arith.maximumf %12, %13 : vector<32x128xf32>
    %15 = vector.extract_strided_slice %8 {offsets = [128, 0], sizes = [32, 128], strides = [1, 1]} : vector<768x128xf32> to vector<32x128xf32>
    %16 = vector.extract_strided_slice %8 {offsets = [160, 0], sizes = [32, 128], strides = [1, 1]} : vector<768x128xf32> to vector<32x128xf32>
    %17 = arith.maximumf %15, %16 : vector<32x128xf32>
    %18 = vector.extract_strided_slice %8 {offsets = [192, 0], sizes = [32, 128], strides = [1, 1]} : vector<768x128xf32> to vector<32x128xf32>
    %19 = vector.extract_strided_slice %8 {offsets = [224, 0], sizes = [32, 128], strides = [1, 1]} : vector<768x128xf32> to vector<32x128xf32>
    %20 = arith.maximumf %18, %19 : vector<32x128xf32>
    %21 = vector.extract_strided_slice %8 {offsets = [256, 0], sizes = [32, 128], strides = [1, 1]} : vector<768x128xf32> to vector<32x128xf32>
    %22 = vector.extract_strided_slice %8 {offsets = [288, 0], sizes = [32, 128], strides = [1, 1]} : vector<768x128xf32> to vector<32x128xf32>
    %23 = arith.maximumf %21, %22 : vector<32x128xf32>
    %24 = vector.extract_strided_slice %8 {offsets = [320, 0], sizes = [32, 128], strides = [1, 1]} : vector<768x128xf32> to vector<32x128xf32>
    %25 = vector.extract_strided_slice %8 {offsets = [352, 0], sizes = [32, 128], strides = [1, 1]} : vector<768x128xf32> to vector<32x128xf32>
    %26 = arith.maximumf %24, %25 : vector<32x128xf32>
    %27 = vector.extract_strided_slice %8 {offsets = [384, 0], sizes = [32, 128], strides = [1, 1]} : vector<768x128xf32> to vector<32x128xf32>
    %28 = vector.extract_strided_slice %8 {offsets = [416, 0], sizes = [32, 128], strides = [1, 1]} : vector<768x128xf32> to vector<32x128xf32>
    %29 = arith.maximumf %27, %28 : vector<32x128xf32>
    %30 = vector.extract_strided_slice %8 {offsets = [448, 0], sizes = [32, 128], strides = [1, 1]} : vector<768x128xf32> to vector<32x128xf32>
    %31 = vector.extract_strided_slice %8 {offsets = [480, 0], sizes = [32, 128], strides = [1, 1]} : vector<768x128xf32> to vector<32x128xf32>
    %32 = arith.maximumf %30, %31 : vector<32x128xf32>
    %33 = vector.extract_strided_slice %8 {offsets = [512, 0], sizes = [32, 128], strides = [1, 1]} : vector<768x128xf32> to vector<32x128xf32>
    %34 = vector.extract_strided_slice %8 {offsets = [544, 0], sizes = [32, 128], strides = [1, 1]} : vector<768x128xf32> to vector<32x128xf32>
    %35 = arith.maximumf %33, %34 : vector<32x128xf32>
    %36 = vector.extract_strided_slice %8 {offsets = [576, 0], sizes = [32, 128], strides = [1, 1]} : vector<768x128xf32> to vector<32x128xf32>
    %37 = vector.extract_strided_slice %8 {offsets = [608, 0], sizes = [32, 128], strides = [1, 1]} : vector<768x128xf32> to vector<32x128xf32>
    %38 = arith.maximumf %36, %37 : vector<32x128xf32>
    %39 = vector.extract_strided_slice %8 {offsets = [640, 0], sizes = [32, 128], strides = [1, 1]} : vector<768x128xf32> to vector<32x128xf32>
    %40 = vector.extract_strided_slice %8 {offsets = [672, 0], sizes = [32, 128], strides = [1, 1]} : vector<768x128xf32> to vector<32x128xf32>
    %41 = arith.maximumf %39, %40 : vector<32x128xf32>
    %42 = vector.extract_strided_slice %8 {offsets = [704, 0], sizes = [32, 128], strides = [1, 1]} : vector<768x128xf32> to vector<32x128xf32>
    %43 = vector.extract_strided_slice %8 {offsets = [736, 0], sizes = [32, 128], strides = [1, 1]} : vector<768x128xf32> to vector<32x128xf32>
    %44 = arith.maximumf %42, %43 : vector<32x128xf32>
    %45 = tpu.concatenate %11, %14, %17, %20, %23, %26, %29, %32, %35, %38, %41, %44 in 0 : vector<32x128xf32>, vector<32x128xf32>, vector<32x128xf32>, vector<32x128xf32>, vector<32x128xf32>, vector<32x128xf32>, vector<32x128xf32>, vector<32x128xf32>, vector<32x128xf32>, vector<32x128xf32>, vector<32x128xf32>, vector<32x128xf32> -> vector<384x128xf32>
    %cst_5 = arith.constant 0.000000e+00 : f32
    %46 = vector.broadcast %cst_5 : f32 to vector<384x128xf32>
    %47 = arith.maximumf %45, %46 : vector<384x128xf32>
    %48 = arith.truncf %47 : vector<384x128xf32> to vector<384x128xbf16>
    %49 = vector.extract_strided_slice %48 {offsets = [0, 0], sizes = [256, 128], strides = [1, 1]} : vector<384x128xbf16> to vector<256x128xbf16>
    %c0_6 = arith.constant 0 : index
    %c0_7 = arith.constant 0 : index
    %c0_8 = arith.constant 0 : index
    %50 = vector.load %arg4[%c0_6, %c0_7, %c0_8] : memref<5x128x256xbf16, #tpu.memory_space<vmem>>, vector<1x128x256xbf16>
    %51 = vector.shape_cast %50 : vector<1x128x256xbf16> to vector<128x256xbf16>
    %cst_9 = arith.constant dense<0.000000e+00> : vector<256x256xf32>
    %52 = tpu.matmul %49, %51, %cst_9 {dimension_numbers = #tpu.dot_dimension_numbers<[1], [0], [0], [1], [0, 0, 1, 1], [], []>} : vector<256x128xbf16>, vector<128x256xbf16>, vector<256x256xf32> -> vector<256x256xf32>
    %53 = vector.extract_strided_slice %48 {offsets = [32, 0], sizes = [256, 128], strides = [1, 1]} : vector<384x128xbf16> to vector<256x128xbf16>
    %c1 = arith.constant 1 : index
    %c0_10 = arith.constant 0 : index
    %c0_11 = arith.constant 0 : index
    %54 = vector.load %arg4[%c1, %c0_10, %c0_11] : memref<5x128x256xbf16, #tpu.memory_space<vmem>>, vector<1x128x256xbf16>
    %55 = vector.shape_cast %54 : vector<1x128x256xbf16> to vector<128x256xbf16>
    %cst_12 = arith.constant dense<0.000000e+00> : vector<256x256xf32>
    %56 = tpu.matmul %53, %55, %cst_12 {dimension_numbers = #tpu.dot_dimension_numbers<[1], [0], [0], [1], [0, 0, 1, 1], [], []>} : vector<256x128xbf16>, vector<128x256xbf16>, vector<256x256xf32> -> vector<256x256xf32>
    %57 = arith.addf %52, %56 : vector<256x256xf32>
    %58 = vector.extract_strided_slice %48 {offsets = [64, 0], sizes = [256, 128], strides = [1, 1]} : vector<384x128xbf16> to vector<256x128xbf16>
    %c2 = arith.constant 2 : index
    %c0_13 = arith.constant 0 : index
    %c0_14 = arith.constant 0 : index
    %59 = vector.load %arg4[%c2, %c0_13, %c0_14] : memref<5x128x256xbf16, #tpu.memory_space<vmem>>, vector<1x128x256xbf16>
    %60 = vector.shape_cast %59 : vector<1x128x256xbf16> to vector<128x256xbf16>
    %cst_15 = arith.constant dense<0.000000e+00> : vector<256x256xf32>
    %61 = tpu.matmul %58, %60, %cst_15 {dimension_numbers = #tpu.dot_dimension_numbers<[1], [0], [0], [1], [0, 0, 1, 1], [], []>} : vector<256x128xbf16>, vector<128x256xbf16>, vector<256x256xf32> -> vector<256x256xf32>
    %62 = arith.addf %57, %61 : vector<256x256xf32>
    %63 = vector.extract_strided_slice %48 {offsets = [96, 0], sizes = [256, 128], strides = [1, 1]} : vector<384x128xbf16> to vector<256x128xbf16>
    %c3 = arith.constant 3 : index
    %c0_16 = arith.constant 0 : index
    %c0_17 = arith.constant 0 : index
    %64 = vector.load %arg4[%c3, %c0_16, %c0_17] : memref<5x128x256xbf16, #tpu.memory_space<vmem>>, vector<1x128x256xbf16>
    %65 = vector.shape_cast %64 : vector<1x128x256xbf16> to vector<128x256xbf16>
    %cst_18 = arith.constant dense<0.000000e+00> : vector<256x256xf32>
    %66 = tpu.matmul %63, %65, %cst_18 {dimension_numbers = #tpu.dot_dimension_numbers<[1], [0], [0], [1], [0, 0, 1, 1], [], []>} : vector<256x128xbf16>, vector<128x256xbf16>, vector<256x256xf32> -> vector<256x256xf32>
    %67 = arith.addf %62, %66 : vector<256x256xf32>
    %68 = vector.extract_strided_slice %48 {offsets = [128, 0], sizes = [256, 128], strides = [1, 1]} : vector<384x128xbf16> to vector<256x128xbf16>
    %c4 = arith.constant 4 : index
    %c0_19 = arith.constant 0 : index
    %c0_20 = arith.constant 0 : index
    %69 = vector.load %arg4[%c4, %c0_19, %c0_20] : memref<5x128x256xbf16, #tpu.memory_space<vmem>>, vector<1x128x256xbf16>
    %70 = vector.shape_cast %69 : vector<1x128x256xbf16> to vector<128x256xbf16>
    %cst_21 = arith.constant dense<0.000000e+00> : vector<256x256xf32>
    %71 = tpu.matmul %68, %70, %cst_21 {dimension_numbers = #tpu.dot_dimension_numbers<[1], [0], [0], [1], [0, 0, 1, 1], [], []>} : vector<256x128xbf16>, vector<128x256xbf16>, vector<256x256xf32> -> vector<256x256xf32>
    %72 = arith.addf %67, %71 : vector<256x256xf32>
    %c0_22 = arith.constant 0 : index
    %c0_23 = arith.constant 0 : index
    %73 = vector.load %arg5[%c0_22, %c0_23] : memref<1x256xf32, #tpu.memory_space<vmem>>, vector<1x256xf32>
    %74 = vector.broadcast %73 : vector<1x256xf32> to vector<256x256xf32>
    %75 = arith.addf %72, %74 : vector<256x256xf32>
    %76 = vector.extract_strided_slice %75 {offsets = [0, 0], sizes = [256, 128], strides = [1, 1]} : vector<256x256xf32> to vector<256x128xf32>
    %77 = vector.extract_strided_slice %75 {offsets = [0, 128], sizes = [256, 128], strides = [1, 1]} : vector<256x256xf32> to vector<256x128xf32>
    %78 = arith.maximumf %76, %77 : vector<256x128xf32>
    %79 = vector.extract_strided_slice %78 {offsets = [0, 0], sizes = [32, 128], strides = [1, 1]} : vector<256x128xf32> to vector<32x128xf32>
    %80 = vector.extract_strided_slice %78 {offsets = [32, 0], sizes = [32, 128], strides = [1, 1]} : vector<256x128xf32> to vector<32x128xf32>
    %81 = arith.maximumf %79, %80 : vector<32x128xf32>
    %cst_24 = arith.constant 0.000000e+00 : f32
    %82 = vector.broadcast %cst_24 : f32 to vector<32x128xf32>
    %83 = arith.maximumf %81, %82 : vector<32x128xf32>
    %84 = vector.extract_strided_slice %78 {offsets = [64, 0], sizes = [32, 128], strides = [1, 1]} : vector<256x128xf32> to vector<32x128xf32>
    %85 = vector.extract_strided_slice %78 {offsets = [96, 0], sizes = [32, 128], strides = [1, 1]} : vector<256x128xf32> to vector<32x128xf32>
    %86 = arith.maximumf %84, %85 : vector<32x128xf32>
    %cst_25 = arith.constant 0.000000e+00 : f32
    %87 = vector.broadcast %cst_25 : f32 to vector<32x128xf32>
    %88 = arith.maximumf %86, %87 : vector<32x128xf32>
    %89 = vector.extract_strided_slice %78 {offsets = [128, 0], sizes = [32, 128], strides = [1, 1]} : vector<256x128xf32> to vector<32x128xf32>
    %90 = vector.extract_strided_slice %78 {offsets = [160, 0], sizes = [32, 128], strides = [1, 1]} : vector<256x128xf32> to vector<32x128xf32>
    %91 = arith.maximumf %89, %90 : vector<32x128xf32>
    %cst_26 = arith.constant 0.000000e+00 : f32
    %92 = vector.broadcast %cst_26 : f32 to vector<32x128xf32>
    %93 = arith.maximumf %91, %92 : vector<32x128xf32>
    %94 = vector.extract_strided_slice %78 {offsets = [192, 0], sizes = [32, 128], strides = [1, 1]} : vector<256x128xf32> to vector<32x128xf32>
    %95 = vector.extract_strided_slice %78 {offsets = [224, 0], sizes = [32, 128], strides = [1, 1]} : vector<256x128xf32> to vector<32x128xf32>
    %96 = arith.maximumf %94, %95 : vector<32x128xf32>
    %cst_27 = arith.constant 0.000000e+00 : f32
    %97 = vector.broadcast %cst_27 : f32 to vector<32x128xf32>
    %98 = arith.maximumf %96, %97 : vector<32x128xf32>
    %99 = tpu.concatenate %83, %88, %93, %98 in 1 : vector<32x128xf32>, vector<32x128xf32>, vector<32x128xf32>, vector<32x128xf32> -> vector<32x512xf32>
    %100 = arith.truncf %99 : vector<32x512xf32> to vector<32x512xbf16>
    %c0_28 = arith.constant 0 : index
    %c0_29 = arith.constant 0 : index
    %101 = vector.load %arg6[%c0_28, %c0_29] : memref<512x128xbf16, #tpu.memory_space<vmem>>, vector<512x128xbf16>
    %cst_30 = arith.constant dense<0.000000e+00> : vector<32x128xf32>
    %102 = tpu.matmul %100, %101, %cst_30 {dimension_numbers = #tpu.dot_dimension_numbers<[1], [0], [0], [1], [0, 0, 1, 1], [], []>} : vector<32x512xbf16>, vector<512x128xbf16>, vector<32x128xf32> -> vector<32x128xf32>
    %c0_31 = arith.constant 0 : index
    %c0_32 = arith.constant 0 : index
    %103 = vector.load %arg7[%c0_31, %c0_32] : memref<1x128xf32, #tpu.memory_space<vmem>>, vector<1x128xf32>
    %104 = vector.broadcast %103 : vector<1x128xf32> to vector<32x128xf32>
    %105 = arith.addf %102, %104 : vector<32x128xf32>
    %c0_33 = arith.constant 0 : index
    %c0_34 = arith.constant 0 : index
    %106 = vector.load %arg8[%c0_33, %c0_34] : memref<32x128xf32, #tpu.memory_space<vmem>>, vector<32x128xf32>
    tpu.vector_store %arg8[%c0_33, %c0_34], %105 {strides = array<i32>} : memref<32x128xf32, #tpu.memory_space<vmem>>, vector<32x128xf32>,
    return
  }
  func.func @transform_0(%arg0: i32) -> (i32, i32) {
    %c0_i32 = arith.constant 0 : i32
    %c0_i32_0 = arith.constant 0 : i32
    return %arg0, %c0_i32 : i32, i32
  }
  func.func @transform_1(%arg0: i32) -> (i32, i32) {
    %c0_i32 = arith.constant 0 : i32
    %c0_i32_0 = arith.constant 0 : i32
    %c0_i32_1 = arith.constant 0 : i32
    return %c0_i32, %c0_i32_0 : i32, i32
  }
  func.func @transform_2(%arg0: i32) -> (i32, i32) {
    %c0_i32 = arith.constant 0 : i32
    %c0_i32_0 = arith.constant 0 : i32
    %c0_i32_1 = arith.constant 0 : i32
    return %c0_i32, %c0_i32_0 : i32, i32
  }
  func.func @transform_3(%arg0: i32) -> (i32, i32, i32) {
    %c0_i32 = arith.constant 0 : i32
    %c0_i32_0 = arith.constant 0 : i32
    %c0_i32_1 = arith.constant 0 : i32
    %c0_i32_2 = arith.constant 0 : i32
    return %c0_i32, %c0_i32_0, %c0_i32_1 : i32, i32, i32
  }
  func.func @transform_4(%arg0: i32) -> (i32, i32) {
    %c0_i32 = arith.constant 0 : i32
    %c0_i32_0 = arith.constant 0 : i32
    %c0_i32_1 = arith.constant 0 : i32
    return %c0_i32, %c0_i32_0 : i32, i32
  }
  func.func @transform_5(%arg0: i32) -> (i32, i32) {
    %c0_i32 = arith.constant 0 : i32
    %c0_i32_0 = arith.constant 0 : i32
    %c0_i32_1 = arith.constant 0 : i32
    return %c0_i32, %c0_i32_0 : i32, i32
  }
  func.func @transform_6(%arg0: i32) -> (i32, i32) {
    %c0_i32 = arith.constant 0 : i32
    %c0_i32_0 = arith.constant 0 : i32
    %c0_i32_1 = arith.constant 0 : i32
    return %c0_i32, %c0_i32_0 : i32, i32
  }
  func.func @transform_7(%arg0: i32) -> (i32, i32) {
    %c0_i32 = arith.constant 0 : i32
    %c0_i32_0 = arith.constant 0 : i32
    return %arg0, %c0_i32 : i32, i32
  }
}

</mosaic_0001>

<bundles_post_ra>
// kernel: mnist_cnn_forward.1
= control target key start
LH: loop header
LB: loop body
LE: loop exit
PB: predicated region body
PF: predicated region fallthrough
CT: control target
= control target key end

     0   :  { %s5942_s24 = smov 0   ;;  %s8620_s0 = inlined_call_operand.vmem [shape: bf16[1536,160], index: 0, kind: input, shape index: {}]   ;;  %s8621_s1 = inlined_call_operand.vmem [shape: bf16[160,256], index: 1, kind: input, shape index: {}]   ;;  %s8622_s2 = inlined_call_operand.vmem [shape: f32[1,256], index: 2, kind: input, shape index: {}]   ;;  %s8623_s3 = inlined_call_operand.vmem [shape: bf16[5,128,256], index: 3, kind: input, shape index: {}]   ;;  %s8624_s4 = inlined_call_operand.vmem [shape: f32[1,256], index: 4, kind: input, shape index: {}]   ;;  %s8625_s5 = inlined_call_operand.vmem [shape: bf16[512,128], index: 5, kind: input, shape index: {}]   ;;  %s8626_s6 = inlined_call_operand.vmem [shape: f32[1,128], index: 6, kind: input, shape index: {}]   ;;  %s8627_s7 = inlined_call_operand.vmem [shape: f32[64,128], index: 7, kind: output, shape index: {}]  }
   0x1 LB: > { %s4569_s25 = sadd.s32 4294967295, %s5900_s24   ;;  %p4573_p0 = scmp.ge.s32.totalorder %s5900_s24, 1  ;;  %s5900_s24 = sphi %s5942_s24, %s17_s24  }
   0x2   : > { %p239_p1 = scmp.lt.s32.totalorder %s5900_s24, 3 }
   0x4   : > { %p240_p2 = pnand %p4573_p0, %p239_p1 }
   0x6   : > { %243 = sbr.rel (%p240_p2) target bundleno = 2079 (0x81f), region = 48 }
   0xb   : > { %v5020_v0 = vld [vmem:[%s8621_s1 + $0x70] sm:$0xf]  ;;  %v5764_v1 = vld [vmem:[%s8621_s1 + $0x74] sm:$0xf0]  ;;  %v5763_v2 = vld [vmem:[%s8621_s1 + $0x74] sm:$0xf] }
   0xc   : > { %v5021_v3 = vor.u32 %v5764_v1, %v5020_v0  ;;  %v5022_v4 = vld [vmem:[%s8621_s1 + $0x78] sm:$0xf0]  ;;  %v5012_v5 = vld [vmem:[%s8621_s1 + $0x60] sm:$0xf]  ;;  %v5762_v6 = vld [vmem:[%s8621_s1 + $0x64] sm:$0xf0] }
   0xd   : > { %v5025_v7 = vor.u32 %v5763_v2, %v5022_v4  ;;  %v5761_v8 = vld [vmem:[%s8621_s1 + $0x64] sm:$0xf]  ;;  %v5014_v9 = vld [vmem:[%s8621_s1 + $0x68] sm:$0xf0]  ;;  %v5013_v10 = vor.u32 %v5762_v6, %v5012_v5  ;;  %v5004_v12 = vld [vmem:[%s8621_s1 + $0x50] sm:$0xf] }
   0xe   : > { %1085 = vmatpush.bf16.msra.mxu0 %v5021_v3  ;;  %v5017_v11 = vor.u32 %v5761_v8, %v5014_v9  ;;  %v5760_v13 = vld [vmem:[%s8621_s1 + $0x54] sm:$0xf0]  ;;  %v5759_v14 = vld [vmem:[%s8621_s1 + $0x54] sm:$0xf]  ;;  %v5006_v15 = vld [vmem:[%s8621_s1 + $0x58] sm:$0xf0] }
   0xf   : > { %1583 = vmatpush.bf16.msra.mxu2 %v5025_v7  ;;  %v5005_v16 = vor.u32 %v5760_v13, %v5004_v12  ;;  %v5009_v17 = vor.u32 %v5759_v14, %v5006_v15  ;;  %v4996_v18 = vld [vmem:[%s8621_s1 + $0x40] sm:$0xf]  ;;  %v5758_v19 = vld [vmem:[%s8621_s1 + $0x44] sm:$0xf0]  ;;  %v5757_v20 = vld [vmem:[%s8621_s1 + $0x44] sm:$0xf] }
  0x10   : > { %v4998_v21 = vld [vmem:[%s8621_s1 + $0x48] sm:$0xf0]  ;;  %v4988_v22 = vld [vmem:[%s8621_s1 + $0x30] sm:$0xf]  ;;  %s272_s16 = smul.u32 96, %s4569_s25  ;;  %v4997_v23 = vor.u32 %v5758_v19, %v4996_v18  ;;  %vm940_vm0 = vcmask 261120  }
  0x11   : > { %v5767_v24 = vld [vmem:[%s8621_s1 + $0x94] sm:$0xf]  ;;  %v5038_v25 = vld [vmem:[%s8621_s1 + $0x98] sm:$0xf0]  ;;  %v5036_v26 = vld [vmem:[%s8621_s1 + $0x90] sm:$0xf]  ;;  %v5001_v27 = vor.u32 %v5757_v20, %v4998_v21 }
  0x12   : > { %1086 = vmatpush.bf16.msra.mxu0 %v5013_v10  ;;  %v5756_v28 = vld [vmem:[%s8621_s1 + $0x34] sm:$0xf0]  ;;  %v5041_v29 = vor.u32 %v5767_v24, %v5038_v25  ;;  %v5755_v31 = vld [vmem:[%s8621_s1 + $0x34] sm:$0xf]  ;;  %v4990_v32 = vld [vmem:[%s8621_s1 + $0x38] sm:$0xf0] }
  0x13   : > { %1584 = vmatpush.bf16.msra.mxu2 %v5017_v11  ;;  %v5768_v30 = vld [vmem:[%s8621_s1 + $0x94] sm:$0xf0]  ;;  %p273_p3 = scmp.lt.s32.totalorder %s272_s16, 191  ;;  %v4989_v34 = vor.u32 %v5756_v28, %v4988_v22  ;;  %v4993_v35 = vor.u32 %v5755_v31, %v4990_v32  ;;  %v4980_v36 = vld [vmem:[%s8621_s1 + $0x20] sm:$0xf]  ;;  %s4576_s18 = sshll.u32 %s4569_s25, 2 }
  0x14   : > { %v5037_v33 = vor.u32 %v5768_v30, %v5036_v26  ;;  %5883 = vmatpush.bf16.msra.mxu3 %v5041_v29  ;;  %v5754_v37 = vld [vmem:[%s8621_s1 + $0x24] sm:$0xf0]  ;;  %v5753_v38 = vld [vmem:[%s8621_s1 + $0x24] sm:$0xf]  ;;  %v4982_v39 = vld [vmem:[%s8621_s1 + $0x28] sm:$0xf0] }
  0x15   : > { %s8832_s16 = smov (!%p273_p3, %s272_s16), 191  ;;  %v4981_v40 = vor.u32 %v5754_v37, %v4980_v36  ;;  %v4985_v41 = vor.u32 %v5753_v38, %v4982_v39  ;;  %v4972_v42 = vld [vmem:[%s8621_s1 + $0x10] sm:$0xf]  ;;  %v5752_v43 = vld [vmem:[%s8621_s1 + $0x14] sm:$0xf0]  ;;  %p280_p4 = scmp.lt.s32.totalorder %s4576_s18, 7 }
  0x16   : > { %1087 = vmatpush.bf16.msra.mxu0 %v5005_v16  ;;  %5881 = vmatpush.bf16.msra.mxu1 %v5037_v33  ;;  %v5751_v44 = vld [vmem:[%s8621_s1 + $0x14] sm:$0xf]  ;;  %v4974_v45 = vld [vmem:[%s8621_s1 + $0x18] sm:$0xf0]  ;;  %s5652_s29 = sshll.u32 %s8832_s16, 3  ;;  %v4973_v46 = vor.u32 %v5752_v43, %v4972_v42 }
  0x17   : > { %1585 = vmatpush.bf16.msra.mxu2 %v5009_v17  ;;  %v4977_v47 = vor.u32 %v5751_v44, %v4974_v45  ;;  %v4964_v48 = vld [vmem:[%s8621_s1] sm:$0xf]  ;;  %v5750_v49 = vld [vmem:[%s8621_s1 + $0x4] sm:$0xf0]  ;;  %s6057_s13 = scalar_lea.vmem %s8620_s0, %s5652_s29  ;;  %v5749_v50 = vld [vmem:[%s8621_s1 + $0x4] sm:$0xf] }
  0x18   : > { %v4966_v51 = vld [vmem:[%s8621_s1 + $0x8] sm:$0xf0]  ;;  %v4965_v52 = vor.u32 %v5750_v49, %v4964_v48  ;;  %v4580_v53 = vld [vmem:[%s6057_s13] sm:$0xf]  ;;  %v5654_v54 = vld [vmem:[%s6057_s13 + $0x4] sm:$0xf0] }
  0x19   : > { %v4969_v55 = vor.u32 %v5749_v50, %v4966_v51  ;;  %v4581_v56 = vor.u32 %v5654_v54, %v4580_v53  ;;  %v4588_v57 = vld [vmem:[%s6057_s13 + $0x10] sm:$0xf]  ;;  %v5656_v58 = vld [vmem:[%s6057_s13 + $0x14] sm:$0xf0]  ;;  %v4596_v60 = vld [vmem:[%s6057_s13 + $0x20] sm:$0xf] }
  0x1a   : > { %1088 = vmatpush.bf16.msra.mxu0 %v4997_v23  ;;  %v4589_v59 = vor.u32 %v5656_v58, %v4588_v57  ;;  %v5658_v61 = vld [vmem:[%s6057_s13 + $0x24] sm:$0xf0]  ;;  %v5028_v63 = vld [vmem:[%s8621_s1 + $0x80] sm:$0xf]  ;;  %v5765_v1 = vld [vmem:[%s8621_s1 + $0x84] sm:$0xf] }
  0x1b   : > { %1586 = vmatpush.bf16.msra.mxu2 %v5001_v27  ;;  %v4597_v62 = vor.u32 %v5658_v61, %v4596_v60  ;;  %v5766_v0 = vld [vmem:[%s8621_s1 + $0x84] sm:$0xf0]  ;;  %v5030_v3 = vld [vmem:[%s8621_s1 + $0x88] sm:$0xf0]  ;;  %v4604_v5 = vld [vmem:[%s6057_s13 + $0x30] sm:$0xf] }
  0x1c   : > { %v5029_v2 = vor.u32 %v5766_v0, %v5028_v63  ;;  %v5033_v4 = vor.u32 %v5765_v1, %v5030_v3  ;;  %v5660_v6 = vld [vmem:[%s6057_s13 + $0x34] sm:$0xf0]  ;;  %v5663_v8 = vld [vmem:[%s6057_s13 + $0x54] sm:$0xf]  ;;  %v4622_v9 = vld [vmem:[%s6057_s13 + $0x58] sm:$0xf0] }
  0x1d   : > { %v4605_v7 = vor.u32 %v5660_v6, %v4604_v5  ;;  %v4625_v10 = vor.u32 %v5663_v8, %v4622_v9  ;;  %v4612_v11 = vld [vmem:[%s6057_s13 + $0x40] sm:$0xf]  ;;  %v5662_v12 = vld [vmem:[%s6057_s13 + $0x44] sm:$0xf0]  ;;  %v5665_v14 = vld [vmem:[%s6057_s13 + $0x64] sm:$0xf] }
  0x1e   : > { %1089 = vmatpush.bf16.msra.mxu0 %v4989_v34  ;;  %5882 = vmatpush.bf16.msra.mxu1 %v5029_v2  ;;  %v4613_v13 = vor.u32 %v5662_v12, %v4612_v11  ;;  %v4630_v15 = vld [vmem:[%s6057_s13 + $0x68] sm:$0xf0]  ;;  %v4620_v17 = vld [vmem:[%s6057_s13 + $0x50] sm:$0xf]  ;;  %v5664_v18 = vld [vmem:[%s6057_s13 + $0x54] sm:$0xf0] }
  0x1f   : > { %1587 = vmatpush.bf16.msra.mxu2 %v4993_v35  ;;  %5884 = vmatpush.bf16.msra.mxu3 %v5033_v4  ;;  %v4633_v16 = vor.u32 %v5665_v14, %v4630_v15  ;;  %v4621_v19 = vor.u32 %v5664_v18, %v4620_v17  ;;  %v5667_v20 = vld [vmem:[%s6057_s13 + $0x74] sm:$0xf]  ;;  %v4638_v21 = vld [vmem:[%s6057_s13 + $0x78] sm:$0xf0]  ;;  %v4628_v23 = vld [vmem:[%s6057_s13 + $0x60] sm:$0xf] }
  0x20   : > { %v4641_v22 = vor.u32 %v5667_v20, %v4638_v21  ;;  %v5666_v24 = vld [vmem:[%s6057_s13 + $0x64] sm:$0xf0]  ;;  %v5669_v26 = vld [vmem:[%s6057_s13 + $0x84] sm:$0xf]  ;;  %v4646_v27 = vld [vmem:[%s6057_s13 + $0x88] sm:$0xf0] }
  0x21   : > { %5047 = vmatmul.msk.bf16.vlgmr.msra.gmra.mxu1 %vm940_vm0, %v4625_v10  ;;  %v4629_v25 = vor.u32 %v5666_v24, %v4628_v23  ;;  %v4649_v28 = vor.u32 %v5669_v26, %v4646_v27  ;;  %v5668_v30 = vld [vmem:[%s6057_s13 + $0x74] sm:$0xf0]  ;;  %v5671_v32 = vld [vmem:[%s6057_s13 + $0x94] sm:$0xf]  ;;  %v4644_v35 = vld [vmem:[%s6057_s13 + $0x80] sm:$0xf] }
  0x22   : > { %1090 = vmatpush.bf16.msra.mxu0 %v4981_v40  ;;  %5095 = vmatmul.msk.bf16.vlgmr.msra.gmra.mxu3 %vm940_vm0, %v4625_v10  ;;  %v5670_v36 = vld [vmem:[%s6057_s13 + $0x84] sm:$0xf0]  ;;  %v5673_v39 = vld [vmem:[%s6057_s13 + $0xa4] sm:$0xf]  ;;  %v4662_v40 = vld [vmem:[%s6057_s13 + $0xa8] sm:$0xf0] }
  0x23   : > { %1588 = vmatpush.bf16.msra.mxu2 %v4985_v41  ;;  %v4645_v37 = vor.u32 %v5670_v36, %v4644_v35  ;;  %v4665_v41 = vor.u32 %v5673_v39, %v4662_v40  ;;  %v4652_v44 = vld [vmem:[%s6057_s13 + $0x90] sm:$0xf]  ;;  %v5672_v45 = vld [vmem:[%s6057_s13 + $0x94] sm:$0xf0]  ;;  %v5675_v49 = vld [vmem:[%s6057_s13 + $0xb4] sm:$0xf] }
  0x24   : > { %v4670_v50 = vld [vmem:[%s6057_s13 + $0xb8] sm:$0xf0]  ;;  %v4660_v54 = vld [vmem:[%s6057_s13 + $0xa0] sm:$0xf]  ;;  %v4678_v60 = vld [vmem:[%s6057_s13 + $0xc8] sm:$0xf0] }
  0x25   : > { %v4673_v51 = vor.u32 %v5675_v49, %v4670_v50  ;;  %v4668_v0 = vld [vmem:[%s6057_s13 + $0xb0] sm:$0xf]  ;;  %v5676_v1 = vld [vmem:[%s6057_s13 + $0xb4] sm:$0xf0]  ;;  %v5679_v6 = vld [vmem:[%s6057_s13 + $0xd4] sm:$0xf] }
  0x26   : > { %1091 = vmatpush.bf16.msra.mxu0 %v4973_v46  ;;  %v4669_v3 = vor.u32 %v5676_v1, %v4668_v0  ;;  %v5678_v14 = vld [vmem:[%s6057_s13 + $0xc4] sm:$0xf0]  ;;  %v5681_v20 = vld [vmem:[%s6057_s13 + $0xe4] sm:$0xf]  ;;  %v4694_v21 = vld [vmem:[%s6057_s13 + $0xe8] sm:$0xf0] }
  0x27   : > { %1589 = vmatpush.bf16.msra.mxu2 %v4977_v47  ;;  %v4653_v47 = vor.u32 %v5672_v45, %v4652_v44  ;;  %v402_v27 = vld [vmem:[%s8622_s2] sm:$0x3]  ;;  %v5683_v39 = vld [vmem:[%s6057_s13 + $0xf4] sm:$0xf]  ;;  %v4702_v40 = vld [vmem:[%s6057_s13 + $0xf8] sm:$0xf0] }
  0x28   : > { %v6195_v44 = vperm.slane %v402_v27, 1  ;;  %s8834_s18 = smov (!%p280_p4, %s4576_s18), 7 }
  0x29   : > { %s4577_s21 = sshll.u32 %s8834_s18, 3 }
  0x2a   : > { %1092 = vmatpush.bf16.msra.mxu0 %v4965_v52 }
  0x2b   : > { %1590 = vmatpush.bf16.msra.mxu2 %v4969_v55  ;;  %v5674_v55 = vld [vmem:[%s6057_s13 + $0xa4] sm:$0xf0] }
  0x2c   : > { %v4661_v57 = vor.u32 %v5674_v55, %v4660_v54 }
  0x2d   : > { %1093 = vmatmul.bf16.vlgmr.msra.gmra.mxu0 %v4581_v56 }
  0x2e   : > { %1340 = vmatpush.bf16.msrb.mxu0 %v5037_v33  ;;  %1591 = vmatmul.bf16.vlgmr.msra.gmra.mxu2 %v4581_v56  ;;  %v4654_v33 = vld [vmem:[%s6057_s13 + $0x98] sm:$0xf0] }
  0x2f   : > { %1838 = vmatpush.bf16.msrb.mxu2 %v5041_v29  ;;  %v4636_v29 = vld [vmem:[%s6057_s13 + $0x70] sm:$0xf]  ;;  %v4657_v34 = vor.u32 %v5671_v32, %v4654_v33 }
  0x30   : > { %v4637_v31 = vor.u32 %v5668_v30, %v4636_v29  ;;  %v5680_v29 = vld [vmem:[%s6057_s13 + $0xd4] sm:$0xf0]  ;;  %v6186_v30 = vperm.slane %v402_v27, 0 }
  0x31   : > { %5048 = vmatmul.msk.bf16.gmra.mxu1 %vm940_vm0, %v4633_v16 }
  0x32   : > { %1341 = vmatpush.bf16.msrb.mxu0 %v5029_v2  ;;  %5096 = vmatmul.msk.bf16.gmra.mxu3 %vm940_vm0, %v4633_v16 }
  0x33   : > { %1839 = vmatpush.bf16.msrb.mxu2 %v5033_v4 }
  0x3d   : > { %1098 = vmatmul.bf16.gmra.mxu0 %v4589_v59 }
  0x3e   : > { %1596 = vmatmul.bf16.gmra.mxu2 %v4589_v59  ;;  %v5677_v59 = vld [vmem:[%s6057_s13 + $0xc4] sm:$0xf] }
  0x3f   : > { %v4681_v61 = vor.u32 %v5677_v59, %v4678_v60  ;;  %v4692_v60 = vld [vmem:[%s6057_s13 + $0xe0] sm:$0xf] }
  0x41   : > { %5049 = vmatmul.msk.bf16.gmra.mxu1 %vm940_vm0, %v4641_v22 }
  0x42   : > { %5097 = vmatmul.msk.bf16.gmra.mxu3 %vm940_vm0, %v4641_v22  ;;  %v4697_v22 = vor.u32 %v5681_v20, %v4694_v21 }
  0x4d   : > { %1103 = vmatmul.bf16.gmra.mxu0 %v4597_v62 }
  0x4e   : > { %1601 = vmatmul.bf16.gmra.mxu2 %v4597_v62 }
  0x51   : > { %5050 = vmatmul.msk.bf16.gmra.mxu1 %vm940_vm0, %v4649_v28 }
  0x52   : > { %5098 = vmatmul.msk.bf16.gmra.mxu3 %vm940_vm0, %v4649_v28  ;;  %v4684_v28 = vld [vmem:[%s6057_s13 + $0xd0] sm:$0xf] }
  0x53   : > { %v4685_v32 = vor.u32 %v5680_v29, %v4684_v28 }
  0x5d   : > { %1108 = vmatmul.bf16.gmra.mxu0 %v4605_v7 }
  0x5e   : > { %1606 = vmatmul.bf16.gmra.mxu2 %v4605_v7  ;;  %v4686_v7 = vld [vmem:[%s6057_s13 + $0xd8] sm:$0xf0] }
  0x5f   : > { %v4689_v8 = vor.u32 %v5679_v6, %v4686_v7 }
  0x61   : > { %5051 = vmatmul.msk.bf16.gmra.mxu1 %vm940_vm0, %v4657_v34 }
  0x62   : > { %5099 = vmatmul.msk.bf16.gmra.mxu3 %vm940_vm0, %v4657_v34 }
  0x6d   : > { %1113 = vmatmul.bf16.gmra.mxu0 %v4613_v13 }
  0x6e   : > { %1611 = vmatmul.bf16.gmra.mxu2 %v4613_v13  ;;  %v4676_v13 = vld [vmem:[%s6057_s13 + $0xc0] sm:$0xf] }
  0x6f   : > { %v4677_v16 = vor.u32 %v5678_v14, %v4676_v13  ;;  %v5685_v13 = vld [vmem:[%s6057_s13 + $0x104] sm:$0xf]  ;;  %v4710_v14 = vld [vmem:[%s6057_s13 + $0x108] sm:$0xf0] }
  0x70   : > { %v4713_v20 = vor.u32 %v5685_v13, %v4710_v14  ;;  %v4708_v14 = vld [vmem:[%s6057_s13 + $0x100] sm:$0xf] }
  0x71   : > { %5052 = vmatmul.msk.bf16.gmra.mxu1 %vm940_vm0, %v4665_v41 }
  0x72   : > { %5100 = vmatmul.msk.bf16.gmra.mxu3 %vm940_vm0, %v4665_v41  ;;  %v4705_v41 = vor.u32 %v5683_v39, %v4702_v40 }
  0x7d   : > { %1118 = vmatmul.bf16.gmra.mxu0 %v4621_v19 }
  0x7e   : > { %1616 = vmatmul.bf16.gmra.mxu2 %v4621_v19 }
  0x81   : > { %5053 = vmatmul.msk.bf16.gmra.mxu1 %vm940_vm0, %v4673_v51 }
  0x82   : > { %5101 = vmatmul.msk.bf16.gmra.mxu3 %vm940_vm0, %v4673_v51 }
  0x8d   : > { %1123 = vmatmul.bf16.gmra.mxu0 %v4629_v25 }
  0x8e   : > { %1621 = vmatmul.bf16.gmra.mxu2 %v4629_v25 }
  0x91   : > { %5054 = vmatmul.msk.bf16.gmra.mxu1 %vm940_vm0, %v4681_v61 }
  0x92   : > { %5102 = vmatmul.msk.bf16.gmra.mxu3 %vm940_vm0, %v4681_v61  ;;  %v5682_v61 = vld [vmem:[%s6057_s13 + $0xe4] sm:$0xf0] }
  0x93   : > { %v4693_v1 = vor.u32 %v5682_v61, %v4692_v60  ;;  %v4750_v60 = vld [vmem:[%s6057_s13 + $0x158] sm:$0xf0] }
  0x9d   : > { %1128 = vmatmul.bf16.gmra.mxu0 %v4637_v31 }
  0x9e   : > { %1626 = vmatmul.bf16.gmra.mxu2 %v4637_v31  ;;  %v1368_v5 = vpop.f32.mrf.mxu1 }
  0xa1   : > { %5055 = vmatmul.msk.bf16.gmra.mxu1 %vm940_vm0, %v4689_v8 }
  0xa2   : > { %5103 = vmatmul.msk.bf16.gmra.mxu3 %vm940_vm0, %v4689_v8 }
  0xa5   : > { %v1866_v11 = vpop.f32.mrf.mxu3 }
  0xa6   : > { %v1370_v12 = vpop.f32.mrf.mxu1 }
  0xaa   : > { %v6115_v38 = vpop.f32.mrf.mxu0 }
  0xad   : > { %1133 = vmatmul.bf16.gmra.mxu0 %v4645_v37  ;;  %v1868_v18 = vpop.f32.mrf.mxu3 }
  0xae   : > { %1631 = vmatmul.bf16.gmra.mxu2 %v4645_v37  ;;  %v1373_v19 = vpop.f32.mrf.mxu1 }
  0xb1   : > { %v6121_v42 = vpop.f32.mrf.mxu2  ;;  %5056 = vmatmul.msk.bf16.gmra.mxu1 %vm940_vm0, %v4697_v22 }
  0xb2   : > { %v6123_v43 = vpop.f32.mrf.mxu0  ;;  %5104 = vmatmul.msk.bf16.gmra.mxu3 %vm940_vm0, %v4697_v22 }
  0xb5   : > { %v1871_v25 = vpop.f32.mrf.mxu3 }
  0xb6   : > { %v1375_v26 = vpop.f32.mrf.mxu1 }
  0xb9   : > { %v6127_v46 = vpop.f32.mrf.mxu2 }
  0xba   : > { %v6129_v48 = vpop.f32.mrf.mxu0 }
  0xbd   : > { %1138 = vmatmul.bf16.gmra.mxu0 %v4653_v47  ;;  %v1873_v35 = vpop.f32.mrf.mxu3 }
  0xbe   : > { %1636 = vmatmul.bf16.gmra.mxu2 %v4653_v47  ;;  %v1378_v37 = vpop.f32.mrf.mxu1 }
  0xc1   : > { %v6135_v52 = vpop.f32.mrf.mxu2  ;;  %5057 = vmatmul.msk.bf16.gmra.mxu1 %vm940_vm0, %v4705_v41 }
  0xc2   : > { %v6137_v53 = vpop.f32.mrf.mxu0  ;;  %5105 = vmatmul.msk.bf16.gmra.mxu3 %vm940_vm0, %v4705_v41 }
  0xc5   : > { %v1876_v51 = vpop.f32.mrf.mxu3 }
  0xc9   : > { %v6141_v56 = vpop.f32.mrf.mxu2 }
  0xca   : > { %v6143_v58 = vpop.f32.mrf.mxu0 }
  0xcd   : > { %1143 = vmatmul.bf16.gmra.mxu0 %v4661_v57  ;;  %v1878_v7 = vpop.f32.mrf.mxu3 }
  0xce   : > { %1641 = vmatmul.bf16.gmra.mxu2 %v4661_v57  ;;  %v1380_v57 = vpop.f32.mrf.mxu1 }
  0xd1   : > { %v6149_v62 = vpop.f32.mrf.mxu2  ;;  %5058 = vmatmul.msk.bf16.gmra.mxu1 %vm940_vm0, %v4713_v20 }
  0xd2   : > { %v6151_v63 = vpop.f32.mrf.mxu0  ;;  %5106 = vmatmul.msk.bf16.gmra.mxu3 %vm940_vm0, %v4713_v20  ;;  %v5686_v20 = vld [vmem:[%s6057_s13 + $0x104] sm:$0xf0] }
  0xd5   : > { %v6223_v27 = vpop.f32.mrf.mxu3 }
  0xd9   : > { %v6155_v2 = vpop.f32.mrf.mxu2 }
  0xda   : > { %v6157_v4 = vpop.f32.mrf.mxu0 }
  0xdd   : > { %1148 = vmatmul.bf16.gmra.mxu0 %v4669_v3 }
  0xde   : > { %1646 = vmatmul.bf16.gmra.mxu2 %v4669_v3 }
  0xe1   : > { %v6163_v9 = vpop.f32.mrf.mxu2 }
  0xe2   : > { %v6165_v10 = vpop.f32.mrf.mxu0 }
  0xe9   : > { %v6169_v15 = vpop.f32.mrf.mxu2 }
  0xea   : > { %v6171_v17 = vpop.f32.mrf.mxu0 }
  0xed   : > { %1153 = vmatmul.bf16.gmra.mxu0 %v4677_v16 }
  0xee   : > { %1651 = vmatmul.bf16.gmra.mxu2 %v4677_v16 }
  0xf1   : > { %v6177_v23 = vpop.f32.mrf.mxu2 }
  0xf2   : > { %v6179_v24 = vpop.f32.mrf.mxu0 }
  0xf9   : > { %v6188_v31 = vpop.f32.mrf.mxu2 }
  0xfa   : > { %v1119_v33 = vpop.f32.mrf.mxu0 }
  0xfb   : > { %v1120_v34 = vadd.f32 %v1119_v33, %v6186_v30 }
  0xfd   : > { %v6191_v36 = vadd.f32 %v1368_v5, %v1120_v34  ;;  %1158 = vmatmul.bf16.gmra.mxu0 %v4685_v32  ;;  %v4700_v34 = vld [vmem:[%s6057_s13 + $0xf0] sm:$0xf] }
  0xfe   : > { %1656 = vmatmul.bf16.gmra.mxu2 %v4685_v32 }
 0x101   : > { %v1617_v45 = vpop.f32.mrf.mxu2 }
 0x102   : > { %v1618_v47 = vadd.f32 %v1617_v45, %v6195_v44  ;;  %v1121_v49 = vpop.f32.mrf.mxu0 }
 0x103   : > { %v1122_v50 = vadd.f32 %v1121_v49, %v6186_v30  ;;  %v6235_v49 = vpop.f32.mrf.mxu3 }
 0x104   : > { %v6201_v54 = vadd.f32 %v1866_v11, %v1618_v47 }
 0x105   : > { %v6203_v55 = vadd.f32 %v1370_v12, %v1122_v50  ;;  %v1383_v12 = vpop.f32.mrf.mxu1 }
 0x106   : > { %v2091_v59 = vmax.f32 %v6191_v36, %v6201_v54  ;;  %v5684_v36 = vld [vmem:[%s6057_s13 + $0xf4] sm:$0xf0]  ;;  %v5687_v54 = vld [vmem:[%s6057_s13 + $0x114] sm:$0xf] }
 0x107   : > { %v4701_v40 = vor.u32 %v5684_v36, %v4700_v34 }
 0x109   : > { %v1619_v0 = vpop.f32.mrf.mxu2 }
 0x10a   : > { %v1620_v3 = vadd.f32 %v1619_v0, %v6195_v44  ;;  %v1124_v5 = vpop.f32.mrf.mxu0 }
 0x10b   : > { %v1125_v6 = vadd.f32 %v1124_v5, %v6186_v30 }
 0x10c   : > { %v6211_v8 = vadd.f32 %v1868_v18, %v1620_v3  ;;  %v6249_v3 = vpop.f32.mrf.mxu3 }
 0x10d   : > { %v6213_v11 = vadd.f32 %v1373_v19, %v1125_v6  ;;  %1163 = vmatmul.bf16.gmra.mxu0 %v4693_v1  ;;  %v1385_v32 = vpop.f32.mrf.mxu1 }
 0x10e   : > { %v2092_v16 = vmax.f32 %v6203_v55, %v6211_v8  ;;  %1661 = vmatmul.bf16.gmra.mxu2 %v4693_v1  ;;  %v4718_v55 = vld [vmem:[%s6057_s13 + $0x118] sm:$0xf0] }
 0x10f   : > { %v4721_v61 = vor.u32 %v5687_v54, %v4718_v55 }
 0x111   : > { %v1622_v21 = vpop.f32.mrf.mxu2  ;;  %5059 = vmatmul.msk.bf16.gmra.mxu1 %vm940_vm0, %v4721_v61  ;;  %5107 = vmatmul.msk.bf16.gmra.mxu3 %vm940_vm0, %v4721_v61 }
 0x112   : > { %v1623_v18 = vadd.f32 %v1622_v21, %v6195_v44  ;;  %v1126_v19 = vpop.f32.mrf.mxu0 }
 0x113   : > { %v1127_v22 = vadd.f32 %v1126_v19, %v6186_v30  ;;  %v4709_v19 = vor.u32 %v5686_v20, %v4708_v14 }
 0x114   : > { %v6225_v28 = vadd.f32 %v1871_v25, %v1623_v18 }
 0x115   : > { %v6227_v29 = vadd.f32 %v1375_v26, %v1127_v22  ;;  %v6239_v50 = vpop.f32.mrf.mxu1 }
 0x119   : > { %v1624_v39 = vpop.f32.mrf.mxu2 }
 0x11a   : > { %v1625_v41 = vadd.f32 %v1624_v39, %v6195_v44  ;;  %v1129_v45 = vpop.f32.mrf.mxu0  ;;  %v6257_v39 = vpop.f32.mrf.mxu3 }
 0x11b   : > { %v1130_v47 = vadd.f32 %v1129_v45, %v6186_v30  ;;  %v4726_v45 = vld [vmem:[%s6057_s13 + $0x128] sm:$0xf0] }
 0x11c   : > { %v6237_v25 = vadd.f32 %v1873_v35, %v1625_v41  ;;  %v5689_v41 = vld [vmem:[%s6057_s13 + $0x124] sm:$0xf] }
 0x11d   : > { %v1379_v26 = vadd.f32 %v1378_v37, %v1130_v47  ;;  %1168 = vmatmul.bf16.gmra.mxu0 %v4701_v40  ;;  %v6251_v8 = vpop.f32.mrf.mxu1 }
 0x11e   : > { %1666 = vmatmul.bf16.gmra.mxu2 %v4701_v40 }
 0x121   : > { %v1627_v0 = vpop.f32.mrf.mxu2 }
 0x122   : > { %v1628_v35 = vadd.f32 %v1627_v0, %v6195_v44  ;;  %v1131_v37 = vpop.f32.mrf.mxu0 }
 0x123   : > { %v1132_v1 = vadd.f32 %v1131_v37, %v6186_v30  ;;  %v6269_v37 = vpop.f32.mrf.mxu3 }
 0x124   : > { %v1877_v5 = vadd.f32 %v1876_v51, %v1628_v35 }
 0x125   : > { %v1381_v6 = vadd.f32 %v1380_v57, %v1132_v1  ;;  %v6261_v57 = vpop.f32.mrf.mxu1 }
 0x126   : > { %v2095_v13 = vmax.f32 %v1379_v26, %v1877_v5 }
 0x128   : > { %v2183_v21 = vmax.f32 %v2091_v59, %v2095_v13  ;;  %v4729_v59 = vor.u32 %v5689_v41, %v4726_v45 }
 0x129   : > { %v1629_v18 = vpop.f32.mrf.mxu2 }
 0x12a   : > { %v1630_v22 = vadd.f32 %v1629_v18, %v6195_v44  ;;  %v1134_v34 = vpop.f32.mrf.mxu0  ;;  %v2231_v47 = vmax.f32 %v2183_v21, 0.0  ;;  %5060 = vmatmul.msk.bf16.gmra.mxu1 %vm940_vm0, %v4729_v59  ;;  %5108 = vmatmul.msk.bf16.gmra.mxu3 %vm940_vm0, %v4729_v59  ;;  %v4716_v21 = vld [vmem:[%s6057_s13 + $0x110] sm:$0xf]  ;;  %v5688_v18 = vld [vmem:[%s6057_s13 + $0x114] sm:$0xf0] }
 0x12b   : > { %v1135_v36 = vadd.f32 %v1134_v34, %v6186_v30  ;;  %v4717_v34 = vor.u32 %v5688_v18, %v4716_v21  ;;  %v4734_v59 = vld [vmem:[%s6057_s13 + $0x138] sm:$0xf0] }
 0x12c   : > { %v1879_v40 = vadd.f32 %v1878_v7, %v1630_v22  ;;  %v2279_v7 = vpack.c.bf16 %v2231_v47, %v2231_v47 }
 0x12d   : > { %v6259_v51 = vadd.f32 %v1383_v12, %v1135_v36  ;;  %1173 = vmatmul.bf16.gmra.mxu0 %v4709_v19 }
 0x12e   : > { %v2096_v26 = vmax.f32 %v1381_v6, %v1879_v40  ;;  %1671 = vmatmul.bf16.gmra.mxu2 %v4709_v19  ;;  %v6276_v6 = vpop.f32.mrf.mxu1  ;;  %v2388_v13 = vunpack.c.l.b16 %v2279_v7  ;;  %v6286_v40 = vpop.f32.mrf.mxu3 }
 0x130   : > { %v2184_v54 = vmax.f32 %v2092_v16, %v2096_v26  ;;  %v5691_v26 = vld [vmem:[%s6057_s13 + $0x134] sm:$0xf] }
 0x131   : > { %v1632_v55 = vpop.f32.mrf.mxu2 }
 0x132   : > { %v2232_v12 = vmax.f32 %v2184_v54, 0.0  ;;  %v1633_v61 = vadd.f32 %v1632_v55, %v6195_v44  ;;  %v1136_v0 = vpop.f32.mrf.mxu0  ;;  %v5799_v55 = vld [vmem:[%s8623_s3 + $0xf4] sm:$0xf] }
 0x133   : > { %v1137_v35 = vadd.f32 %v1136_v0, %v6186_v30 }
 0x134   : > { %v2280_v1 = vpack.c.bf16 %v2232_v12, %v2232_v12  ;;  %v6272_v5 = vadd.f32 %v6223_v27, %v1633_v61 }
 0x135   : > { %v6274_v16 = vadd.f32 %v1385_v32, %v1137_v35 }
 0x136   : > { %v2389_v14 = vunpack.c.l.b16 %v2280_v1  ;;  %v2097_v20 = vmax.f32 %v6259_v51, %v6272_v5  ;;  %v6294_v47 = vpop.f32.mrf.mxu1  ;;  %v6310_v1 = vpop.f32.mrf.mxu3 }
 0x138   : > { %v6282_v19 = vpack.c.b16 %v2389_v14, %v2388_v13 }
 0x139   : > { %v1634_v22 = vpop.f32.mrf.mxu2 }
 0x13a   : > { %v1635_v27 = vadd.f32 %v1634_v22, %v6195_v44  ;;  %v1139_v36 = vpop.f32.mrf.mxu0  ;;  %v4724_v22 = vld [vmem:[%s6057_s13 + $0x120] sm:$0xf] }
 0x13b   : > { %v1140_v32 = vadd.f32 %v1139_v36, %v6186_v30 }
 0x13c   : > { %v6289_v41 = vadd.f32 %v6235_v49, %v1635_v27  ;;  %v5214_v49 = vld [vmem:[%s8623_s3 + $0xf8] sm:$0xf0]  ;;  %v5212_v27 = vld [vmem:[%s8623_s3 + $0xf0] sm:$0xf] }
 0x13d   : > { %v6292_v45 = vadd.f32 %v6239_v50, %v1140_v32  ;;  %1178 = vmatmul.bf16.gmra.mxu0 %v4717_v34  ;;  %v4737_v50 = vor.u32 %v5691_v26, %v4734_v59  ;;  %v5217_v7 = vor.u32 %v5799_v55, %v5214_v49 }
 0x13e   : > { %v2098_v54 = vmax.f32 %v6274_v16, %v6289_v41  ;;  %1676 = vmatmul.bf16.gmra.mxu2 %v4717_v34  ;;  %v6318_v21 = vpop.f32.mrf.mxu1  ;;  %v5690_v34 = vld [vmem:[%s6057_s13 + $0x124] sm:$0xf0]  ;;  %v6332_v49 = vpop.f32.mrf.mxu3 }
 0x13f   : > { %5061 = vmatmul.msk.bf16.gmra.mxu1 %vm940_vm0, %v4737_v50  ;;  %5109 = vmatmul.msk.bf16.gmra.mxu3 %vm940_vm0, %v4737_v50 }
 0x140   : > { %2619 = vmatpush.bf16.msrb.mxu3 %v5217_v7 }
 0x141   : > { %v1637_v12 = vpop.f32.mrf.mxu2 }
 0x142   : > { %v1638_v61 = vadd.f32 %v1637_v12, %v6195_v44  ;;  %v1141_v0 = vpop.f32.mrf.mxu0 }
 0x143   : > { %v1142_v35 = vadd.f32 %v1141_v0, %v6186_v30  ;;  %v4742_v0 = vld [vmem:[%s6057_s13 + $0x148] sm:$0xf0] }
 0x144   : > { %v6313_v13 = vadd.f32 %v6249_v3, %v1638_v61  ;;  %v5800_v3 = vld [vmem:[%s8623_s3 + $0xf4] sm:$0xf0]  ;;  %v5693_v61 = vld [vmem:[%s6057_s13 + $0x144] sm:$0xf] }
 0x145   : > { %v6316_v14 = vadd.f32 %v6251_v8, %v1142_v35  ;;  %v4725_v8 = vor.u32 %v5690_v34, %v4724_v22  ;;  %v5213_v32 = vor.u32 %v5800_v3, %v5212_v27  ;;  %v4745_v22 = vor.u32 %v5693_v61, %v4742_v0 }
 0x146   : > { %v2099_v18 = vmax.f32 %v6292_v45, %v6313_v13  ;;  %v6338_v12 = vpop.f32.mrf.mxu1  ;;  %v6348_v3 = vpop.f32.mrf.mxu3 }
 0x147   : > { %2530 = vmatpush.bf16.msrb.mxu1 %v5213_v32 }
 0x149   : > { %v1639_v36 = vpop.f32.mrf.mxu2 }
 0x14a   : > { %v1640_v26 = vadd.f32 %v1639_v36, %v6195_v44  ;;  %v1144_v59 = vpop.f32.mrf.mxu0 }
 0x14b   : > { %v1145_v55 = vadd.f32 %v1144_v59, %v6186_v30  ;;  %v4732_v59 = vld [vmem:[%s6057_s13 + $0x130] sm:$0xf] }
 0x14c   : > { %v6335_v50 = vadd.f32 %v6257_v39, %v1640_v26 }
 0x14d   : > { %v1394_v7 = vadd.f32 %v6261_v57, %v1145_v55  ;;  %1183 = vmatmul.bf16.gmra.mxu0 %v4725_v8  ;;  %v5692_v55 = vld [vmem:[%s6057_s13 + $0x134] sm:$0xf0] }
 0x14e   : > { %v2100_v35 = vmax.f32 %v6316_v14, %v6335_v50  ;;  %1681 = vmatmul.bf16.gmra.mxu2 %v4725_v8  ;;  %v6352_v26 = vpop.f32.mrf.mxu1 }
 0x14f   : > { %5062 = vmatmul.msk.bf16.gmra.mxu1 %vm940_vm0, %v4745_v22  ;;  %5110 = vmatmul.msk.bf16.gmra.mxu3 %vm940_vm0, %v4745_v22  ;;  %v4733_v22 = vor.u32 %v5692_v55, %v4732_v59 }
 0x151   : > { %v1642_v39 = vpop.f32.mrf.mxu2 }
 0x152   : > { %v1643_v34 = vadd.f32 %v1642_v39, %v6195_v44  ;;  %v1146_v57 = vpop.f32.mrf.mxu0 }
 0x153   : > { %v1147_v27 = vadd.f32 %v1146_v57, %v6186_v30 }
 0x154   : > { %v1892_v36 = vadd.f32 %v6269_v37, %v1643_v34  ;;  %v6361_v34 = vpop.f32.mrf.mxu3 }
 0x155   : > { %v1396_v32 = vadd.f32 %v6276_v6, %v1147_v27 }
 0x156   : > { %v2101_v8 = vmax.f32 %v1394_v7, %v1892_v36  ;;  %v6365_v7 = vpop.f32.mrf.mxu1  ;;  %v5695_v36 = vld [vmem:[%s6057_s13 + $0x154] sm:$0xf] }
 0x158   : > { %v2185_v61 = vmax.f32 %v2097_v20, %v2101_v8  ;;  %v4753_v20 = vor.u32 %v5695_v36, %v4750_v60 }
 0x159   : > { %v1644_v0 = vpop.f32.mrf.mxu2 }
 0x15a   : > { %v1645_v39 = vadd.f32 %v1644_v0, %v6195_v44  ;;  %v1149_v57 = vpop.f32.mrf.mxu0  ;;  %v2233_v51 = vmax.f32 %v2185_v61, 0.0 }
 0x15b   : > { %v1150_v37 = vadd.f32 %v1149_v57, %v6186_v30 }
 0x15c   : > { %v1894_v6 = vadd.f32 %v6286_v40, %v1645_v39  ;;  %v6376_v61 = vpop.f32.mrf.mxu3 }
 0x15d   : > { %v1399_v27 = vadd.f32 %v6294_v47, %v1150_v37  ;;  %1188 = vmatmul.bf16.gmra.mxu0 %v4733_v22  ;;  %v2281_v47 = vpack.c.bf16 %v2233_v51, %v2233_v51  ;;  %v4740_v37 = vld [vmem:[%s6057_s13 + $0x140] sm:$0xf] }
 0x15e   : > { %v2102_v5 = vmax.f32 %v1396_v32, %v1894_v6  ;;  %1686 = vmatmul.bf16.gmra.mxu2 %v4733_v22  ;;  %v5694_v6 = vld [vmem:[%s6057_s13 + $0x144] sm:$0xf0] }
 0x15f   : > { %5063 = vmatmul.msk.bf16.gmra.mxu1 %vm940_vm0, %v4753_v20  ;;  %5111 = vmatmul.msk.bf16.gmra.mxu3 %vm940_vm0, %v4753_v20  ;;  %v2390_v22 = vunpack.c.l.b16 %v2281_v47  ;;  %v4741_v20 = vor.u32 %v5694_v6, %v4740_v37 }
 0x160   : > { %v2186_v8 = vmax.f32 %v2098_v54, %v2102_v5  ;;  %v6380_v54 = vpop.f32.mrf.mxu1 }
 0x161   : > { %v1647_v40 = vpop.f32.mrf.mxu2 }
 0x162   : > { %v2234_v59 = vmax.f32 %v2186_v8, 0.0  ;;  %v1648_v55 = vadd.f32 %v1647_v40, %v6195_v44  ;;  %v1151_v0 = vpop.f32.mrf.mxu0 }
 0x163   : > { %v1152_v32 = vadd.f32 %v1151_v0, %v6186_v30  ;;  %v4758_v0 = vld [vmem:[%s6057_s13 + $0x168] sm:$0xf0] }
 0x164   : > { %v2282_v60 = vpack.c.bf16 %v2234_v59, %v2234_v59  ;;  %v1897_v16 = vadd.f32 %v6310_v1, %v1648_v55  ;;  %v6391_v40 = vpop.f32.mrf.mxu3  ;;  %v5697_v55 = vld [vmem:[%s6057_s13 + $0x164] sm:$0xf] }
 0x165   : > { %v1401_v41 = vadd.f32 %v6318_v21, %v1152_v32 }
 0x166   : > { %v2391_v39 = vunpack.c.l.b16 %v2282_v60  ;;  %v2103_v57 = vmax.f32 %v1399_v27, %v1897_v16 }
 0x168   : > { %v6384_v36 = vpack.c.b16 %v2391_v39, %v2390_v22  ;;  %v2187_v51 = vmax.f32 %v2099_v18, %v2103_v57  ;;  %v1413_v59 = vpop.f32.mrf.mxu1  ;;  %v4761_v18 = vor.u32 %v5697_v55, %v4758_v0 }
 0x169   : > { %v1649_v5 = vpop.f32.mrf.mxu2 }
 0x16a   : > { %v1650_v1 = vadd.f32 %v1649_v5, %v6195_v44  ;;  %v1154_v21 = vpop.f32.mrf.mxu0  ;;  %v2235_v45 = vmax.f32 %v2187_v51, 0.0  ;;  %v4748_v5 = vld [vmem:[%s6057_s13 + $0x150] sm:$0xf] }
 0x16b   : > { %v1155_v8 = vadd.f32 %v1154_v21, %v6186_v30 }
 0x16c   : > { %v1899_v27 = vadd.f32 %v6332_v49, %v1650_v1  ;;  %v1911_v39 = vpop.f32.mrf.mxu3 }
 0x16d   : > { %v6395_v47 = vadd.f32 %v6338_v12, %v1155_v8  ;;  %1193 = vmatmul.bf16.gmra.mxu0 %v4741_v20  ;;  %v2283_v12 = vpack.c.bf16 %v2235_v45, %v2235_v45 }
 0x16e   : > { %v2104_v13 = vmax.f32 %v1401_v41, %v1899_v27  ;;  %1691 = vmatmul.bf16.gmra.mxu2 %v4741_v20  ;;  %v5696_v20 = vld [vmem:[%s6057_s13 + $0x154] sm:$0xf0] }
 0x16f   : > { %5064 = vmatmul.msk.bf16.gmra.mxu1 %vm940_vm0, %v4761_v18  ;;  %5112 = vmatmul.msk.bf16.gmra.mxu3 %vm940_vm0, %v4761_v18  ;;  %v4749_v8 = vor.u32 %v5696_v20, %v4748_v5  ;;  %v4766_v18 = vld [vmem:[%s6057_s13 + $0x178] sm:$0xf0] }
 0x170   : > { %v2188_v32 = vmax.f32 %v2100_v35, %v2104_v13  ;;  %v1415_v50 = vpop.f32.mrf.mxu1  ;;  %v2392_v35 = vunpack.c.l.b16 %v2283_v12  ;;  %v5699_v13 = vld [vmem:[%s6057_s13 + $0x174] sm:$0xf] }
 0x171   : > { %v1652_v49 = vpop.f32.mrf.mxu2 }
 0x172   : > { %v2236_v60 = vmax.f32 %v2188_v32, 0.0  ;;  %v1653_v16 = vadd.f32 %v1652_v49, %v6195_v44  ;;  %v1156_v22 = vpop.f32.mrf.mxu0  ;;  %v4769_v49 = vor.u32 %v5699_v13, %v4766_v18  ;;  %v5701_v13 = vld [vmem:[%s6057_s13 + $0x184] sm:$0xf]  ;;  %v4774_v18 = vld [vmem:[%s6057_s13 + $0x188] sm:$0xf0] }
 0x173   : > { %v1157_v41 = vadd.f32 %v1156_v22, %v6186_v30 }
 0x174   : > { %v2284_v57 = vpack.c.bf16 %v2236_v60, %v2236_v60  ;;  %v6407_v37 = vadd.f32 %v6348_v3, %v1653_v16  ;;  %v6420_v55 = vpop.f32.mrf.mxu3 }
 0x175   : > { %v6410_v14 = vadd.f32 %v6352_v26, %v1157_v41 }
 0x176   : > { %v2393_v6 = vunpack.c.l.b16 %v2284_v57  ;;  %v2105_v51 = vmax.f32 %v6395_v47, %v6407_v37 }
 0x178   : > { %v6416_v1 = vpack.c.b16 %v2393_v6, %v2392_v35  ;;  %v6428_v47 = vpop.f32.mrf.mxu1  ;;  %v4756_v35 = vld [vmem:[%s6057_s13 + $0x160] sm:$0xf]  ;;  %v5698_v6 = vld [vmem:[%s6057_s13 + $0x164] sm:$0xf0] }
 0x179   : > { %v1654_v21 = vpop.f32.mrf.mxu2  ;;  %v4757_v20 = vor.u32 %v5698_v6, %v4756_v35 }
 0x17a   : > { %v1655_v3 = vadd.f32 %v1654_v21, %v6195_v44  ;;  %v1159_v27 = vpop.f32.mrf.mxu0 }
 0x17b   : > { %v1160_v26 = vadd.f32 %v1159_v27, %v6186_v30 }
 0x17c   : > { %v6423_v0 = vadd.f32 %v6361_v34, %v1655_v3  ;;  %v6438_v16 = vpop.f32.mrf.mxu3 }
 0x17d   : > { %v6426_v45 = vadd.f32 %v6365_v7, %v1160_v26  ;;  %1198 = vmatmul.bf16.gmra.mxu0 %v4749_v8 }
 0x17e   : > { %v2106_v32 = vmax.f32 %v6410_v14, %v6423_v0  ;;  %1696 = vmatmul.bf16.gmra.mxu2 %v4749_v8 }
 0x17f   : > { %5065 = vmatmul.msk.bf16.gmra.mxu1 %vm940_vm0, %v4769_v49  ;;  %5113 = vmatmul.msk.bf16.gmra.mxu3 %vm940_vm0, %v4769_v49 }
 0x180   : > { %v6446_v57 = vpop.f32.mrf.mxu1 }
 0x181   : > { %v1657_v34 = vpop.f32.mrf.mxu2 }
 0x182   : > { %v1658_v7 = vadd.f32 %v1657_v34, %v6195_v44  ;;  %v1161_v12 = vpop.f32.mrf.mxu0  ;;  %v4777_v34 = vor.u32 %v5701_v13, %v4774_v18  ;;  %v5797_v13 = vld [vmem:[%s8623_s3 + $0xe4] sm:$0xf]  ;;  %v5206_v18 = vld [vmem:[%s8623_s3 + $0xe8] sm:$0xf0] }
 0x183   : > { %v1162_v60 = vadd.f32 %v1161_v12, %v6186_v30 }
 0x184   : > { %v6441_v22 = vadd.f32 %v6376_v61, %v1658_v7  ;;  %v6454_v3 = vpop.f32.mrf.mxu3 }
 0x185   : > { %v6444_v41 = vadd.f32 %v6380_v54, %v1162_v60 }
 0x186   : > { %v2107_v37 = vmax.f32 %v6426_v45, %v6441_v22 }
 0x188   : > { %v6459_v26 = vpop.f32.mrf.mxu1 }
 0x189   : > { %v1659_v5 = vpop.f32.mrf.mxu2 }
 0x18a   : > { %v1660_v21 = vadd.f32 %v1659_v5, %v6195_v44  ;;  %v1164_v8 = vpop.f32.mrf.mxu0 }
 0x18b   : > { %v1165_v61 = vadd.f32 %v1164_v8, %v6186_v30  ;;  %v4764_v8 = vld [vmem:[%s6057_s13 + $0x170] sm:$0xf] }
 0x18c   : > { %v6457_v54 = vadd.f32 %v6391_v40, %v1660_v21  ;;  %v6469_v60 = vpop.f32.mrf.mxu3 }
 0x18d   : > { %v1414_v27 = vadd.f32 %v1413_v59, %v1165_v61  ;;  %1203 = vmatmul.bf16.gmra.mxu0 %v4757_v20 }
 0x18e   : > { %1701 = vmatmul.bf16.gmra.mxu2 %v4757_v20  ;;  %v5700_v20 = vld [vmem:[%s6057_s13 + $0x174] sm:$0xf0] }
 0x18f   : > { %5066 = vmatmul.msk.bf16.gmra.mxu1 %vm940_vm0, %v4777_v34  ;;  %5114 = vmatmul.msk.bf16.gmra.mxu3 %vm940_vm0, %v4777_v34  ;;  %v5204_v34 = vld [vmem:[%s8623_s3 + $0xe0] sm:$0xf] }
 0x190   : > { %v6471_v5 = vpop.f32.mrf.mxu1 }
 0x191   : > { %v1662_v7 = vpop.f32.mrf.mxu2 }
 0x192   : > { %v1663_v40 = vadd.f32 %v1662_v7, %v6195_v44  ;;  %v1166_v59 = vpop.f32.mrf.mxu0 }
 0x193   : > { %v1167_v12 = vadd.f32 %v1166_v59, %v6186_v30 }
 0x194   : > { %v1912_v35 = vadd.f32 %v1911_v39, %v1663_v40 }
 0x195   : > { %v1416_v6 = vadd.f32 %v1415_v50, %v1167_v12  ;;  %v4765_v50 = vor.u32 %v5700_v20, %v4764_v8  ;;  %v5703_v20 = vld [vmem:[%s6057_s13 + $0x194] sm:$0xf] }
 0x196   : > { %v2109_v21 = vmax.f32 %v1414_v27, %v1912_v35  ;;  %v5209_v27 = vor.u32 %v5797_v13, %v5206_v18  ;;  %v6489_v35 = vpop.f32.mrf.mxu3  ;;  %v4782_v13 = vld [vmem:[%s6057_s13 + $0x198] sm:$0xf0] }
 0x198   : > { %v2189_v61 = vmax.f32 %v2105_v51, %v2109_v21  ;;  %v5798_v51 = vld [vmem:[%s8623_s3 + $0xe4] sm:$0xf0]  ;;  %2620 = vmatpush.bf16.msrb.mxu3 %v5209_v27  ;;  %v6493_v8 = vpop.f32.mrf.mxu1 }
 0x199   : > { %v1664_v39 = vpop.f32.mrf.mxu2  ;;  %v5205_v59 = vor.u32 %v5798_v51, %v5204_v34 }
 0x19a   : > { %v1665_v7 = vadd.f32 %v1664_v39, %v6195_v44  ;;  %v1169_v40 = vpop.f32.mrf.mxu0  ;;  %v2237_v18 = vmax.f32 %v2189_v61, 0.0  ;;  %v4785_v39 = vor.u32 %v5703_v20, %v4782_v13 }
 0x19b   : > { %v1170_v12 = vadd.f32 %v1169_v40, %v6186_v30  ;;  %2531 = vmatpush.bf16.msrb.mxu1 %v5205_v59 }
 0x19c   : > { %v1914_v21 = vadd.f32 %v6420_v55, %v1665_v7 }
 0x19d   : > { %v1419_v33 = vadd.f32 %v6428_v47, %v1170_v12  ;;  %1208 = vmatmul.bf16.gmra.mxu0 %v4765_v50  ;;  %v2285_v47 = vpack.c.bf16 %v2237_v18, %v2237_v18  ;;  %v4772_v12 = vld [vmem:[%s6057_s13 + $0x180] sm:$0xf] }
 0x19e   : > { %v2110_v49 = vmax.f32 %v1416_v6, %v1914_v21  ;;  %1706 = vmatmul.bf16.gmra.mxu2 %v4765_v50  ;;  %v6504_v61 = vpop.f32.mrf.mxu3  ;;  %v5702_v21 = vld [vmem:[%s6057_s13 + $0x184] sm:$0xf0] }
 0x19f   : > { %5067 = vmatmul.msk.bf16.gmra.mxu1 %vm940_vm0, %v4785_v39  ;;  %5115 = vmatmul.msk.bf16.gmra.mxu3 %vm940_vm0, %v4785_v39  ;;  %v4773_v39 = vor.u32 %v5702_v21, %v4772_v12 }
 0x1a0   : > { %v2190_v34 = vmax.f32 %v2106_v32, %v2110_v49  ;;  %v6508_v32 = vpop.f32.mrf.mxu1  ;;  %v2394_v49 = vunpack.c.l.b16 %v2285_v47 }
 0x1a1   : > { %v1667_v55 = vpop.f32.mrf.mxu2 }
 0x1a2   : > { %v2238_v27 = vmax.f32 %v2190_v34, 0.0  ;;  %v1668_v51 = vadd.f32 %v1667_v55, %v6195_v44  ;;  %v1171_v7 = vpop.f32.mrf.mxu0 }
 0x1a3   : > { %v1172_v6 = vadd.f32 %v1171_v7, %v6186_v30  ;;  %v4790_v7 = vld [vmem:[%s6057_s13 + $0x1a8] sm:$0xf0] }
 0x1a4   : > { %v2286_v50 = vpack.c.bf16 %v2238_v27, %v2238_v27  ;;  %v1917_v14 = vadd.f32 %v6438_v16, %v1668_v51  ;;  %v5705_v51 = vld [vmem:[%s6057_s13 + $0x1a4] sm:$0xf] }
 0x1a5   : > { %v1421_v0 = vadd.f32 %v6446_v57, %v1172_v6  ;;  %v8637_v6 = vmax.f32 %v6444_v41, %v6457_v54 }
 0x1a6   : > { %v2395_v40 = vunpack.c.l.b16 %v2286_v50  ;;  %v2111_v59 = vmax.f32 %v1419_v33, %v1917_v14  ;;  %v6519_v55 = vpop.f32.mrf.mxu3 }
 0x1a8   : > { %v6512_v20 = vpack.c.b16 %v2395_v40, %v2394_v49  ;;  %v2191_v13 = vmax.f32 %v2107_v37, %v2111_v59  ;;  %v1433_v27 = vpop.f32.mrf.mxu1  ;;  %v4793_v37 = vor.u32 %v5705_v51, %v4790_v7 }
 0x1a9   : > { %v1669_v18 = vpop.f32.mrf.mxu2 }
 0x1aa   : > { %v1670_v16 = vadd.f32 %v1669_v18, %v6195_v44  ;;  %v1174_v57 = vpop.f32.mrf.mxu0  ;;  %v2239_v45 = vmax.f32 %v2191_v13, 0.0 }
 0x1ab   : > { %v1175_v34 = vadd.f32 %v1174_v57, %v6186_v30  ;;  %v5704_v57 = vld [vmem:[%s6057_s13 + $0x194] sm:$0xf0] }
 0x1ac   : > { %v1919_v33 = vadd.f32 %v6454_v3, %v1670_v16  ;;  %v4780_v16 = vld [vmem:[%s6057_s13 + $0x190] sm:$0xf] }
 0x1ad   : > { %v6523_v47 = vadd.f32 %v6459_v26, %v1175_v34  ;;  %1213 = vmatmul.bf16.gmra.mxu0 %v4773_v39  ;;  %v2287_v26 = vpack.c.bf16 %v2239_v45, %v2239_v45  ;;  %v4781_v51 = vor.u32 %v5704_v57, %v4780_v16 }
 0x1ae   : > { %v2112_v22 = vmax.f32 %v1421_v0, %v1919_v33  ;;  %1711 = vmatmul.bf16.gmra.mxu2 %v4773_v39  ;;  %v1931_v59 = vpop.f32.mrf.mxu3 }
 0x1af   : > { %5068 = vmatmul.msk.bf16.gmra.mxu1 %vm940_vm0, %v4793_v37  ;;  %5116 = vmatmul.msk.bf16.gmra.mxu3 %vm940_vm0, %v4793_v37  ;;  %v2396_v13 = vunpack.c.l.b16 %v2287_v26 }
 0x1b0   : > { %v2192_v50 = vmax.f32 %v8637_v6, %v2112_v22  ;;  %v1435_v54 = vpop.f32.mrf.mxu1  ;;  %v5707_v6 = vld [vmem:[%s6057_s13 + $0x1b4] sm:$0xf] }
 0x1b1   : > { %v1672_v3 = vpop.f32.mrf.mxu2 }
 0x1b2   : > { %v2240_v14 = vmax.f32 %v2192_v50, 0.0  ;;  %v1673_v49 = vadd.f32 %v1672_v3, %v6195_v44  ;;  %v1176_v40 = vpop.f32.mrf.mxu0  ;;  %v4798_v50 = vld [vmem:[%s6057_s13 + $0x1b8] sm:$0xf0] }
 0x1b3   : > { %v1177_v0 = vadd.f32 %v1176_v40, %v6186_v30  ;;  %v4801_v26 = vor.u32 %v5707_v6, %v4798_v50  ;;  %v4806_v6 = vld [vmem:[%s6057_s13 + $0x1c8] sm:$0xf0] }
 0x1b4   : > { %v2288_v12 = vpack.c.bf16 %v2240_v14, %v2240_v14  ;;  %v6535_v21 = vadd.f32 %v6469_v60, %v1673_v49 }
 0x1b5   : > { %v6538_v41 = vadd.f32 %v6471_v5, %v1177_v0 }
 0x1b6   : > { %v2397_v18 = vunpack.c.l.b16 %v2288_v12  ;;  %v2113_v39 = vmax.f32 %v6523_v47, %v6535_v21  ;;  %v1933_v45 = vpop.f32.mrf.mxu3 }
 0x1b8   : > { %v6544_v34 = vpack.c.b16 %v2397_v18, %v2396_v13  ;;  %v4788_v13 = vld [vmem:[%s6057_s13 + $0x1a0] sm:$0xf]  ;;  %v5706_v18 = vld [vmem:[%s6057_s13 + $0x1a4] sm:$0xf0] }
 0x1b9   : > { %v1674_v33 = vpop.f32.mrf.mxu2  ;;  %v4789_v57 = vor.u32 %v5706_v18, %v4788_v13 }
 0x1ba   : > { %v1675_v60 = vadd.f32 %v1674_v33, %v6195_v44  ;;  %v1179_v7 = vpop.f32.mrf.mxu0 }
 0x1bb   : > { %v1180_v5 = vadd.f32 %v1179_v7, %v6186_v30 }
 0x1bc   : > { %v6549_v22 = vadd.f32 %v6489_v35, %v1675_v60  ;;  %v1438_v47 = vpop.f32.mrf.mxu1 }
 0x1bd   : > { %v6552_v37 = vadd.f32 %v6493_v8, %v1180_v5  ;;  %1218 = vmatmul.bf16.gmra.mxu0 %v4781_v51 }
 0x1be   : > { %v2114_v3 = vmax.f32 %v6538_v41, %v6549_v22  ;;  %1716 = vmatmul.bf16.gmra.mxu2 %v4781_v51  ;;  %v5709_v22 = vld [vmem:[%s6057_s13 + $0x1c4] sm:$0xf] }
 0x1bf   : > { %5069 = vmatmul.msk.bf16.gmra.mxu1 %vm940_vm0, %v4801_v26  ;;  %5117 = vmatmul.msk.bf16.gmra.mxu3 %vm940_vm0, %v4801_v26  ;;  %v4809_v26 = vor.u32 %v5709_v22, %v4806_v6 }
 0x1c1   : > { %v1677_v35 = vpop.f32.mrf.mxu2 }
 0x1c2   : > { %v1678_v14 = vadd.f32 %v1677_v35, %v6195_v44  ;;  %v1181_v8 = vpop.f32.mrf.mxu0  ;;  %v6562_v40 = vpop.f32.mrf.mxu3 }
 0x1c3   : > { %v1182_v49 = vadd.f32 %v1181_v8, %v6186_v30 }
 0x1c4   : > { %v6565_v0 = vadd.f32 %v6504_v61, %v1678_v14  ;;  %v1440_v21 = vpop.f32.mrf.mxu1 }
 0x1c5   : > { %v6568_v12 = vadd.f32 %v6508_v32, %v1182_v49 }
 0x1c6   : > { %v2115_v41 = vmax.f32 %v6552_v37, %v6565_v0 }
 0x1c9   : > { %v1679_v16 = vpop.f32.mrf.mxu2 }
 0x1ca   : > { %v1680_v33 = vadd.f32 %v1679_v16, %v6195_v44  ;;  %v1184_v51 = vpop.f32.mrf.mxu0  ;;  %v6576_v61 = vpop.f32.mrf.mxu3 }
 0x1cb   : > { %v1185_v60 = vadd.f32 %v1184_v51, %v6186_v30 }
 0x1cc   : > { %v6579_v7 = vadd.f32 %v6519_v55, %v1680_v33  ;;  %v6581_v5 = vpop.f32.mrf.mxu1  ;;  %v5708_v33 = vld [vmem:[%s6057_s13 + $0x1b4] sm:$0xf0] }
 0x1cd   : > { %v1434_v32 = vadd.f32 %v1433_v27, %v1185_v60  ;;  %1223 = vmatmul.bf16.gmra.mxu0 %v4789_v57 }
 0x1ce   : > { %1721 = vmatmul.bf16.gmra.mxu2 %v4789_v57  ;;  %v4796_v57 = vld [vmem:[%s6057_s13 + $0x1b0] sm:$0xf] }
 0x1cf   : > { %5070 = vmatmul.msk.bf16.gmra.mxu1 %vm940_vm0, %v4809_v26  ;;  %5118 = vmatmul.msk.bf16.gmra.mxu3 %vm940_vm0, %v4809_v26  ;;  %v4797_v22 = vor.u32 %v5708_v33, %v4796_v57 }
 0x1d1   : > { %v1682_v35 = vpop.f32.mrf.mxu2 }
 0x1d2   : > { %v1683_v55 = vadd.f32 %v1682_v35, %v6195_v44  ;;  %v1186_v27 = vpop.f32.mrf.mxu0  ;;  %v6591_v8 = vpop.f32.mrf.mxu3 }
 0x1d3   : > { %v1187_v14 = vadd.f32 %v1186_v27, %v6186_v30 }
 0x1d4   : > { %v1932_v49 = vadd.f32 %v1931_v59, %v1683_v55  ;;  %v6593_v18 = vpop.f32.mrf.mxu1  ;;  %v5711_v55 = vld [vmem:[%s6057_s13 + $0x1d4] sm:$0xf] }
 0x1d5   : > { %v1436_v13 = vadd.f32 %v1435_v54, %v1187_v14  ;;  %v4814_v14 = vld [vmem:[%s6057_s13 + $0x1d8] sm:$0xf0] }
 0x1d6   : > { %v2117_v16 = vmax.f32 %v1434_v32, %v1932_v49 }
 0x1d8   : > { %v2193_v51 = vmax.f32 %v2113_v39, %v2117_v16  ;;  %v4817_v39 = vor.u32 %v5711_v55, %v4814_v14 }
 0x1d9   : > { %v1684_v60 = vpop.f32.mrf.mxu2 }
 0x1da   : > { %v1685_v6 = vadd.f32 %v1684_v60, %v6195_v44  ;;  %v1189_v26 = vpop.f32.mrf.mxu0  ;;  %v6599_v27 = vpop.f32.mrf.mxu3  ;;  %v2241_v32 = vmax.f32 %v2193_v51, 0.0 }
 0x1db   : > { %v1190_v35 = vadd.f32 %v1189_v26, %v6186_v30 }
 0x1dc   : > { %v1934_v50 = vadd.f32 %v1933_v45, %v1685_v6  ;;  %v6601_v54 = vpop.f32.mrf.mxu1  ;;  %v2289_v33 = vpack.c.bf16 %v2241_v32, %v2241_v32  ;;  %v5795_v32 = vld [vmem:[%s8623_s3 + $0xd4] sm:$0xf] }
 0x1dd   : > { %v1439_v59 = vadd.f32 %v1438_v47, %v1190_v35  ;;  %1228 = vmatmul.bf16.gmra.mxu0 %v4797_v22 }
 0x1de   : > { %v2118_v49 = vmax.f32 %v1436_v13, %v1934_v50  ;;  %1726 = vmatmul.bf16.gmra.mxu2 %v4797_v22  ;;  %v2398_v35 = vunpack.c.l.b16 %v2289_v33 }
 0x1df   : > { %5071 = vmatmul.msk.bf16.gmra.mxu1 %vm940_vm0, %v4817_v39  ;;  %5119 = vmatmul.msk.bf16.gmra.mxu3 %vm940_vm0, %v4817_v39  ;;  %v5198_v39 = vld [vmem:[%s8623_s3 + $0xd8] sm:$0xf0] }
 0x1e0   : > { %v2194_v16 = vmax.f32 %v2114_v3, %v2118_v49  ;;  %v4804_v3 = vld [vmem:[%s6057_s13 + $0x1c0] sm:$0xf]  ;;  %v5710_v49 = vld [vmem:[%s6057_s13 + $0x1c4] sm:$0xf0] }
 0x1e1   : > { %v1687_v57 = vpop.f32.mrf.mxu2 }
 0x1e2   : > { %v2242_v45 = vmax.f32 %v2194_v16, 0.0  ;;  %v1688_v47 = vadd.f32 %v1687_v57, %v6195_v44  ;;  %v1191_v60 = vpop.f32.mrf.mxu0  ;;  %v6609_v26 = vpop.f32.mrf.mxu3  ;;  %v5201_v16 = vor.u32 %v5795_v32, %v5198_v39  ;;  %v8639_v32 = vmax.f32 %v6568_v12, %v6579_v7 }
 0x1e3   : > { %v1192_v6 = vadd.f32 %v1191_v60, %v6186_v30  ;;  %v5796_v60 = vld [vmem:[%s8623_s3 + $0xd4] sm:$0xf0] }
 0x1e4   : > { %v2290_v50 = vpack.c.bf16 %v2242_v45, %v2242_v45  ;;  %v1937_v13 = vadd.f32 %v6562_v40, %v1688_v47  ;;  %v6613_v22 = vpop.f32.mrf.mxu1  ;;  %2621 = vmatpush.bf16.msrb.mxu3 %v5201_v16  ;;  %v5196_v47 = vld [vmem:[%s8623_s3 + $0xd0] sm:$0xf] }
 0x1e5   : > { %v1441_v51 = vadd.f32 %v1440_v21, %v1192_v6  ;;  %v5197_v37 = vor.u32 %v5796_v60, %v5196_v47 }
 0x1e6   : > { %v2399_v55 = vunpack.c.l.b16 %v2290_v50  ;;  %v2119_v14 = vmax.f32 %v1439_v59, %v1937_v13  ;;  %v4805_v59 = vor.u32 %v5710_v49, %v4804_v3  ;;  %v5713_v3 = vld [vmem:[%s6057_s13 + $0x1e4] sm:$0xf] }
 0x1e7   : > { %2532 = vmatpush.bf16.msrb.mxu1 %v5197_v37  ;;  %v4812_v37 = vld [vmem:[%s6057_s13 + $0x1d0] sm:$0xf] }
 0x1e8   : > { %v6622_v57 = vpack.c.b16 %v2399_v55, %v2398_v35  ;;  %v2195_v40 = vmax.f32 %v2115_v41, %v2119_v14  ;;  %v4822_v35 = vld [vmem:[%s6057_s13 + $0x1e8] sm:$0xf0] }
 0x1e9   : > { %v1689_v21 = vpop.f32.mrf.mxu2  ;;  %v4825_v49 = vor.u32 %v5713_v3, %v4822_v35 }
 0x1ea   : > { %8638 = vst [vmem:[#allocation2_spill] sm:$0xff] %v6622_v57  ;;  %v1690_v33 = vadd.f32 %v1689_v21, %v6195_v44  ;;  %v1194_v45 = vpop.f32.mrf.mxu0  ;;  %v6635_v0 = vpop.f32.mrf.mxu3  ;;  %v2243_v55 = vmax.f32 %v2195_v40, 0.0  ;;  %v4878_v57 = vld [vmem:[%s6057_s13 + $0x258] sm:$0xf0] }
 0x1eb   : > { %v1195_v6 = vadd.f32 %v1194_v45, %v6186_v30 }
 0x1ec   : > { %v1939_v41 = vadd.f32 %v6576_v61, %v1690_v33  ;;  %v1453_v13 = vpop.f32.mrf.mxu1 }
 0x1ed   : > { %v6639_v50 = vadd.f32 %v6581_v5, %v1195_v6  ;;  %1233 = vmatmul.bf16.gmra.mxu0 %v4805_v59  ;;  %v2291_v5 = vpack.c.bf16 %v2243_v55, %v2243_v55 }
 0x1ee   : > { %v2120_v14 = vmax.f32 %v1441_v51, %v1939_v41  ;;  %1731 = vmatmul.bf16.gmra.mxu2 %v4805_v59  ;;  %v5712_v41 = vld [vmem:[%s6057_s13 + $0x1d4] sm:$0xf0] }
 0x1ef   : > { %5072 = vmatmul.msk.bf16.gmra.mxu1 %vm940_vm0, %v4825_v49  ;;  %5120 = vmatmul.msk.bf16.gmra.mxu3 %vm940_vm0, %v4825_v49  ;;  %v2400_v47 = vunpack.c.l.b16 %v2291_v5  ;;  %v4813_v55 = vor.u32 %v5712_v41, %v4812_v37  ;;  %v4830_v5 = vld [vmem:[%s6057_s13 + $0x1f8] sm:$0xf0]  ;;  %v4820_v37 = vld [vmem:[%s6057_s13 + $0x1e0] sm:$0xf]  ;;  %v5714_v41 = vld [vmem:[%s6057_s13 + $0x1e4] sm:$0xf0] }
 0x1f0   : > { %v2196_v39 = vmax.f32 %v8639_v32, %v2120_v14 }
 0x1f1   : > { %v1692_v61 = vpop.f32.mrf.mxu2 }
 0x1f2   : > { %v2244_v16 = vmax.f32 %v2196_v39, 0.0  ;;  %v1693_v21 = vadd.f32 %v1692_v61, %v6195_v44  ;;  %v1196_v33 = vpop.f32.mrf.mxu0  ;;  %v1951_v40 = vpop.f32.mrf.mxu3  ;;  %v5715_v61 = vld [vmem:[%s6057_s13 + $0x1f4] sm:$0xf] }
 0x1f3   : > { %v1197_v51 = vadd.f32 %v1196_v33, %v6186_v30 }
 0x1f4   : > { %v2292_v59 = vpack.c.bf16 %v2244_v16, %v2244_v16  ;;  %v6651_v45 = vadd.f32 %v6591_v8, %v1693_v21  ;;  %v1455_v7 = vpop.f32.mrf.mxu1  ;;  %v4833_v21 = vor.u32 %v5715_v61, %v4830_v5  ;;  %v5717_v5 = vld [vmem:[%s6057_s13 + $0x204] sm:$0xf] }
 0x1f5   : > { %v6654_v12 = vadd.f32 %v6593_v18, %v1197_v51 }
 0x1f6   : > { %v2401_v60 = vunpack.c.l.b16 %v2292_v59  ;;  %v2121_v6 = vmax.f32 %v6639_v50, %v6651_v45 }
 0x1f8   : > { %v6660_v3 = vpack.c.b16 %v2401_v60, %v2400_v47 }
 0x1f9   : > { %v1694_v35 = vpop.f32.mrf.mxu2 }
 0x1fa   : > { %8640 = vst [vmem:[#allocation3_spill] sm:$0xff] %v6660_v3  ;;  %v1695_v8 = vadd.f32 %v1694_v35, %v6195_v44  ;;  %v1199_v14 = vpop.f32.mrf.mxu0  ;;  %v1953_v49 = vpop.f32.mrf.mxu3 }
 0x1fb   : > { %v1200_v18 = vadd.f32 %v1199_v14, %v6186_v30 }
 0x1fc   : > { %v6665_v32 = vadd.f32 %v6599_v27, %v1695_v8  ;;  %v1458_v50 = vpop.f32.mrf.mxu1 }
 0x1fd   : > { %v6668_v39 = vadd.f32 %v6601_v54, %v1200_v18  ;;  %1238 = vmatmul.bf16.gmra.mxu0 %v4813_v55 }
 0x1fe   : > { %v2122_v16 = vmax.f32 %v6654_v12, %v6665_v32  ;;  %1736 = vmatmul.bf16.gmra.mxu2 %v4813_v55  ;;  %v4821_v55 = vor.u32 %v5714_v41, %v4820_v37 }
 0x1ff   : > { %5073 = vmatmul.msk.bf16.gmra.mxu1 %vm940_vm0, %v4833_v21  ;;  %5121 = vmatmul.msk.bf16.gmra.mxu3 %vm940_vm0, %v4833_v21  ;;  %v4838_v21 = vld [vmem:[%s6057_s13 + $0x208] sm:$0xf0] }
 0x201   : > { %v1697_v27 = vpop.f32.mrf.mxu2 }
 0x202   : > { %v1698_v33 = vadd.f32 %v1697_v27, %v6195_v44  ;;  %v1201_v54 = vpop.f32.mrf.mxu0  ;;  %v6678_v59 = vpop.f32.mrf.mxu3 }
 0x203   : > { %v1202_v51 = vadd.f32 %v1201_v54, %v6186_v30 }
 0x204   : > { %v6681_v45 = vadd.f32 %v6609_v26, %v1698_v33  ;;  %v1460_v47 = vpop.f32.mrf.mxu1  ;;  %v4841_v33 = vor.u32 %v5717_v5, %v4838_v21 }
 0x205   : > { %v6684_v12 = vadd.f32 %v6613_v22, %v1202_v51 }
 0x209   : > { %v1699_v35 = vpop.f32.mrf.mxu2 }
 0x20a   : > { %v1700_v8 = vadd.f32 %v1699_v35, %v6195_v44  ;;  %v1204_v14 = vpop.f32.mrf.mxu0  ;;  %v6692_v26 = vpop.f32.mrf.mxu3 }
 0x20b   : > { %v1205_v18 = vadd.f32 %v1204_v14, %v6186_v30  ;;  %v4828_v14 = vld [vmem:[%s6057_s13 + $0x1f0] sm:$0xf] }
 0x20c   : > { %v6695_v32 = vadd.f32 %v6635_v0, %v1700_v8  ;;  %v6697_v61 = vpop.f32.mrf.mxu1 }
 0x20d   : > { %v1454_v22 = vadd.f32 %v1453_v13, %v1205_v18  ;;  %1243 = vmatmul.bf16.gmra.mxu0 %v4821_v55  ;;  %v5716_v18 = vld [vmem:[%s6057_s13 + $0x1f4] sm:$0xf0] }
 0x20e   : > { %1741 = vmatmul.bf16.gmra.mxu2 %v4821_v55 }
 0x20f   : > { %5074 = vmatmul.msk.bf16.gmra.mxu1 %vm940_vm0, %v4841_v33  ;;  %5122 = vmatmul.msk.bf16.gmra.mxu3 %vm940_vm0, %v4841_v33  ;;  %v4829_v33 = vor.u32 %v5716_v18, %v4828_v14 }
 0x211   : > { %v1702_v54 = vpop.f32.mrf.mxu2 }
 0x212   : > { %v1703_v0 = vadd.f32 %v1702_v54, %v6195_v44  ;;  %v1206_v13 = vpop.f32.mrf.mxu0  ;;  %v6707_v37 = vpop.f32.mrf.mxu3 }
 0x213   : > { %v1207_v51 = vadd.f32 %v1206_v13, %v6186_v30 }
 0x214   : > { %v1952_v41 = vadd.f32 %v1951_v40, %v1703_v0  ;;  %v6709_v8 = vpop.f32.mrf.mxu1  ;;  %v5719_v0 = vld [vmem:[%s6057_s13 + $0x214] sm:$0xf] }
 0x215   : > { %v1456_v35 = vadd.f32 %v1455_v7, %v1207_v51  ;;  %v4846_v51 = vld [vmem:[%s6057_s13 + $0x218] sm:$0xf0] }
 0x216   : > { %v2125_v55 = vmax.f32 %v1454_v22, %v1952_v41 }
 0x218   : > { %v2197_v5 = vmax.f32 %v2121_v6, %v2125_v55  ;;  %v4849_v6 = vor.u32 %v5719_v0, %v4846_v51  ;;  %v4836_v51 = vld [vmem:[%s6057_s13 + $0x200] sm:$0xf] }
 0x219   : > { %v1704_v21 = vpop.f32.mrf.mxu2 }
 0x21a   : > { %v1705_v27 = vadd.f32 %v1704_v21, %v6195_v44  ;;  %v1209_v54 = vpop.f32.mrf.mxu0  ;;  %v6715_v13 = vpop.f32.mrf.mxu3  ;;  %v2245_v22 = vmax.f32 %v2197_v5, 0.0 }
 0x21b   : > { %v1210_v60 = vadd.f32 %v1209_v54, %v6186_v30 }
 0x21c   : > { %v1954_v3 = vadd.f32 %v1953_v49, %v1705_v27  ;;  %v6717_v7 = vpop.f32.mrf.mxu1  ;;  %v2293_v18 = vpack.c.bf16 %v2245_v22, %v2245_v22  ;;  %v5718_v22 = vld [vmem:[%s6057_s13 + $0x204] sm:$0xf0] }
 0x21d   : > { %v1459_v40 = vadd.f32 %v1458_v50, %v1210_v60  ;;  %1248 = vmatmul.bf16.gmra.mxu0 %v4829_v33 }
 0x21e   : > { %v2126_v41 = vmax.f32 %v1456_v35, %v1954_v3  ;;  %1746 = vmatmul.bf16.gmra.mxu2 %v4829_v33  ;;  %v2402_v33 = vunpack.c.l.b16 %v2293_v18 }
 0x21f   : > { %5075 = vmatmul.msk.bf16.gmra.mxu1 %vm940_vm0, %v4849_v6  ;;  %5123 = vmatmul.msk.bf16.gmra.mxu3 %vm940_vm0, %v4849_v6  ;;  %v8642_v6 = vmax.f32 %v6668_v39, %v6681_v45  ;;  %v4854_v39 = vld [vmem:[%s6057_s13 + $0x228] sm:$0xf0] }
 0x220   : > { %v2198_v55 = vmax.f32 %v2122_v16, %v2126_v41 }
 0x221   : > { %v1707_v14 = vpop.f32.mrf.mxu2 }
 0x222   : > { %v2246_v49 = vmax.f32 %v2198_v55, 0.0  ;;  %v1708_v50 = vadd.f32 %v1707_v14, %v6195_v44  ;;  %v1211_v60 = vpop.f32.mrf.mxu0  ;;  %v6725_v21 = vpop.f32.mrf.mxu3 }
 0x223   : > { %v1212_v27 = vadd.f32 %v1211_v60, %v6186_v30 }
 0x224   : > { %v2294_v3 = vpack.c.bf16 %v2246_v49, %v2246_v49  ;;  %v1957_v35 = vadd.f32 %v6678_v59, %v1708_v50  ;;  %v6728_v5 = vpop.f32.mrf.mxu1  ;;  %v4837_v49 = vor.u32 %v5718_v22, %v4836_v51 }
 0x225   : > { %v1461_v16 = vadd.f32 %v1460_v47, %v1212_v27 }
 0x226   : > { %v2403_v54 = vunpack.c.l.b16 %v2294_v3  ;;  %v2127_v0 = vmax.f32 %v1459_v40, %v1957_v35  ;;  %v5721_v3 = vld [vmem:[%s6057_s13 + $0x224] sm:$0xf] }
 0x228   : > { %v6732_v41 = vpack.c.b16 %v2403_v54, %v2402_v33  ;;  %v2199_v55 = vmax.f32 %v8642_v6, %v2127_v0  ;;  %v4857_v33 = vor.u32 %v5721_v3, %v4854_v39  ;;  %v8643_v54 = vmax.f32 %v6684_v12, %v6695_v32  ;;  %v5720_v3 = vld [vmem:[%s6057_s13 + $0x214] sm:$0xf0] }
 0x229   : > { %v1709_v14 = vpop.f32.mrf.mxu2 }
 0x22a   : > { %8641 = vst [vmem:[#allocation4_spill] sm:$0xff] %v6732_v41  ;;  %v1710_v59 = vadd.f32 %v1709_v14, %v6195_v44  ;;  %v1214_v47 = vpop.f32.mrf.mxu0  ;;  %v6739_v18 = vpop.f32.mrf.mxu3  ;;  %v2247_v45 = vmax.f32 %v2199_v55, 0.0 }
 0x22b   : > { %v1215_v50 = vadd.f32 %v1214_v47, %v6186_v30 }
 0x22c   : > { %v1959_v40 = vadd.f32 %v6692_v26, %v1710_v59  ;;  %v6745_v27 = vpop.f32.mrf.mxu1 }
 0x22d   : > { %v6743_v60 = vadd.f32 %v6697_v61, %v1215_v50  ;;  %1253 = vmatmul.bf16.gmra.mxu0 %v4837_v49  ;;  %v2295_v61 = vpack.c.bf16 %v2247_v45, %v2247_v45  ;;  %v5725_v50 = vld [vmem:[%s6057_s13 + $0x244] sm:$0xf] }
 0x22e   : > { %v2128_v35 = vmax.f32 %v1461_v16, %v1959_v40  ;;  %1751 = vmatmul.bf16.gmra.mxu2 %v4837_v49  ;;  %v4844_v40 = vld [vmem:[%s6057_s13 + $0x210] sm:$0xf] }
 0x22f   : > { %5076 = vmatmul.msk.bf16.gmra.mxu1 %vm940_vm0, %v4857_v33  ;;  %5124 = vmatmul.msk.bf16.gmra.mxu3 %vm940_vm0, %v4857_v33  ;;  %v2404_v59 = vunpack.c.l.b16 %v2295_v61 }
 0x230   : > { %v2200_v0 = vmax.f32 %v8643_v54, %v2128_v35  ;;  %v4845_v35 = vor.u32 %v5720_v3, %v4844_v40 }
 0x231   : > { %v1712_v26 = vpop.f32.mrf.mxu2 }
 0x232   : > { %v2248_v51 = vmax.f32 %v2200_v0, 0.0  ;;  %v1713_v22 = vadd.f32 %v1712_v26, %v6195_v44  ;;  %v1216_v6 = vpop.f32.mrf.mxu0  ;;  %v6756_v55 = vpop.f32.mrf.mxu3 }
 0x233   : > { %v1217_v16 = vadd.f32 %v1216_v6, %v6186_v30 }
 0x234   : > { %v2296_v14 = vpack.c.bf16 %v2248_v51, %v2248_v51  ;;  %v6759_v12 = vadd.f32 %v6707_v37, %v1713_v22  ;;  %v6764_v49 = vpop.f32.mrf.mxu1  ;;  %v5723_v51 = vld [vmem:[%s6057_s13 + $0x234] sm:$0xf]  ;;  %v4862_v22 = vld [vmem:[%s6057_s13 + $0x238] sm:$0xf0] }
 0x235   : > { %v6762_v32 = vadd.f32 %v6709_v8, %v1217_v16  ;;  %v5793_v16 = vld [vmem:[%s8623_s3 + $0xc4] sm:$0xf] }
 0x236   : > { %v2405_v47 = vunpack.c.l.b16 %v2296_v14 }
 0x238   : > { %v6770_v39 = vpack.c.b16 %v2405_v47, %v2404_v59 }
 0x239   : > { %v1714_v45 = vpop.f32.mrf.mxu2 }
 0x23a   : > { %8644 = vst [vmem:[#allocation5_spill] sm:$0xff] %v6770_v39  ;;  %v1715_v37 = vadd.f32 %v1714_v45, %v6195_v44  ;;  %v1219_v33 = vpop.f32.mrf.mxu0  ;;  %v6774_v54 = vpop.f32.mrf.mxu3 }
 0x23b   : > { %v1220_v8 = vadd.f32 %v1219_v33, %v6186_v30 }
 0x23c   : > { %v6777_v0 = vadd.f32 %v6715_v13, %v1715_v37  ;;  %v6782_v61 = vpop.f32.mrf.mxu1  ;;  %v5190_v13 = vld [vmem:[%s8623_s3 + $0xc8] sm:$0xf0] }
 0x23d   : > { %v6780_v26 = vadd.f32 %v6717_v7, %v1220_v8  ;;  %1258 = vmatmul.bf16.gmra.mxu0 %v4845_v35  ;;  %v4865_v7 = vor.u32 %v5723_v51, %v4862_v22  ;;  %v5193_v14 = vor.u32 %v5793_v16, %v5190_v13  ;;  %v4852_v51 = vld [vmem:[%s6057_s13 + $0x220] sm:$0xf]  ;;  %v5722_v22 = vld [vmem:[%s6057_s13 + $0x224] sm:$0xf0] }
 0x23e   : > { %1756 = vmatmul.bf16.gmra.mxu2 %v4845_v35  ;;  %v5188_v16 = vld [vmem:[%s8623_s3 + $0xc0] sm:$0xf] }
 0x23f   : > { %5077 = vmatmul.msk.bf16.gmra.mxu1 %vm940_vm0, %v4865_v7  ;;  %5125 = vmatmul.msk.bf16.gmra.mxu3 %vm940_vm0, %v4865_v7 }
 0x240   : > { %2622 = vmatpush.bf16.msrb.mxu3 %v5193_v14 }
 0x241   : > { %v1717_v59 = vpop.f32.mrf.mxu2 }
 0x242   : > { %v1718_v47 = vadd.f32 %v1717_v59, %v6195_v44  ;;  %v1221_v40 = vpop.f32.mrf.mxu0  ;;  %v6798_v45 = vpop.f32.mrf.mxu3 }
 0x243   : > { %v1222_v3 = vadd.f32 %v1221_v40, %v6186_v30 }
 0x244   : > { %v6801_v35 = vadd.f32 %v6725_v21, %v1718_v47  ;;  %v6806_v33 = vpop.f32.mrf.mxu1  ;;  %v5794_v21 = vld [vmem:[%s8623_s3 + $0xc4] sm:$0xf0] }
 0x245   : > { %v6804_v37 = vadd.f32 %v6728_v5, %v1222_v3  ;;  %v4853_v5 = vor.u32 %v5722_v22, %v4852_v51  ;;  %v5189_v7 = vor.u32 %v5794_v21, %v5188_v16  ;;  %v4870_v51 = vld [vmem:[%s6057_s13 + $0x248] sm:$0xf0] }
 0x246   : > { %v4873_v16 = vor.u32 %v5725_v50, %v4870_v51  ;;  %v5724_v51 = vld [vmem:[%s6057_s13 + $0x234] sm:$0xf0] }
 0x247   : > { %2533 = vmatpush.bf16.msrb.mxu1 %v5189_v7 }
 0x249   : > { %v1719_v13 = vpop.f32.mrf.mxu2 }
 0x24a   : > { %v1720_v14 = vadd.f32 %v1719_v13, %v6195_v44  ;;  %v1224_v59 = vpop.f32.mrf.mxu0  ;;  %v6820_v40 = vpop.f32.mrf.mxu3 }
 0x24b   : > { %v1225_v47 = vadd.f32 %v1224_v59, %v6186_v30 }
 0x24c   : > { %v6823_v3 = vadd.f32 %v6739_v18, %v1720_v14  ;;  %v6826_v6 = vpop.f32.mrf.mxu1 }
 0x24d   : > { %v1474_v8 = vadd.f32 %v6745_v27, %v1225_v47  ;;  %1263 = vmatmul.bf16.gmra.mxu0 %v4853_v5 }
 0x24e   : > { %1761 = vmatmul.bf16.gmra.mxu2 %v4853_v5  ;;  %v4860_v5 = vld [vmem:[%s6057_s13 + $0x230] sm:$0xf] }
 0x24f   : > { %5078 = vmatmul.msk.bf16.gmra.mxu1 %vm940_vm0, %v4873_v16  ;;  %5126 = vmatmul.msk.bf16.gmra.mxu3 %vm940_vm0, %v4873_v16  ;;  %v8645_v16 = vmax.f32 %v6743_v60, %v6759_v12  ;;  %v4861_v39 = vor.u32 %v5724_v51, %v4860_v5 }
 0x251   : > { %v1722_v18 = vpop.f32.mrf.mxu2 }
 0x252   : > { %v1723_v21 = vadd.f32 %v1722_v18, %v6195_v44  ;;  %v1226_v27 = vpop.f32.mrf.mxu0  ;;  %v6836_v7 = vpop.f32.mrf.mxu3 }
 0x253   : > { %v1227_v13 = vadd.f32 %v1226_v27, %v6186_v30 }
 0x254   : > { %v1972_v14 = vadd.f32 %v6756_v55, %v1723_v21  ;;  %v6840_v47 = vpop.f32.mrf.mxu1 }
 0x255   : > { %v1476_v59 = vadd.f32 %v6764_v49, %v1227_v13 }
 0x256   : > { %v2133_v50 = vmax.f32 %v1474_v8, %v1972_v14  ;;  %v5727_v14 = vld [vmem:[%s6057_s13 + $0x254] sm:$0xf] }
 0x258   : > { %v2201_v18 = vmax.f32 %v8645_v16, %v2133_v50  ;;  %v4881_v50 = vor.u32 %v5727_v14, %v4878_v57  ;;  %v4868_v14 = vld [vmem:[%s6057_s13 + $0x240] sm:$0xf] }
 0x259   : > { %v1724_v22 = vpop.f32.mrf.mxu2 }
 0x25a   : > { %v1725_v27 = vadd.f32 %v1724_v22, %v6195_v44  ;;  %v1229_v41 = vpop.f32.mrf.mxu0  ;;  %v6849_v21 = vpop.f32.mrf.mxu3  ;;  %v2249_v60 = vmax.f32 %v2201_v18, 0.0  ;;  %v8646_v22 = vmax.f32 %v6762_v32, %v6777_v0 }
 0x25b   : > { %v1230_v55 = vadd.f32 %v1229_v41, %v6186_v30 }
 0x25c   : > { %v1974_v49 = vadd.f32 %v6774_v54, %v1725_v27  ;;  %v6853_v8 = vpop.f32.mrf.mxu1  ;;  %v2297_v54 = vpack.c.bf16 %v2249_v60, %v2249_v60  ;;  %v5726_v60 = vld [vmem:[%s6057_s13 + $0x244] sm:$0xf0] }
 0x25d   : > { %v1479_v13 = vadd.f32 %v6782_v61, %v1230_v55  ;;  %1268 = vmatmul.bf16.gmra.mxu0 %v4861_v39 }
 0x25e   : > { %v2134_v12 = vmax.f32 %v1476_v59, %v1974_v49  ;;  %1766 = vmatmul.bf16.gmra.mxu2 %v4861_v39  ;;  %v2406_v27 = vunpack.c.l.b16 %v2297_v54 }
 0x25f   : > { %5079 = vmatmul.msk.bf16.gmra.mxu1 %vm940_vm0, %v4881_v50  ;;  %5127 = vmatmul.msk.bf16.gmra.mxu3 %vm940_vm0, %v4881_v50  ;;  %v8648_v50 = vmax.f32 %v6780_v26, %v6801_v35 }
 0x260   : > { %v2202_v5 = vmax.f32 %v8646_v22, %v2134_v12 }
 0x261   : > { %v1727_v41 = vpop.f32.mrf.mxu2 }
 0x262   : > { %v2250_v61 = vmax.f32 %v2202_v5, 0.0  ;;  %v1728_v51 = vadd.f32 %v1727_v41, %v6195_v44  ;;  %v1231_v16 = vpop.f32.mrf.mxu0  ;;  %v6864_v39 = vpop.f32.mrf.mxu3  ;;  %v4869_v41 = vor.u32 %v5726_v60, %v4868_v14 }
 0x263   : > { %v1232_v59 = vadd.f32 %v1231_v16, %v6186_v30 }
 0x264   : > { %v2298_v57 = vpack.c.bf16 %v2250_v61, %v2250_v61  ;;  %v1977_v32 = vadd.f32 %v6798_v45, %v1728_v51  ;;  %v6868_v18 = vpop.f32.mrf.mxu1 }
 0x265   : > { %v1481_v0 = vadd.f32 %v6806_v33, %v1232_v59  ;;  %v5729_v59 = vld [vmem:[%s6057_s13 + $0x264] sm:$0xf] }
 0x266   : > { %v2407_v55 = vunpack.c.l.b16 %v2298_v57  ;;  %v2135_v49 = vmax.f32 %v1479_v13, %v1977_v32  ;;  %v4886_v57 = vld [vmem:[%s6057_s13 + $0x268] sm:$0xf0] }
 0x267   : > { %v4889_v32 = vor.u32 %v5729_v59, %v4886_v57 }
 0x268   : > { %v6872_v12 = vpack.c.b16 %v2407_v55, %v2406_v27  ;;  %v2203_v22 = vmax.f32 %v8648_v50, %v2135_v49  ;;  %v8649_v27 = vmax.f32 %v6804_v37, %v6823_v3 }
 0x269   : > { %v1729_v5 = vpop.f32.mrf.mxu2 }
 0x26a   : > { %8647 = vst [vmem:[#allocation6_spill] sm:$0xff] %v6872_v12  ;;  %v1730_v45 = vadd.f32 %v1729_v5, %v6195_v44  ;;  %v1234_v33 = vpop.f32.mrf.mxu0  ;;  %v6879_v54 = vpop.f32.mrf.mxu3  ;;  %v2251_v26 = vmax.f32 %v2203_v22, 0.0 }
 0x26b   : > { %v1235_v61 = vadd.f32 %v1234_v33, %v6186_v30 }
 0x26c   : > { %v1979_v13 = vadd.f32 %v6820_v40, %v1730_v45  ;;  %v1493_v16 = vpop.f32.mrf.mxu1  ;;  %v2299_v40 = vpack.c.bf16 %v2251_v26, %v2251_v26 }
 0x26d   : > { %v6883_v51 = vadd.f32 %v6826_v6, %v1235_v61  ;;  %1273 = vmatmul.bf16.gmra.mxu0 %v4869_v41  ;;  %v4876_v61 = vld [vmem:[%s6057_s13 + $0x250] sm:$0xf] }
 0x26e   : > { %v2136_v35 = vmax.f32 %v1481_v0, %v1979_v13  ;;  %1771 = vmatmul.bf16.gmra.mxu2 %v4869_v41  ;;  %v2408_v41 = vunpack.c.l.b16 %v2299_v40  ;;  %v5728_v13 = vld [vmem:[%s6057_s13 + $0x254] sm:$0xf0]  ;;  %v4894_v40 = vld [vmem:[%s6057_s13 + $0x278] sm:$0xf0] }
 0x26f   : > { %5080 = vmatmul.msk.bf16.gmra.mxu1 %vm940_vm0, %v4889_v32  ;;  %5128 = vmatmul.msk.bf16.gmra.mxu3 %vm940_vm0, %v4889_v32  ;;  %v4877_v26 = vor.u32 %v5728_v13, %v4876_v61  ;;  %v4884_v13 = vld [vmem:[%s6057_s13 + $0x260] sm:$0xf] }
 0x270   : > { %v2204_v55 = vmax.f32 %v8649_v27, %v2136_v35 }
 0x271   : > { %v1732_v6 = vpop.f32.mrf.mxu2 }
 0x272   : > { %v2252_v49 = vmax.f32 %v2204_v55, 0.0  ;;  %v1733_v14 = vadd.f32 %v1732_v6, %v6195_v44  ;;  %v1236_v60 = vpop.f32.mrf.mxu0  ;;  %v1991_v50 = vpop.f32.mrf.mxu3  ;;  %v5731_v6 = vld [vmem:[%s6057_s13 + $0x274] sm:$0xf] }
 0x273   : > { %v1237_v0 = vadd.f32 %v1236_v60, %v6186_v30 }
 0x274   : > { %v2300_v22 = vpack.c.bf16 %v2252_v49, %v2252_v49  ;;  %v6895_v5 = vadd.f32 %v6836_v7, %v1733_v14  ;;  %v1495_v3 = vpop.f32.mrf.mxu1  ;;  %v4897_v14 = vor.u32 %v5731_v6, %v4894_v40 }
 0x275   : > { %v6898_v37 = vadd.f32 %v6840_v47, %v1237_v0 }
 0x276   : > { %v2409_v45 = vunpack.c.l.b16 %v2300_v22  ;;  %v2137_v33 = vmax.f32 %v6883_v51, %v6895_v5 }
 0x278   : > { %v6904_v59 = vpack.c.b16 %v2409_v45, %v2408_v41 }
 0x279   : > { %v1734_v57 = vpop.f32.mrf.mxu2 }
 0x27a   : > { %8650 = vst [vmem:[#allocation7_spill] sm:$0xff] %v6904_v59  ;;  %v1735_v7 = vadd.f32 %v1734_v57, %v6195_v44  ;;  %v1239_v35 = vpop.f32.mrf.mxu0  ;;  %v6908_v32 = vpop.f32.mrf.mxu3  ;;  %v5730_v57 = vld [vmem:[%s6057_s13 + $0x264] sm:$0xf0] }
 0x27b   : > { %v1240_v47 = vadd.f32 %v1239_v35, %v6186_v30 }
 0x27c   : > { %v6911_v27 = vadd.f32 %v6849_v21, %v1735_v7  ;;  %v6916_v51 = vpop.f32.mrf.mxu1  ;;  %v4885_v7 = vor.u32 %v5730_v57, %v4884_v13 }
 0x27d   : > { %v6914_v55 = vadd.f32 %v6853_v8, %v1240_v47  ;;  %1278 = vmatmul.bf16.gmra.mxu0 %v4877_v26 }
 0x27e   : > { %1776 = vmatmul.bf16.gmra.mxu2 %v4877_v26 }
 0x27f   : > { %5081 = vmatmul.msk.bf16.gmra.mxu1 %vm940_vm0, %v4897_v14  ;;  %5129 = vmatmul.msk.bf16.gmra.mxu3 %vm940_vm0, %v4897_v14 }
 0x281   : > { %v1737_v21 = vpop.f32.mrf.mxu2 }
 0x282   : > { %v1738_v8 = vadd.f32 %v1737_v21, %v6195_v44  ;;  %v1241_v60 = vpop.f32.mrf.mxu0  ;;  %v6926_v22 = vpop.f32.mrf.mxu3  ;;  %v5733_v21 = vld [vmem:[%s6057_s13 + $0x284] sm:$0xf] }
 0x283   : > { %v1242_v0 = vadd.f32 %v1241_v60, %v6186_v30  ;;  %v4892_v60 = vld [vmem:[%s6057_s13 + $0x270] sm:$0xf] }
 0x284   : > { %v6929_v5 = vadd.f32 %v6864_v39, %v1738_v8  ;;  %v6934_v45 = vpop.f32.mrf.mxu1  ;;  %v4902_v8 = vld [vmem:[%s6057_s13 + $0x288] sm:$0xf0] }
 0x285   : > { %v6932_v41 = vadd.f32 %v6868_v18, %v1242_v0  ;;  %v4905_v0 = vor.u32 %v5733_v21, %v4902_v8  ;;  %v5791_v8 = vld [vmem:[%s8623_s3 + $0xb4] sm:$0xf] }
 0x289   : > { %v1739_v26 = vpop.f32.mrf.mxu2 }
 0x28a   : > { %v1740_v35 = vadd.f32 %v1739_v26, %v6195_v44  ;;  %v1244_v47 = vpop.f32.mrf.mxu0  ;;  %v6942_v6 = vpop.f32.mrf.mxu3 }
 0x28b   : > { %v1245_v39 = vadd.f32 %v1244_v47, %v6186_v30 }
 0x28c   : > { %v6945_v18 = vadd.f32 %v6879_v54, %v1740_v35  ;;  %v6947_v14 = vpop.f32.mrf.mxu1 }
 0x28d   : > { %v1494_v40 = vadd.f32 %v1493_v16, %v1245_v39  ;;  %1283 = vmatmul.bf16.gmra.mxu0 %v4885_v7 }
 0x28e   : > { %1781 = vmatmul.bf16.gmra.mxu2 %v4885_v7  ;;  %v5732_v7 = vld [vmem:[%s6057_s13 + $0x274] sm:$0xf0] }
 0x28f   : > { %5082 = vmatmul.msk.bf16.gmra.mxu1 %vm940_vm0, %v4905_v0  ;;  %5130 = vmatmul.msk.bf16.gmra.mxu3 %vm940_vm0, %v4905_v0  ;;  %v5182_v0 = vld [vmem:[%s8623_s3 + $0xb8] sm:$0xf0] }
 0x291   : > { %v1742_v13 = vpop.f32.mrf.mxu2 }
 0x292   : > { %v1743_v54 = vadd.f32 %v1742_v13, %v6195_v44  ;;  %v1246_v16 = vpop.f32.mrf.mxu0  ;;  %v6957_v26 = vpop.f32.mrf.mxu3  ;;  %v5180_v13 = vld [vmem:[%s8623_s3 + $0xb0] sm:$0xf] }
 0x293   : > { %v1247_v57 = vadd.f32 %v1246_v16, %v6186_v30 }
 0x294   : > { %v1992_v35 = vadd.f32 %v1991_v50, %v1743_v54  ;;  %v6959_v39 = vpop.f32.mrf.mxu1 }
 0x295   : > { %v1496_v47 = vadd.f32 %v1495_v3, %v1247_v57  ;;  %v4893_v3 = vor.u32 %v5732_v7, %v4892_v60  ;;  %v5735_v7 = vld [vmem:[%s6057_s13 + $0x294] sm:$0xf] }
 0x296   : > { %v2141_v61 = vmax.f32 %v1494_v40, %v1992_v35  ;;  %v5185_v40 = vor.u32 %v5791_v8, %v5182_v0  ;;  %v4910_v8 = vld [vmem:[%s6057_s13 + $0x298] sm:$0xf0] }
 0x298   : > { %v2205_v21 = vmax.f32 %v2137_v33, %v2141_v61  ;;  %v5792_v33 = vld [vmem:[%s8623_s3 + $0xb4] sm:$0xf0]  ;;  %2623 = vmatpush.bf16.msrb.mxu3 %v5185_v40 }
 0x299   : > { %v1744_v50 = vpop.f32.mrf.mxu2  ;;  %v5181_v16 = vor.u32 %v5792_v33, %v5180_v13  ;;  %v8651_v13 = vmax.f32 %v6898_v37, %v6911_v27 }
 0x29a   : > { %v1745_v61 = vadd.f32 %v1744_v50, %v6195_v44  ;;  %v1249_v54 = vpop.f32.mrf.mxu0  ;;  %v6977_v35 = vpop.f32.mrf.mxu3  ;;  %v2253_v0 = vmax.f32 %v2205_v21, 0.0  ;;  %v4913_v50 = vor.u32 %v5735_v7, %v4910_v8  ;;  %v4900_v7 = vld [vmem:[%s6057_s13 + $0x280] sm:$0xf]  ;;  %v5734_v8 = vld [vmem:[%s6057_s13 + $0x284] sm:$0xf0] }
 0x29b   : > { %v1250_v57 = vadd.f32 %v1249_v54, %v6186_v30  ;;  %2534 = vmatpush.bf16.msrb.mxu1 %v5181_v16 }
 0x29c   : > { %v1994_v49 = vadd.f32 %v6908_v32, %v1745_v61  ;;  %v6981_v60 = vpop.f32.mrf.mxu1 }
 0x29d   : > { %v1499_v59 = vadd.f32 %v6916_v51, %v1250_v57  ;;  %1288 = vmatmul.bf16.gmra.mxu0 %v4893_v3  ;;  %v2301_v51 = vpack.c.bf16 %v2253_v0, %v2253_v0 }
 0x29e   : > { %v2142_v12 = vmax.f32 %v1496_v47, %v1994_v49  ;;  %1786 = vmatmul.bf16.gmra.mxu2 %v4893_v3 }
 0x29f   : > { %5083 = vmatmul.msk.bf16.gmra.mxu1 %vm940_vm0, %v4913_v50  ;;  %5131 = vmatmul.msk.bf16.gmra.mxu3 %vm940_vm0, %v4913_v50  ;;  %v2410_v3 = vunpack.c.l.b16 %v2301_v51  ;;  %v8652_v50 = vmax.f32 %v6914_v55, %v6929_v5 }
 0x2a0   : > { %v2206_v40 = vmax.f32 %v8651_v13, %v2142_v12 }
 0x2a1   : > { %v1747_v32 = vpop.f32.mrf.mxu2 }
 0x2a2   : > { %v2254_v33 = vmax.f32 %v2206_v40, 0.0  ;;  %v1748_v61 = vadd.f32 %v1747_v32, %v6195_v44  ;;  %v1251_v54 = vpop.f32.mrf.mxu0  ;;  %v6992_v47 = vpop.f32.mrf.mxu3  ;;  %v4901_v32 = vor.u32 %v5734_v8, %v4900_v7 }
 0x2a3   : > { %v1252_v49 = vadd.f32 %v1251_v54, %v6186_v30 }
 0x2a4   : > { %v2302_v21 = vpack.c.bf16 %v2254_v33, %v2254_v33  ;;  %v1997_v37 = vadd.f32 %v6926_v22, %v1748_v61  ;;  %v6996_v27 = vpop.f32.mrf.mxu1 }
 0x2a5   : > { %v1501_v12 = vadd.f32 %v6934_v45, %v1252_v49  ;;  %v5737_v49 = vld [vmem:[%s6057_s13 + $0x2a4] sm:$0xf] }
 0x2a6   : > { %v2411_v16 = vunpack.c.l.b16 %v2302_v21  ;;  %v2143_v57 = vmax.f32 %v1499_v59, %v1997_v37  ;;  %v4918_v21 = vld [vmem:[%s6057_s13 + $0x2a8] sm:$0xf0] }
 0x2a7   : > { %v4921_v37 = vor.u32 %v5737_v49, %v4918_v21 }
 0x2a8   : > { %v7000_v0 = vpack.c.b16 %v2411_v16, %v2410_v3  ;;  %v2207_v13 = vmax.f32 %v8652_v50, %v2143_v57  ;;  %v8653_v3 = vmax.f32 %v6932_v41, %v6945_v18 }
 0x2a9   : > { %v1749_v40 = vpop.f32.mrf.mxu2 }
 0x2aa   : > { %v1750_v22 = vadd.f32 %v1749_v40, %v6195_v44  ;;  %v1254_v45 = vpop.f32.mrf.mxu0  ;;  %v7007_v51 = vpop.f32.mrf.mxu3  ;;  %v2255_v55 = vmax.f32 %v2207_v13, 0.0 }
 0x2ab   : > { %v1255_v33 = vadd.f32 %v1254_v45, %v6186_v30 }
 0x2ac   : > { %v1999_v59 = vadd.f32 %v6942_v6, %v1750_v22  ;;  %v1513_v54 = vpop.f32.mrf.mxu1 }
 0x2ad   : > { %v7011_v61 = vadd.f32 %v6947_v14, %v1255_v33  ;;  %1293 = vmatmul.bf16.gmra.mxu0 %v4901_v32  ;;  %v2303_v14 = vpack.c.bf16 %v2255_v55, %v2255_v55  ;;  %v4908_v33 = vld [vmem:[%s6057_s13 + $0x290] sm:$0xf] }
 0x2ae   : > { %v2144_v5 = vmax.f32 %v1501_v12, %v1999_v59  ;;  %1791 = vmatmul.bf16.gmra.mxu2 %v4901_v32  ;;  %v5736_v59 = vld [vmem:[%s6057_s13 + $0x294] sm:$0xf0] }
 0x2af   : > { %5084 = vmatmul.msk.bf16.gmra.mxu1 %vm940_vm0, %v4921_v37  ;;  %5132 = vmatmul.msk.bf16.gmra.mxu3 %vm940_vm0, %v4921_v37  ;;  %v2412_v32 = vunpack.c.l.b16 %v2303_v14  ;;  %v4909_v55 = vor.u32 %v5736_v59, %v4908_v33  ;;  %v4926_v14 = vld [vmem:[%s6057_s13 + $0x2b8] sm:$0xf0]  ;;  %v4916_v33 = vld [vmem:[%s6057_s13 + $0x2a0] sm:$0xf]  ;;  %v5738_v59 = vld [vmem:[%s6057_s13 + $0x2a4] sm:$0xf0] }
 0x2b0   : > { %v2208_v16 = vmax.f32 %v8653_v3, %v2144_v5 }
 0x2b1   : > { %v1752_v6 = vpop.f32.mrf.mxu2 }
 0x2b2   : > { %v2256_v57 = vmax.f32 %v2208_v16, 0.0  ;;  %v1753_v7 = vadd.f32 %v1752_v6, %v6195_v44  ;;  %v1256_v8 = vpop.f32.mrf.mxu0  ;;  %v2011_v50 = vpop.f32.mrf.mxu3  ;;  %v5739_v6 = vld [vmem:[%s6057_s13 + $0x2b4] sm:$0xf] }
 0x2b3   : > { %v1257_v12 = vadd.f32 %v1256_v8, %v6186_v30 }
 0x2b4   : > { %v2304_v13 = vpack.c.bf16 %v2256_v57, %v2256_v57  ;;  %v7023_v40 = vadd.f32 %v6957_v26, %v1753_v7  ;;  %v1515_v18 = vpop.f32.mrf.mxu1  ;;  %v4929_v7 = vor.u32 %v5739_v6, %v4926_v14  ;;  %v5741_v14 = vld [vmem:[%s6057_s13 + $0x2c4] sm:$0xf] }
 0x2b5   : > { %v7026_v41 = vadd.f32 %v6959_v39, %v1257_v12 }
 0x2b6   : > { %v2413_v22 = vunpack.c.l.b16 %v2304_v13  ;;  %v2145_v45 = vmax.f32 %v7011_v61, %v7023_v40 }
 0x2b8   : > { %v7032_v49 = vpack.c.b16 %v2413_v22, %v2412_v32 }
 0x2b9   : > { %v1754_v21 = vpop.f32.mrf.mxu2 }
 0x2ba   : > { %8654 = vst [vmem:[#allocation8_spill] sm:$0xff] %v7032_v49  ;;  %v1755_v26 = vadd.f32 %v1754_v21, %v6195_v44  ;;  %v1259_v5 = vpop.f32.mrf.mxu0  ;;  %v2013_v37 = vpop.f32.mrf.mxu3 }
 0x2bb   : > { %v1260_v39 = vadd.f32 %v1259_v5, %v6186_v30 }
 0x2bc   : > { %v7037_v3 = vadd.f32 %v6977_v35, %v1755_v26  ;;  %v1518_v61 = vpop.f32.mrf.mxu1 }
 0x2bd   : > { %v7040_v16 = vadd.f32 %v6981_v60, %v1260_v39  ;;  %1298 = vmatmul.bf16.gmra.mxu0 %v4909_v55 }
 0x2be   : > { %v2146_v57 = vmax.f32 %v7026_v41, %v7037_v3  ;;  %1796 = vmatmul.bf16.gmra.mxu2 %v4909_v55  ;;  %v4917_v55 = vor.u32 %v5738_v59, %v4916_v33 }
 0x2bf   : > { %5085 = vmatmul.msk.bf16.gmra.mxu1 %vm940_vm0, %v4929_v7  ;;  %5133 = vmatmul.msk.bf16.gmra.mxu3 %vm940_vm0, %v4929_v7  ;;  %v4934_v7 = vld [vmem:[%s6057_s13 + $0x2c8] sm:$0xf0] }
 0x2c1   : > { %v1757_v35 = vpop.f32.mrf.mxu2 }
 0x2c2   : > { %v1758_v8 = vadd.f32 %v1757_v35, %v6195_v44  ;;  %v1261_v60 = vpop.f32.mrf.mxu0  ;;  %v7050_v13 = vpop.f32.mrf.mxu3 }
 0x2c3   : > { %v1262_v12 = vadd.f32 %v1261_v60, %v6186_v30 }
 0x2c4   : > { %v7053_v40 = vadd.f32 %v6992_v47, %v1758_v8  ;;  %v1520_v32 = vpop.f32.mrf.mxu1  ;;  %v4937_v8 = vor.u32 %v5741_v14, %v4934_v7 }
 0x2c5   : > { %v7056_v41 = vadd.f32 %v6996_v27, %v1262_v12 }
 0x2c9   : > { %v1759_v21 = vpop.f32.mrf.mxu2 }
 0x2ca   : > { %v1760_v26 = vadd.f32 %v1759_v21, %v6195_v44  ;;  %v1264_v5 = vpop.f32.mrf.mxu0  ;;  %v7064_v47 = vpop.f32.mrf.mxu3 }
 0x2cb   : > { %v1265_v39 = vadd.f32 %v1264_v5, %v6186_v30  ;;  %v4924_v5 = vld [vmem:[%s6057_s13 + $0x2b0] sm:$0xf] }
 0x2cc   : > { %v7067_v3 = vadd.f32 %v7007_v51, %v1760_v26  ;;  %v7069_v6 = vpop.f32.mrf.mxu1 }
 0x2cd   : > { %v1514_v27 = vadd.f32 %v1513_v54, %v1265_v39  ;;  %1303 = vmatmul.bf16.gmra.mxu0 %v4917_v55  ;;  %v5740_v39 = vld [vmem:[%s6057_s13 + $0x2b4] sm:$0xf0] }
 0x2ce   : > { %1801 = vmatmul.bf16.gmra.mxu2 %v4917_v55 }
 0x2cf   : > { %5086 = vmatmul.msk.bf16.gmra.mxu1 %vm940_vm0, %v4937_v8  ;;  %5134 = vmatmul.msk.bf16.gmra.mxu3 %vm940_vm0, %v4937_v8  ;;  %v4925_v8 = vor.u32 %v5740_v39, %v4924_v5 }
 0x2d1   : > { %v1762_v60 = vpop.f32.mrf.mxu2 }
 0x2d2   : > { %v1763_v51 = vadd.f32 %v1762_v60, %v6195_v44  ;;  %v1266_v54 = vpop.f32.mrf.mxu0  ;;  %v7079_v33 = vpop.f32.mrf.mxu3 }
 0x2d3   : > { %v1267_v12 = vadd.f32 %v1266_v54, %v6186_v30 }
 0x2d4   : > { %v2012_v59 = vadd.f32 %v2011_v50, %v1763_v51  ;;  %v7081_v26 = vpop.f32.mrf.mxu1  ;;  %v5743_v51 = vld [vmem:[%s6057_s13 + $0x2d4] sm:$0xf] }
 0x2d5   : > { %v1516_v21 = vadd.f32 %v1515_v18, %v1267_v12  ;;  %v4942_v12 = vld [vmem:[%s6057_s13 + $0x2d8] sm:$0xf0] }
 0x2d6   : > { %v2149_v55 = vmax.f32 %v1514_v27, %v2012_v59 }
 0x2d8   : > { %v2209_v14 = vmax.f32 %v2145_v45, %v2149_v55  ;;  %v4945_v45 = vor.u32 %v5743_v51, %v4942_v12 }
 0x2d9   : > { %v1764_v7 = vpop.f32.mrf.mxu2 }
 0x2da   : > { %v1765_v35 = vadd.f32 %v1764_v7, %v6195_v44  ;;  %v1269_v60 = vpop.f32.mrf.mxu0  ;;  %v7087_v54 = vpop.f32.mrf.mxu3  ;;  %v2257_v27 = vmax.f32 %v2209_v14, 0.0 }
 0x2db   : > { %v1270_v22 = vadd.f32 %v1269_v60, %v6186_v30 }
 0x2dc   : > { %v2014_v49 = vadd.f32 %v2013_v37, %v1765_v35  ;;  %v7089_v18 = vpop.f32.mrf.mxu1  ;;  %v2305_v39 = vpack.c.bf16 %v2257_v27, %v2257_v27  ;;  %v5789_v27 = vld [vmem:[%s8623_s3 + $0xa4] sm:$0xf] }
 0x2dd   : > { %v1519_v50 = vadd.f32 %v1518_v61, %v1270_v22  ;;  %1308 = vmatmul.bf16.gmra.mxu0 %v4925_v8 }
 0x2de   : > { %v2150_v59 = vmax.f32 %v1516_v21, %v2014_v49  ;;  %1806 = vmatmul.bf16.gmra.mxu2 %v4925_v8  ;;  %v2414_v60 = vunpack.c.l.b16 %v2305_v39 }
 0x2df   : > { %5087 = vmatmul.msk.bf16.gmra.mxu1 %vm940_vm0, %v4945_v45  ;;  %5135 = vmatmul.msk.bf16.gmra.mxu3 %vm940_vm0, %v4945_v45  ;;  %v5174_v45 = vld [vmem:[%s8623_s3 + $0xa8] sm:$0xf0] }
 0x2e0   : > { %v2210_v55 = vmax.f32 %v2146_v57, %v2150_v59  ;;  %v4932_v57 = vld [vmem:[%s6057_s13 + $0x2c0] sm:$0xf]  ;;  %v5742_v59 = vld [vmem:[%s6057_s13 + $0x2c4] sm:$0xf0] }
 0x2e1   : > { %v1767_v5 = vpop.f32.mrf.mxu2 }
 0x2e2   : > { %v2258_v37 = vmax.f32 %v2210_v55, 0.0  ;;  %v1768_v61 = vadd.f32 %v1767_v5, %v6195_v44  ;;  %v1271_v22 = vpop.f32.mrf.mxu0  ;;  %v7097_v7 = vpop.f32.mrf.mxu3  ;;  %v5177_v55 = vor.u32 %v5789_v27, %v5174_v45 }
 0x2e3   : > { %v1272_v35 = vadd.f32 %v1271_v22, %v6186_v30 }
 0x2e4   : > { %v2306_v49 = vpack.c.bf16 %v2258_v37, %v2258_v37  ;;  %v2017_v21 = vadd.f32 %v7050_v13, %v1768_v61  ;;  %v7101_v8 = vpop.f32.mrf.mxu1  ;;  %2624 = vmatpush.bf16.msrb.mxu3 %v5177_v55 }
 0x2e5   : > { %v1521_v14 = vadd.f32 %v1520_v32, %v1272_v35  ;;  %v8656_v32 = vmax.f32 %v7040_v16, %v7053_v40  ;;  %v5745_v16 = vld [vmem:[%s6057_s13 + $0x2e4] sm:$0xf]  ;;  %v4950_v40 = vld [vmem:[%s6057_s13 + $0x2e8] sm:$0xf0] }
 0x2e6   : > { %v2415_v51 = vunpack.c.l.b16 %v2306_v49  ;;  %v2151_v12 = vmax.f32 %v1519_v50, %v2017_v21  ;;  %v4933_v50 = vor.u32 %v5742_v59, %v4932_v57  ;;  %v5790_v59 = vld [vmem:[%s8623_s3 + $0xa4] sm:$0xf0] }
 0x2e8   : > { %v7110_v13 = vpack.c.b16 %v2415_v51, %v2414_v60  ;;  %v2211_v5 = vmax.f32 %v8656_v32, %v2151_v12  ;;  %v5172_v12 = vld [vmem:[%s8623_s3 + $0xa0] sm:$0xf] }
 0x2e9   : > { %v1769_v39 = vpop.f32.mrf.mxu2  ;;  %v5173_v27 = vor.u32 %v5790_v59, %v5172_v12 }
 0x2ea   : > { %8655 = vst [vmem:[#allocation9_spill] sm:$0xff] %v7110_v13  ;;  %v1770_v37 = vadd.f32 %v1769_v39, %v6195_v44  ;;  %v1274_v61 = vpop.f32.mrf.mxu0  ;;  %v7117_v35 = vpop.f32.mrf.mxu3  ;;  %v2259_v51 = vmax.f32 %v2211_v5, 0.0 }
 0x2eb   : > { %v1275_v22 = vadd.f32 %v1274_v61, %v6186_v30  ;;  %2535 = vmatpush.bf16.msrb.mxu1 %v5173_v27 }
 0x2ec   : > { %v2019_v49 = vadd.f32 %v7064_v47, %v1770_v37  ;;  %v7123_v60 = vpop.f32.mrf.mxu1  ;;  %v4953_v47 = vor.u32 %v5745_v16, %v4950_v40  ;;  %v2307_v55 = vpack.c.bf16 %v2259_v51, %v2259_v51  ;;  %v4940_v16 = vld [vmem:[%s6057_s13 + $0x2d0] sm:$0xf]  ;;  %v5744_v40 = vld [vmem:[%s6057_s13 + $0x2d4] sm:$0xf0] }
 0x2ed   : > { %v7121_v21 = vadd.f32 %v7069_v6, %v1275_v22  ;;  %1313 = vmatmul.bf16.gmra.mxu0 %v4933_v50  ;;  %v8657_v6 = vmax.f32 %v7056_v41, %v7067_v3  ;;  %v4941_v59 = vor.u32 %v5744_v40, %v4940_v16  ;;  %v4948_v16 = vld [vmem:[%s6057_s13 + $0x2e0] sm:$0xf]  ;;  %v5746_v40 = vld [vmem:[%s6057_s13 + $0x2e4] sm:$0xf0] }
 0x2ee   : > { %v2152_v57 = vmax.f32 %v1521_v14, %v2019_v49  ;;  %1811 = vmatmul.bf16.gmra.mxu2 %v4933_v50  ;;  %v2416_v41 = vunpack.c.l.b16 %v2307_v55 }
 0x2ef   : > { %5088 = vmatmul.msk.bf16.gmra.mxu1 %vm940_vm0, %v4953_v47  ;;  %5136 = vmatmul.msk.bf16.gmra.mxu3 %vm940_vm0, %v4953_v47 }
 0x2f0   : > { %v2212_v45 = vmax.f32 %v8657_v6, %v2152_v57 }
 0x2f1   : > { %v1772_v14 = vpop.f32.mrf.mxu2 }
 0x2f2   : > { %v2260_v32 = vmax.f32 %v2212_v45, 0.0  ;;  %v1773_v5 = vadd.f32 %v1772_v14, %v6195_v44  ;;  %v1276_v39 = vpop.f32.mrf.mxu0  ;;  %v2031_v50 = vpop.f32.mrf.mxu3 }
 0x2f3   : > { %v1277_v51 = vadd.f32 %v1276_v39, %v6186_v30 }
 0x2f4   : > { %v2308_v37 = vpack.c.bf16 %v2260_v32, %v2260_v32  ;;  %v2022_v61 = vadd.f32 %v7079_v33, %v1773_v5  ;;  %v7140_v22 = vpop.f32.mrf.mxu1  ;;  %v5747_v32 = vld [vmem:[%s6057_s13 + $0x2f4] sm:$0xf]  ;;  %v4958_v5 = vld [vmem:[%s6057_s13 + $0x2f8] sm:$0xf0] }
 0x2f5   : > { %v1526_v45 = vadd.f32 %v7081_v26, %v1277_v51 }
 0x2f6   : > { %v2417_v3 = vunpack.c.l.b16 %v2308_v37  ;;  %v2153_v49 = vmax.f32 %v7121_v21, %v2022_v61  ;;  %v4961_v37 = vor.u32 %v5747_v32, %v4958_v5 }
 0x2f8   : > { %v7145_v57 = vpack.c.b16 %v2417_v3, %v2416_v41 }
 0x2f9   : > { %v1774_v12 = vpop.f32.mrf.mxu2 }
 0x2fa   : > { %8658 = vst [vmem:[#allocation10_spill] sm:$0xff] %v7145_v57  ;;  %v1775_v47 = vadd.f32 %v1774_v12, %v6195_v44  ;;  %v1279_v27 = vpop.f32.mrf.mxu0  ;;  %v2033_v6 = vpop.f32.mrf.mxu3 }
 0x2fb   : > { %v1280_v33 = vadd.f32 %v1279_v27, %v6186_v30 }
 0x2fc   : > { %v2024_v21 = vadd.f32 %v7087_v54, %v1775_v47  ;;  %v1538_v55 = vpop.f32.mrf.mxu1  ;;  %v4949_v47 = vor.u32 %v5746_v40, %v4948_v16 }
 0x2fd   : > { %v7153_v14 = vadd.f32 %v7089_v18, %v1280_v33  ;;  %1318 = vmatmul.bf16.gmra.mxu0 %v4941_v59 }
 0x2fe   : > { %v2154_v39 = vmax.f32 %v1526_v45, %v2024_v21  ;;  %1816 = vmatmul.bf16.gmra.mxu2 %v4941_v59 }
 0x2ff   : > { %5089 = vmatmul.msk.bf16.gmra.mxu1 %vm940_vm0, %v4961_v37  ;;  %5137 = vmatmul.msk.bf16.gmra.mxu3 %vm940_vm0, %v4961_v37 }
 0x301   : > { %v1777_v61 = vpop.f32.mrf.mxu2 }
 0x302   : > { %v1778_v26 = vadd.f32 %v1777_v61, %v6195_v44  ;;  %v1281_v54 = vpop.f32.mrf.mxu0  ;;  %v2036_v41 = vpop.f32.mrf.mxu3 }
 0x303   : > { %v1282_v12 = vadd.f32 %v1281_v54, %v6186_v30 }
 0x304   : > { %v2027_v18 = vadd.f32 %v7097_v7, %v1778_v26  ;;  %v1540_v51 = vpop.f32.mrf.mxu1 }
 0x305   : > { %v7168_v32 = vadd.f32 %v7101_v8, %v1282_v12 }
 0x306   : > { %v2155_v3 = vmax.f32 %v7153_v14, %v2027_v18 }
 0x309   : > { %v1779_v59 = vpop.f32.mrf.mxu2 }
 0x30a   : > { %v1780_v27 = vadd.f32 %v1779_v59, %v6195_v44  ;;  %v1284_v33 = vpop.f32.mrf.mxu0  ;;  %v2038_v21 = vpop.f32.mrf.mxu3  ;;  %v4956_v59 = vld [vmem:[%s6057_s13 + $0x2f0] sm:$0xf] }
 0x30b   : > { %v1285_v45 = vadd.f32 %v1284_v33, %v6186_v30  ;;  %v5748_v33 = vld [vmem:[%s6057_s13 + $0x2f4] sm:$0xf0] }
 0x30c   : > { %v2029_v7 = vadd.f32 %v7117_v35, %v1780_v27  ;;  %v1543_v37 = vpop.f32.mrf.mxu1  ;;  %v4957_v27 = vor.u32 %v5748_v33, %v4956_v59 }
 0x30d   : > { %v1534_v14 = vadd.f32 %v7123_v60, %v1285_v45  ;;  %1323 = vmatmul.bf16.gmra.mxu0 %v4949_v47 }
 0x30e   : > { %v2156_v5 = vmax.f32 %v7168_v32, %v2029_v7  ;;  %1821 = vmatmul.bf16.gmra.mxu2 %v4949_v47 }
 0x311   : > { %v1782_v61 = vpop.f32.mrf.mxu2 }
 0x312   : > { %v1783_v26 = vadd.f32 %v1782_v61, %v6195_v44  ;;  %v1286_v54 = vpop.f32.mrf.mxu0  ;;  %v2041_v16 = vpop.f32.mrf.mxu3 }
 0x313   : > { %v1287_v8 = vadd.f32 %v1286_v54, %v6186_v30 }
 0x314   : > { %v2032_v18 = vadd.f32 %v2031_v50, %v1783_v26  ;;  %v7178_v32 = vpop.f32.mrf.mxu1 }
 0x315   : > { %v1536_v7 = vadd.f32 %v7140_v22, %v1287_v8  ;;  %v5653_v8 = vld [vmem:[%s6057_s13 + $0x4] sm:$0xf] }
 0x316   : > { %v2157_v40 = vmax.f32 %v1534_v14, %v2032_v18 }
 0x318   : > { %v2213_v12 = vmax.f32 %v2153_v49, %v2157_v40 }
 0x319   : > { %v1784_v35 = vpop.f32.mrf.mxu2 }
 0x31a   : > { %v1785_v60 = vadd.f32 %v1784_v35, %v6195_v44  ;;  %v1289_v45 = vpop.f32.mrf.mxu0  ;;  %v2261_v14 = vmax.f32 %v2213_v12, 0.0  ;;  %v2043_v49 = vpop.f32.mrf.mxu3  ;;  %v4582_v12 = vld [vmem:[%s6057_s13 + $0x8] sm:$0xf0] }
 0x31b   : > { %v1290_v47 = vadd.f32 %v1289_v45, %v6186_v30 }
 0x31c   : > { %v2034_v61 = vadd.f32 %v2033_v6, %v1785_v60  ;;  %v2309_v40 = vpack.c.bf16 %v2261_v14, %v2261_v14  ;;  %v1548_v13 = vpop.f32.mrf.mxu1 }
 0x31d   : > { %v1539_v50 = vadd.f32 %v1538_v55, %v1290_v47  ;;  %1328 = vmatmul.bf16.gmra.mxu0 %v4957_v27 }
 0x31e   : > { %v2158_v26 = vmax.f32 %v1536_v7, %v2034_v61  ;;  %1826 = vmatmul.bf16.gmra.mxu2 %v4957_v27  ;;  %v2999_v22 = vunpack.c.l.b16 %v2309_v40  ;;  %v4585_v7 = vor.u32 %v5653_v8, %v4582_v12 }
 0x320   : > { %v2214_v54 = vmax.f32 %v2154_v39, %v2158_v26 }
 0x321   : > { %v1787_v18 = vpop.f32.mrf.mxu2 }
 0x322   : > { %v2262_v59 = vmax.f32 %v2214_v54, 0.0  ;;  %v1788_v33 = vadd.f32 %v1787_v18, %v6195_v44  ;;  %v1291_v35 = vpop.f32.mrf.mxu0  ;;  %v2046_v61 = vpop.f32.mrf.mxu3 }
 0x323   : > { %v1292_v27 = vadd.f32 %v1291_v35, %v6186_v30 }
 0x324   : > { %v2310_v57 = vpack.c.bf16 %v2262_v59, %v2262_v59  ;;  %v2037_v45 = vadd.f32 %v2036_v41, %v1788_v33 }
 0x325   : > { %v1541_v41 = vadd.f32 %v1540_v51, %v1292_v27  ;;  %v5655_v27 = vld [vmem:[%s6057_s13 + $0x14] sm:$0xf] }
 0x326   : > { %v3000_v6 = vunpack.c.l.b16 %v2310_v57  ;;  %v2159_v55 = vmax.f32 %v1539_v50, %v2037_v45 }
 0x328   : > { %v7185_v60 = vpack.c.b16 %v3000_v6, %v2999_v22  ;;  %v2215_v47 = vmax.f32 %v2155_v3, %v2159_v55  ;;  %v7194_v3 = vpop.f32.mrf.mxu1 }
 0x329   : > { %v1789_v39 = vpop.f32.mrf.mxu2 }
 0x32a   : > { %v1790_v14 = vadd.f32 %v1789_v39, %v6195_v44  ;;  %v1294_v26 = vpop.f32.mrf.mxu0  ;;  %v2263_v57 = vmax.f32 %v2215_v47, 0.0  ;;  %v4590_v47 = vld [vmem:[%s6057_s13 + $0x18] sm:$0xf0] }
 0x32b   : > { %v1295_v54 = vadd.f32 %v1294_v26, %v6186_v30  ;;  %v4593_v26 = vor.u32 %v5655_v27, %v4590_v47 }
 0x32c   : > { %v2039_v18 = vadd.f32 %v2038_v21, %v1790_v14  ;;  %v2311_v35 = vpack.c.bf16 %v2263_v57, %v2263_v57  ;;  %v7197_v21 = vpop.f32.mrf.mxu3 }
 0x32d   : > { %v7190_v40 = vadd.f32 %v1543_v37, %v1295_v54  ;;  %5042 = vmatmul.msk.bf16.vlgmr.msrb.gmra.mxu0 %vm940_vm0, %v4585_v7 }
 0x32e   : > { %v2160_v50 = vmax.f32 %v1541_v41, %v2039_v18  ;;  %5090 = vmatmul.msk.bf16.vlgmr.msrb.gmra.mxu2 %vm940_vm0, %v4585_v7  ;;  %v3001_v55 = vunpack.c.l.b16 %v2311_v35 }
 0x330   : > { %v2216_v59 = vmax.f32 %v2156_v5, %v2160_v50  ;;  %v1553_v7 = vpop.f32.mrf.mxu1 }
 0x331   : > { %v1792_v33 = vpop.f32.mrf.mxu2 }
 0x332   : > { %v2264_v45 = vmax.f32 %v2216_v59, 0.0  ;;  %v1793_v22 = vadd.f32 %v1792_v33, %v6195_v44  ;;  %v1296_v51 = vpop.f32.mrf.mxu0 }
 0x333   : > { %v1297_v5 = vadd.f32 %v1296_v51, %v6186_v30 }
 0x334   : > { %v2312_v37 = vpack.c.bf16 %v2264_v45, %v2264_v45  ;;  %v2042_v6 = vadd.f32 %v2041_v16, %v1793_v22  ;;  %v2051_v50 = vpop.f32.mrf.mxu3 }
 0x335   : > { %v1546_v18 = vadd.f32 %v7178_v32, %v1297_v5 }
 0x336   : > { %v3002_v8 = vunpack.c.l.b16 %v2312_v37  ;;  %v2161_v12 = vmax.f32 %v7190_v40, %v2042_v6  ;;  %v5657_v37 = vld [vmem:[%s6057_s13 + $0x24] sm:$0xf]  ;;  %v4598_v6 = vld [vmem:[%s6057_s13 + $0x28] sm:$0xf0] }
 0x338   : > { %v7202_v39 = vpack.c.b16 %v3002_v8, %v3001_v55  ;;  %v1555_v22 = vpop.f32.mrf.mxu1  ;;  %v5164_v55 = vld [vmem:[%s8623_s3 + $0x90] sm:$0xf] }
 0x339   : > { %v1794_v14 = vpop.f32.mrf.mxu2 }
 0x33a   : > { %v1795_v54 = vadd.f32 %v1794_v14, %v6195_v44  ;;  %v1299_v41 = vpop.f32.mrf.mxu0  ;;  %v4601_v14 = vor.u32 %v5657_v37, %v4598_v6  ;;  %v5659_v37 = vld [vmem:[%s6057_s13 + $0x34] sm:$0xf]  ;;  %v4606_v6 = vld [vmem:[%s6057_s13 + $0x38] sm:$0xf0] }
 0x33b   : > { %v1300_v16 = vadd.f32 %v1299_v41, %v6186_v30 }
 0x33c   : > { %v2044_v57 = vadd.f32 %v2043_v49, %v1795_v54  ;;  %v5166_v49 = vld [vmem:[%s8623_s3 + $0x98] sm:$0xf0]  ;;  %v2053_v8 = vpop.f32.mrf.mxu3 }
 0x33d   : > { %v7208_v40 = vadd.f32 %v1548_v13, %v1300_v16  ;;  %5043 = vmatmul.msk.bf16.gmra.mxu0 %vm940_vm0, %v4593_v26  ;;  %v5787_v13 = vld [vmem:[%s8623_s3 + $0x94] sm:$0xf] }
 0x33e   : > { %v2162_v59 = vmax.f32 %v1546_v18, %v2044_v57  ;;  %5091 = vmatmul.msk.bf16.gmra.mxu2 %vm940_vm0, %v4593_v26  ;;  %v5169_v27 = vor.u32 %v5787_v13, %v5166_v49 }
 0x340   : > { %2625 = vmatpush.bf16.msrb.mxu3 %v5169_v27  ;;  %v1558_v41 = vpop.f32.mrf.mxu1 }
 0x341   : > { %v1797_v33 = vpop.f32.mrf.mxu2 }
 0x342   : > { %v1798_v35 = vadd.f32 %v1797_v33, %v6195_v44  ;;  %v7213_v45 = vpop.f32.mrf.mxu0 }
 0x344   : > { %v2047_v51 = vadd.f32 %v2046_v61, %v1798_v35  ;;  %v5788_v61 = vld [vmem:[%s8623_s3 + $0x94] sm:$0xf0]  ;;  %v2056_v57 = vpop.f32.mrf.mxu3 }
 0x345   : > { %v5165_v47 = vor.u32 %v5788_v61, %v5164_v55 }
 0x346   : > { %v2163_v32 = vmax.f32 %v7208_v40, %v2047_v51 }
 0x347   : > { %2536 = vmatpush.bf16.msrb.mxu1 %v5165_v47 }
 0x348   : > { %v7238_v13 = vpop.f32.mrf.mxu1 }
 0x349   : > { %v7230_v5 = vpop.f32.mrf.mxu2 }
 0x34a   : > { %v1304_v26 = vpop.f32.mrf.mxu0 }
 0x34b   : > { %v1305_v54 = vadd.f32 %v1304_v26, %v6186_v30 }
 0x34c   : > { %v7243_v26 = vpop.f32.mrf.mxu3 }
 0x34d   : > { %v1554_v16 = vadd.f32 %v1553_v7, %v1305_v54  ;;  %5044 = vmatmul.msk.bf16.gmra.mxu0 %vm940_vm0, %v4601_v14  ;;  %v4609_v7 = vor.u32 %v5659_v37, %v4606_v6 }
 0x34e   : > { %5092 = vmatmul.msk.bf16.gmra.mxu2 %vm940_vm0, %v4601_v14 }
 0x351   : > { %v1802_v18 = vpop.f32.mrf.mxu2 }
 0x352   : > { %v1803_v40 = vadd.f32 %v1802_v18, %v6195_v44  ;;  %v1306_v33 = vpop.f32.mrf.mxu0 }
 0x353   : > { %v1307_v49 = vadd.f32 %v1306_v33, %v6186_v30  ;;  %v1563_v33 = vpop.f32.mrf.mxu1 }
 0x354   : > { %v2052_v35 = vadd.f32 %v2051_v50, %v1803_v40 }
 0x355   : > { %v1556_v54 = vadd.f32 %v1555_v22, %v1307_v49 }
 0x356   : > { %v2165_v51 = vmax.f32 %v1554_v16, %v2052_v35 }
 0x358   : > { %v2217_v55 = vmax.f32 %v2161_v12, %v2165_v51 }
 0x359   : > { %v1804_v27 = vpop.f32.mrf.mxu2 }
 0x35a   : > { %v1805_v61 = vadd.f32 %v1804_v27, %v6195_v44  ;;  %v1309_v47 = vpop.f32.mrf.mxu0  ;;  %v2265_v16 = vmax.f32 %v2217_v55, 0.0 }
 0x35b   : > { %v1310_v14 = vadd.f32 %v1309_v47, %v6186_v30  ;;  %v5661_v47 = vld [vmem:[%s6057_s13 + $0x44] sm:$0xf] }
 0x35c   : > { %v2054_v18 = vadd.f32 %v2053_v8, %v1805_v61  ;;  %v2313_v51 = vpack.c.bf16 %v2265_v16, %v2265_v16 }
 0x35d   : > { %v1559_v50 = vadd.f32 %v1558_v41, %v1310_v14  ;;  %5045 = vmatmul.msk.bf16.gmra.mxu0 %vm940_vm0, %v4609_v7  ;;  %v2061_v41 = vpop.f32.mrf.mxu3  ;;  %v4614_v14 = vld [vmem:[%s6057_s13 + $0x48] sm:$0xf0]  ;;  %s283_s13 = scalar_lea.vmem %s8627_s7, %s4577_s21 }
 0x35e   : > { %v2166_v40 = vmax.f32 %v1556_v54, %v2054_v18  ;;  %5093 = vmatmul.msk.bf16.gmra.mxu2 %vm940_vm0, %v4609_v7  ;;  %v3350_v49 = vunpack.c.l.b16 %v2313_v51  ;;  %v4617_v18 = vor.u32 %v5661_v47, %v4614_v14 }
 0x360   : > { %v2218_v12 = vmax.f32 %v2162_v59, %v2166_v40  ;;  %v7258_v40 = vpop.f32.mrf.mxu1 }
 0x361   : > { %v1807_v35 = vpop.f32.mrf.mxu2  ;;  %8660 = vst [vmem:[#allocation12_spill] sm:$0xff] %v7258_v40 }
 0x362   : > { %v2266_v37 = vmax.f32 %v2218_v12, 0.0  ;;  %v1808_v6 = vadd.f32 %v1807_v35, %v6195_v44  ;;  %v7248_v27 = vpop.f32.mrf.mxu0 }
 0x364   : > { %v2314_v22 = vpack.c.bf16 %v2266_v37, %v2266_v37  ;;  %v2057_v8 = vadd.f32 %v2056_v57, %v1808_v6 }
 0x365   : > { %v7263_v57 = vpop.f32.mrf.mxu3 }
 0x366   : > { %v3351_v61 = vunpack.c.l.b16 %v2314_v22  ;;  %v2167_v55 = vmax.f32 %v1559_v50, %v2057_v8  ;;  %8661 = vst [vmem:[#allocation13_spill] sm:$0xff] %v7263_v57 }
 0x368   : > { %v7252_v54 = vmax.f32 %v2163_v32, %v2167_v55  ;;  %v7254_v7 = vpack.c.b16 %v3351_v61, %v3350_v49  ;;  %v1568_v6 = vpop.f32.mrf.mxu1 }
 0x369   : > { %v7256_v59 = vpop.f32.mrf.mxu2 }
 0x36a   : > { %8659 = vst [vmem:[#allocation11_spill] sm:$0xff] %v7252_v54  ;;  %v1314_v16 = vpop.f32.mrf.mxu0  ;;  %v8696_v54 = vld [vmem:[#allocation9_spill] sm:$0xff] }
 0x36b   : > { %v1315_v12 = vadd.f32 %v1314_v16, %v6186_v30 }
 0x36d   : > { %v1564_v35 = vadd.f32 %v1563_v33, %v1315_v12  ;;  %5046 = vmatmul.msk.bf16.gmra.mxu0 %vm940_vm0, %v4617_v18  ;;  %v2066_v49 = vpop.f32.mrf.mxu3 }
 0x36e   : > { %5094 = vmatmul.msk.bf16.gmra.mxu2 %vm940_vm0, %v4617_v18 }
 0x370   : > { %v7271_v47 = vpop.f32.mrf.mxu1 }
 0x371   : > { %v1812_v50 = vpop.f32.mrf.mxu2  ;;  %8664 = vst [vmem:[#allocation16_spill] sm:$0xff] %v7271_v47 }
 0x372   : > { %v1813_v32 = vadd.f32 %v1812_v50, %v6195_v44  ;;  %v7266_v51 = vpop.f32.mrf.mxu0 }
 0x373   : > { %8662 = vst [vmem:[#allocation14_spill] sm:$0xff] %v7266_v51 }
 0x374   : > { %v2062_v37 = vadd.f32 %v2061_v41, %v1813_v32 }
 0x375   : > { %v7276_v12 = vpop.f32.mrf.mxu3 }
 0x376   : > { %v2169_v22 = vmax.f32 %v1564_v35, %v2062_v37  ;;  %8666 = vst [vmem:[#allocation18_spill] sm:$0xff] %v7276_v12 }
 0x378   : > { %v1573_v32 = vpop.f32.mrf.mxu1 }
 0x379   : > { %v7268_v8 = vpop.f32.mrf.mxu2 }
 0x37a   : > { %8663 = vst [vmem:[#allocation15_spill] sm:$0xff] %v7268_v8  ;;  %v1319_v61 = vpop.f32.mrf.mxu0 }
 0x37b   : > { %v1320_v33 = vadd.f32 %v1319_v61, %v6186_v30 }
 0x37d   : > { %v1569_v55 = vadd.f32 %v1568_v6, %v1320_v33  ;;  %v2071_v61 = vpop.f32.mrf.mxu3 }
 0x381   : > { %v1817_v14 = vpop.f32.mrf.mxu2 }
 0x382   : > { %v1818_v18 = vadd.f32 %v1817_v14, %v6195_v44  ;;  %v7274_v16 = vpop.f32.mrf.mxu0  ;;  %v7284_v14 = vpop.f32.mrf.mxu1 }
 0x383   : > { %8665 = vst [vmem:[#allocation17_spill] sm:$0xff] %v7274_v16 }
 0x384   : > { %v2067_v50 = vadd.f32 %v2066_v49, %v1818_v18  ;;  %8669 = vst [vmem:[#allocation21_spill] sm:$0xff] %v7284_v14  ;;  %v5785_v49 = vld [vmem:[%s8623_s3 + $0x84] sm:$0xf] }
 0x386   : > { %v2171_v41 = vmax.f32 %v1569_v55, %v2067_v50  ;;  %v5158_v55 = vld [vmem:[%s8623_s3 + $0x88] sm:$0xf0]  ;;  %v5786_v50 = vld [vmem:[%s8623_s3 + $0x84] sm:$0xf0] }
 0x387   : > { %v5161_v18 = vor.u32 %v5785_v49, %v5158_v55 }
 0x389   : > { %v7278_v35 = vpop.f32.mrf.mxu2  ;;  %2626 = vmatpush.bf16.msrb.mxu3 %v5161_v18 }
 0x38a   : > { %8667 = vst [vmem:[#allocation19_spill] sm:$0xff] %v7278_v35  ;;  %v1324_v37 = vpop.f32.mrf.mxu0  ;;  %v1578_v14 = vpop.f32.mrf.mxu1 }
 0x38b   : > { %v1325_v40 = vadd.f32 %v1324_v37, %v6186_v30 }
 0x38d   : > { %v1574_v57 = vadd.f32 %v1573_v32, %v1325_v40  ;;  %v5156_v40 = vld [vmem:[%s8623_s3 + $0x80] sm:$0xf] }
 0x38e   : > { %v5157_v37 = vor.u32 %v5786_v50, %v5156_v40  ;;  %v5784_v40 = vld [vmem:[%s8623_s3 + $0x74] sm:$0xf0] }
 0x390   : > { %2537 = vmatpush.bf16.msrb.mxu1 %v5157_v37  ;;  %v5782_v37 = vld [vmem:[%s8623_s3 + $0x64] sm:$0xf0] }
 0x391   : > { %v1822_v6 = vpop.f32.mrf.mxu2 }
 0x392   : > { %v1823_v33 = vadd.f32 %v1822_v6, %v6195_v44  ;;  %v7282_v47 = vpop.f32.mrf.mxu0 }
 0x393   : > { %8668 = vst [vmem:[#allocation20_spill] sm:$0xff] %v7282_v47 }
 0x394   : > { %v2072_v16 = vadd.f32 %v2071_v61, %v1823_v33  ;;  %v7298_v61 = vpop.f32.mrf.mxu3 }
 0x395   : > { %8670 = vst [vmem:[#allocation22_spill] sm:$0xff] %v7298_v61 }
 0x396   : > { %v2173_v32 = vmax.f32 %v1574_v57, %v2072_v16 }
 0x398   : > { %v7300_v6 = vmax.f32 %v2169_v22, %v2173_v32  ;;  %v5276_v22 = vld [vmem:[%s8623_s3 + $0x70] sm:$0xf]  ;;  %v5268_v32 = vld [vmem:[%s8623_s3 + $0x60] sm:$0xf] }
 0x399   : > { %v7302_v33 = vpop.f32.mrf.mxu2 }
 0x39a   : > { %8671 = vst [vmem:[#allocation23_spill] sm:$0xff] %v7300_v6  ;;  %v1329_v12 = vpop.f32.mrf.mxu0  ;;  %v5802_v6 = vld [vmem:[%s8623_s3 + $0x104] sm:$0xf0] }
 0x39b   : > { %8672 = vst [vmem:[#allocation24_spill] sm:$0xff] %v7302_v33  ;;  %v1330_v35 = vadd.f32 %v1329_v12, %v6186_v30  ;;  %v5783_v12 = vld [vmem:[%s8623_s3 + $0x74] sm:$0xf] }
 0x39c   : > { %v2076_v55 = vpop.f32.mrf.mxu3 }
 0x39d   : > { %v1579_v51 = vadd.f32 %v1578_v14, %v1330_v35  ;;  %v5277_v35 = vor.u32 %v5784_v40, %v5276_v22  ;;  %v5278_v14 = vld [vmem:[%s8623_s3 + $0x78] sm:$0xf0]  ;;  %v5780_v22 = vld [vmem:[%s8623_s3 + $0x54] sm:$0xf0]  ;;  %v5779_v40 = vld [vmem:[%s8623_s3 + $0x54] sm:$0xf] }
 0x39f   : > { %2800 = vmatpush.bf16.msra.mxu0 %v5277_v35  ;;  %v5262_v35 = vld [vmem:[%s8623_s3 + $0x58] sm:$0xf0] }
 0x3a1   : > { %v1827_v49 = vpop.f32.mrf.mxu2 }
 0x3a2   : > { %v1828_v47 = vadd.f32 %v1827_v49, %v6195_v44  ;;  %v7306_v8 = vpop.f32.mrf.mxu0  ;;  %v5269_v49 = vor.u32 %v5782_v37, %v5268_v32  ;;  %v5265_v32 = vor.u32 %v5779_v40, %v5262_v35  ;;  %v5776_v35 = vld [vmem:[%s8623_s3 + $0x34] sm:$0xf0] }
 0x3a3   : > { %8673 = vst [vmem:[#allocation25_spill] sm:$0xff] %v7306_v8 }
 0x3a4   : > { %v2077_v57 = vadd.f32 %v2076_v55, %v1828_v47  ;;  %v5270_v55 = vld [vmem:[%s8623_s3 + $0x68] sm:$0xf0]  ;;  %2801 = vmatpush.bf16.msra.mxu0 %v5269_v49 }
 0x3a6   : > { %v2175_v16 = vmax.f32 %v1579_v51, %v2077_v57  ;;  %v5281_v51 = vor.u32 %v5783_v12, %v5278_v14  ;;  %v1095_v14 = vadd.f32 %v6115_v38, %v6186_v30  ;;  %v5778_v38 = vld [vmem:[%s8623_s3 + $0x44] sm:$0xf0] }
 0x3a8   : > { %v7320_v18 = vmax.f32 %v2171_v41, %v2175_v16  ;;  %2889 = vmatpush.bf16.msra.mxu2 %v5281_v51  ;;  %v5781_v41 = vld [vmem:[%s8623_s3 + $0x64] sm:$0xf]  ;;  %v5260_v16 = vld [vmem:[%s8623_s3 + $0x50] sm:$0xf]  ;;  %v1593_v51 = vadd.f32 %v6121_v42, %v6195_v44 }
 0x3a9   : > { %v7322_v47 = vpop.f32.mrf.mxu2  ;;  %v5273_v57 = vor.u32 %v5781_v41, %v5270_v55  ;;  %v5261_v12 = vor.u32 %v5780_v22, %v5260_v16  ;;  %v5777_v42 = vld [vmem:[%s8623_s3 + $0x44] sm:$0xf] }
 0x3aa   : > { %8674 = vst [vmem:[#allocation26_spill] sm:$0xff] %v7320_v18  ;;  %v1343_v50 = vpop.f32.mrf.mxu0 }
 0x3ab   : > { %8675 = vst [vmem:[#allocation27_spill] sm:$0xff] %v7322_v47  ;;  %2802 = vmatpush.bf16.msra.mxu0 %v5261_v12  ;;  %v7352_v49 = vadd.f32 %v1343_v50, %v1095_v14  ;;  %v5254_v50 = vld [vmem:[%s8623_s3 + $0x48] sm:$0xf0]  ;;  %v5244_v12 = vld [vmem:[%s8623_s3 + $0x30] sm:$0xf] }
 0x3ac   : > { %2890 = vmatpush.bf16.msra.mxu2 %v5273_v57  ;;  %v5252_v57 = vld [vmem:[%s8623_s3 + $0x40] sm:$0xf]  ;;  %v5257_v40 = vor.u32 %v5777_v42, %v5254_v50  ;;  %v5775_v14 = vld [vmem:[%s8623_s3 + $0x34] sm:$0xf] }
 0x3ad   : > { %v5253_v16 = vor.u32 %v5778_v38, %v5252_v57  ;;  %v1595_v57 = vadd.f32 %v6127_v46, %v6195_v44  ;;  %v8691_v47 = vld [vmem:[#allocation8_spill] sm:$0xff] }
 0x3af   : > { %2803 = vmatpush.bf16.msra.mxu0 %v5253_v16 }
 0x3b0   : > { %2891 = vmatpush.bf16.msra.mxu2 %v5265_v32  ;;  %v5246_v32 = vld [vmem:[%s8623_s3 + $0x38] sm:$0xf0] }
 0x3b1   : > { %v1841_v37 = vpop.f32.mrf.mxu2  ;;  %v5249_v38 = vor.u32 %v5775_v14, %v5246_v32  ;;  %v5228_v32 = vld [vmem:[%s8623_s3 + $0x10] sm:$0xf] }
 0x3b2   : > { %v7354_v41 = vadd.f32 %v1841_v37, %v1593_v51  ;;  %v1345_v55 = vpop.f32.mrf.mxu0  ;;  %v5245_v51 = vor.u32 %v5776_v35, %v5244_v12  ;;  %v1097_v37 = vadd.f32 %v6123_v43, %v6186_v30  ;;  %v5236_v12 = vld [vmem:[%s8623_s3 + $0x20] sm:$0xf]  ;;  %v5774_v35 = vld [vmem:[%s8623_s3 + $0x24] sm:$0xf0]  ;;  %v5773_v43 = vld [vmem:[%s8623_s3 + $0x24] sm:$0xf] }
 0x3b3   : > { %v5237_v46 = vor.u32 %v5774_v35, %v5236_v12 }
 0x3b4   : > { %2892 = vmatpush.bf16.msra.mxu2 %v5257_v40  ;;  %2804 = vmatpush.bf16.msra.mxu0 %v5245_v51  ;;  %v1346_v42 = vadd.f32 %v1345_v55, %v1097_v37  ;;  %v5238_v55 = vld [vmem:[%s8623_s3 + $0x28] sm:$0xf0]  ;;  %v5772_v37 = vld [vmem:[%s8623_s3 + $0x14] sm:$0xf0] }
 0x3b5   : > { %v5241_v51 = vor.u32 %v5773_v43, %v5238_v55 }
 0x3b8   : > { %2893 = vmatpush.bf16.msra.mxu2 %v5249_v38  ;;  %2805 = vmatpush.bf16.msra.mxu0 %v5237_v46  ;;  %v5229_v38 = vor.u32 %v5772_v37, %v5228_v32  ;;  %v5770_v32 = vld [vmem:[%s8623_s3 + $0x4] sm:$0xf0] }
 0x3b9   : > { %v1843_v16 = vpop.f32.mrf.mxu2 }
 0x3ba   : > { %v1844_v50 = vadd.f32 %v1843_v16, %v1595_v57  ;;  %v1348_v40 = vpop.f32.mrf.mxu0  ;;  %v5771_v57 = vld [vmem:[%s8623_s3 + $0x14] sm:$0xf]  ;;  %v5230_v16 = vld [vmem:[%s8623_s3 + $0x18] sm:$0xf0] }
 0x3bb   : > { %v5233_v12 = vor.u32 %v5771_v57, %v5230_v16  ;;  %v1600_v16 = vadd.f32 %v6141_v56, %v6195_v44 }
 0x3bc   : > { %v2082_v14 = vmax.f32 %v1346_v42, %v1844_v50  ;;  %2894 = vmatpush.bf16.msra.mxu2 %v5241_v51  ;;  %v1100_v42 = vadd.f32 %v6129_v48, %v6186_v30  ;;  %v1598_v50 = vadd.f32 %v6135_v52, %v6195_v44  ;;  %2806 = vmatpush.bf16.msra.mxu0 %v5229_v38  ;;  %v5220_v51 = vld [vmem:[%s8623_s3] sm:$0xf]  ;;  %v5769_v48 = vld [vmem:[%s8623_s3 + $0x4] sm:$0xf] }
 0x3bd   : > { %v5221_v52 = vor.u32 %v5770_v32, %v5220_v51  ;;  %v1102_v38 = vadd.f32 %v6137_v53, %v6186_v30  ;;  %v1105_v51 = vadd.f32 %v6143_v58, %v6186_v30  ;;  %v8676_v53 = vmax.f32 %v7352_v49, %v7354_v41 }
 0x3be   : > { %v1349_v43 = vadd.f32 %v1348_v40, %v1100_v42  ;;  %v5222_v40 = vld [vmem:[%s8623_s3 + $0x8] sm:$0xf0]  ;;  %v1608_v49 = vadd.f32 %v6163_v9, %v6195_v44 }
 0x3bf   : > { %v5225_v57 = vor.u32 %v5769_v48, %v5222_v40 }
 0x3c0   : > { %2895 = vmatpush.bf16.msra.mxu2 %v5233_v12  ;;  %2807 = vmatpush.bf16.msra.mxu0 %v5221_v52 }
 0x3c1   : > { %v1846_v35 = vpop.f32.mrf.mxu2 }
 0x3c2   : > { %v1847_v46 = vadd.f32 %v1846_v35, %v1598_v50  ;;  %v1350_v55 = vpop.f32.mrf.mxu0 }
 0x3c3   : > { %v1351_v50 = vadd.f32 %v1350_v55, %v1102_v38  ;;  %v1107_v55 = vadd.f32 %v6151_v63, %v6186_v30 }
 0x3c4   : > { %v2083_v37 = vmax.f32 %v1349_v43, %v1847_v46  ;;  %2896 = vmatpush.bf16.msra.mxu2 %v5225_v57  ;;  %v1603_v43 = vadd.f32 %v6149_v62, %v6195_v44  ;;  %v1605_v57 = vadd.f32 %v6155_v2, %v6195_v44 }
 0x3c9   : > { %v1848_v42 = vpop.f32.mrf.mxu2 }
 0x3ca   : > { %v1849_v12 = vadd.f32 %v1848_v42, %v1600_v16  ;;  %v1353_v35 = vpop.f32.mrf.mxu0 }
 0x3cb   : > { %v1354_v32 = vadd.f32 %v1353_v35, %v1105_v51  ;;  %v1110_v35 = vadd.f32 %v6157_v4, %v6186_v30  ;;  %v1610_v4 = vadd.f32 %v6169_v15, %v6195_v44  ;;  %v5816_v15 = vld [vmem:[%s8623_s3 + $0x174] sm:$0xf0] }
 0x3cc   : > { %v2084_v22 = vmax.f32 %v1351_v50, %v1849_v12 }
 0x3d1   : > { %v1851_v46 = vpop.f32.mrf.mxu2 }
 0x3d2   : > { %v1852_v48 = vadd.f32 %v1851_v46, %v1603_v43  ;;  %v1355_v52 = vpop.f32.mrf.mxu0 }
 0x3d3   : > { %v1356_v58 = vadd.f32 %v1355_v52, %v1107_v55  ;;  %v5815_v55 = vld [vmem:[%s8623_s3 + $0x174] sm:$0xf] }
 0x3d4   : > { %v2085_v40 = vmax.f32 %v1354_v32, %v1852_v48 }
 0x3d6   : > { %v2177_v56 = vmax.f32 %v8676_v53, %v2085_v40 }
 0x3d8   : > { %v2225_v62 = vmax.f32 %v2177_v56, 0.0 }
 0x3d9   : > { %v1853_v38 = vpop.f32.mrf.mxu2 }
 0x3da   : > { %v1854_v16 = vadd.f32 %v1853_v38, %v1605_v57  ;;  %v1358_v42 = vpop.f32.mrf.mxu0  ;;  %v2273_v41 = vpack.c.bf16 %v2225_v62, %v2225_v62  ;;  %v5358_v57 = vld [vmem:[%s8623_s3 + $0x178] sm:$0xf0] }
 0x3db   : > { %v1359_v46 = vadd.f32 %v1358_v42, %v1110_v35  ;;  %v1115_v35 = vadd.f32 %v6171_v17, %v6186_v30  ;;  %v1117_v17 = vadd.f32 %v6179_v24, %v6186_v30 }
 0x3dc   : > { %v2086_v50 = vmax.f32 %v1356_v58, %v1854_v16  ;;  %v2712_v48 = vunpack.c.l.b16 %v2273_v41  ;;  %v5361_v58 = vor.u32 %v5815_v55, %v5358_v57 }
 0x3de   : > { %v2178_v12 = vmax.f32 %v2082_v14, %v2086_v50  ;;  %v1112_v14 = vadd.f32 %v6165_v10, %v6186_v30  ;;  %3176 = vmatpush.bf16.msra.mxu3 %v5361_v58 }
 0x3e0   : > { %v2226_v51 = vmax.f32 %v2178_v12, 0.0 }
 0x3e1   : > { %v1856_v43 = vpop.f32.mrf.mxu2 }
 0x3e2   : > { %v2274_v63 = vpack.c.bf16 %v2226_v51, %v2226_v51  ;;  %v1857_v32 = vadd.f32 %v1856_v43, %v1608_v49  ;;  %v1360_v2 = vpop.f32.mrf.mxu0  ;;  %v1613_v49 = vadd.f32 %v6177_v23, %v6195_v44  ;;  %v1615_v23 = vadd.f32 %v6188_v31, %v6195_v44  ;;  %v5813_v31 = vld [vmem:[%s8623_s3 + $0x164] sm:$0xf] }
 0x3e3   : > { %v1361_v38 = vadd.f32 %v1360_v2, %v1112_v14 }
 0x3e4   : > { %v2713_v52 = vunpack.c.l.b16 %v2274_v63  ;;  %v2087_v40 = vmax.f32 %v1359_v46, %v1857_v32 }
 0x3e6   : > { %v2716_v53 = vpack.c.b16 %v2713_v52, %v2712_v48  ;;  %v2179_v56 = vmax.f32 %v2083_v37, %v2087_v40  ;;  %v5356_v37 = vld [vmem:[%s8623_s3 + $0x170] sm:$0xf]  ;;  %v8677_v40 = vmax.f32 %v6213_v11, %v6225_v28 }
 0x3e7   : > { %v5357_v16 = vor.u32 %v5816_v15, %v5356_v37  ;;  %v8678_v37 = vmax.f32 %v6227_v29, %v6237_v25  ;;  %v5348_v29 = vld [vmem:[%s8623_s3 + $0x160] sm:$0xf] }
 0x3e8   : > { %2808 = vmatmul.bf16.vlgmr.msra.gmra.mxu0 %v2716_v53  ;;  %2897 = vmatmul.bf16.vlgmr.msra.gmra.mxu2 %v2716_v53  ;;  %v2227_v42 = vmax.f32 %v2179_v56, 0.0 }
 0x3e9   : > { %v1858_v9 = vpop.f32.mrf.mxu2  ;;  %3087 = vmatpush.bf16.msra.mxu1 %v5357_v16  ;;  %v5350_v16 = vld [vmem:[%s8623_s3 + $0x168] sm:$0xf0] }
 0x3ea   : > { %v1859_v10 = vadd.f32 %v1858_v9, %v1610_v4  ;;  %v1363_v50 = vpop.f32.mrf.mxu0  ;;  %v2275_v41 = vpack.c.bf16 %v2227_v42, %v2227_v42  ;;  %v5353_v25 = vor.u32 %v5813_v31, %v5350_v16  ;;  %v5814_v42 = vld [vmem:[%s8623_s3 + $0x164] sm:$0xf0]  ;;  %v8683_v31 = vld [vmem:[#allocation4_spill] sm:$0xff]  ;;  %v5805_v16 = vld [vmem:[%s8623_s3 + $0x124] sm:$0xf] }
 0x3eb   : > { %v1364_v63 = vadd.f32 %v1363_v50, %v1115_v35  ;;  %v5811_v50 = vld [vmem:[%s8623_s3 + $0x154] sm:$0xf] }
 0x3ec   : > { %v2088_v62 = vmax.f32 %v1361_v38, %v1859_v10  ;;  %v2714_v48 = vunpack.c.l.b16 %v2275_v41  ;;  %3177 = vmatpush.bf16.msra.mxu3 %v5353_v25 }
 0x3ee   : > { %v2180_v12 = vmax.f32 %v2084_v22, %v2088_v62  ;;  %v5349_v62 = vor.u32 %v5814_v42, %v5348_v29  ;;  %v5318_v29 = vld [vmem:[%s8623_s3 + $0x128] sm:$0xf0] }
 0x3ef   : > { %v5321_v25 = vor.u32 %v5805_v16, %v5318_v29 }
 0x3f0   : > { %v2228_v51 = vmax.f32 %v2180_v12, 0.0  ;;  %3088 = vmatpush.bf16.msra.mxu1 %v5349_v62  ;;  %v5342_v12 = vld [vmem:[%s8623_s3 + $0x158] sm:$0xf0] }
 0x3f1   : > { %v1861_v43 = vpop.f32.mrf.mxu2  ;;  %v5345_v35 = vor.u32 %v5811_v50, %v5342_v12 }
 0x3f2   : > { %v1862_v46 = vadd.f32 %v1861_v43, %v1613_v49  ;;  %v2276_v32 = vpack.c.bf16 %v2228_v51, %v2228_v51  ;;  %v1365_v56 = vpop.f32.mrf.mxu0  ;;  %v5812_v49 = vld [vmem:[%s8623_s3 + $0x154] sm:$0xf0]  ;;  %v5809_v51 = vld [vmem:[%s8623_s3 + $0x144] sm:$0xf]  ;;  %v5334_v43 = vld [vmem:[%s8623_s3 + $0x148] sm:$0xf0] }
 0x3f3   : > { %v1366_v4 = vadd.f32 %v1365_v56, %v1117_v17  ;;  %3178 = vmatpush.bf16.msra.mxu3 %v5345_v35 }
 0x3f4   : > { %v2089_v2 = vmax.f32 %v1364_v63, %v1862_v46  ;;  %v2715_v52 = vunpack.c.l.b16 %v2276_v32  ;;  %v5337_v63 = vor.u32 %v5809_v51, %v5334_v43  ;;  %v5332_v46 = vld [vmem:[%s8623_s3 + $0x140] sm:$0xf]  ;;  %v5810_v32 = vld [vmem:[%s8623_s3 + $0x144] sm:$0xf0] }
 0x3f6   : > { %v2181_v53 = vmax.f32 %v2089_v2, %v8677_v40  ;;  %v2717_v22 = vpack.c.b16 %v2715_v52, %v2714_v48  ;;  %v5333_v2 = vor.u32 %v5810_v32, %v5332_v46  ;;  %v8679_v52 = vld [vmem:[#allocation2_spill] sm:$0xff]  ;;  %v5807_v40 = vld [vmem:[%s8623_s3 + $0x134] sm:$0xf] }
 0x3f7   : > { %3179 = vmatpush.bf16.msra.mxu3 %v5337_v63 }
 0x3f8   : > { %2813 = vmatmul.bf16.gmra.mxu0 %v2717_v22  ;;  %2902 = vmatmul.bf16.gmra.mxu2 %v2717_v22  ;;  %v2229_v55 = vmax.f32 %v2181_v53, 0.0  ;;  %v5326_v53 = vld [vmem:[%s8623_s3 + $0x138] sm:$0xf0] }
 0x3f9   : > { %v1863_v14 = vpop.f32.mrf.mxu2  ;;  %v5329_v22 = vor.u32 %v5807_v40, %v5326_v53  ;;  %v8684_v40 = vld [vmem:[#allocation5_spill] sm:$0xff] }
 0x3fa   : > { %v1864_v9 = vadd.f32 %v1863_v14, %v1615_v23  ;;  %v2277_v28 = vpack.c.bf16 %v2229_v55, %v2229_v55  ;;  %v5324_v23 = vld [vmem:[%s8623_s3 + $0x130] sm:$0xf]  ;;  %v5808_v14 = vld [vmem:[%s8623_s3 + $0x134] sm:$0xf0] }
 0x3fb   : > { %3180 = vmatpush.bf16.msra.mxu3 %v5329_v22 }
 0x3fc   : > { %v2090_v57 = vmax.f32 %v1366_v4, %v1864_v9  ;;  %v2386_v58 = vunpack.c.l.b16 %v2277_v28  ;;  %v5325_v4 = vor.u32 %v5808_v14, %v5324_v23 }
 0x3fe   : > { %v2182_v11 = vmax.f32 %v2090_v57, %v8678_v37  ;;  %v8680_v57 = vld [vmem:[#allocation3_spill] sm:$0xff] }
 0x3ff   : > { %3181 = vmatpush.bf16.msra.mxu3 %v5321_v25  ;;  %v8685_v25 = vld [vmem:[#allocation6_spill] sm:$0xff] }
 0x400   : > { %v2230_v38 = vmax.f32 %v2182_v11, 0.0  ;;  %v7551_v11 = vpop.f32.mrf.mxu1 }
 0x401   : > { %8681 = vst [vmem:[#allocation2_spill] sm:$0xff] %v7551_v11 }
 0x402   : > { %v2278_v10 = vpack.c.bf16 %v2230_v38, %v2230_v38  ;;  %v7553_v38 = vpop.f32.mrf.mxu3 }
 0x403   : > { %8682 = vst [vmem:[#allocation3_spill] sm:$0xff] %v7553_v38  ;;  %v5388_v38 = vld [vmem:[%s8623_s3 + $0x190] sm:$0xf] }
 0x404   : > { %v2387_v15 = vunpack.c.l.b16 %v2278_v10 }
 0x406   : > { %v2418_v24 = vpack.c.b16 %v2387_v15, %v2386_v58 }
 0x408   : > { %2538 = vmatmul.bf16.vlgmr.msrb.gmra.mxu1 %v2418_v24  ;;  %2627 = vmatmul.bf16.vlgmr.msrb.gmra.mxu3 %v2418_v24 }
 0x409   : > { %2818 = vmatmul.bf16.gmra.mxu0 %v2418_v24  ;;  %2907 = vmatmul.bf16.gmra.mxu2 %v2418_v24 }
 0x418   : > { %2543 = vmatmul.bf16.gmra.mxu1 %v6282_v19  ;;  %2632 = vmatmul.bf16.gmra.mxu3 %v6282_v19 }
 0x419   : > { %2823 = vmatmul.bf16.gmra.mxu0 %v6282_v19  ;;  %2912 = vmatmul.bf16.gmra.mxu2 %v6282_v19  ;;  %v5340_v19 = vld [vmem:[%s8623_s3 + $0x150] sm:$0xf] }
 0x41a   : > { %v5341_v41 = vor.u32 %v5812_v49, %v5340_v19  ;;  %v5316_v49 = vld [vmem:[%s8623_s3 + $0x120] sm:$0xf] }
 0x41c   : > { %3089 = vmatpush.bf16.msra.mxu1 %v5341_v41  ;;  %v5806_v41 = vld [vmem:[%s8623_s3 + $0x124] sm:$0xf0] }
 0x41d   : > { %v5317_v51 = vor.u32 %v5806_v41, %v5316_v49  ;;  %v5310_v49 = vld [vmem:[%s8623_s3 + $0x118] sm:$0xf0] }
 0x420   : > { %3090 = vmatpush.bf16.msra.mxu1 %v5333_v2 }
 0x424   : > { %3091 = vmatpush.bf16.msra.mxu1 %v5325_v4 }
 0x428   : > { %2548 = vmatmul.bf16.gmra.mxu1 %v6384_v36  ;;  %2637 = vmatmul.bf16.gmra.mxu3 %v6384_v36 }
 0x429   : > { %2828 = vmatmul.bf16.gmra.mxu0 %v6384_v36  ;;  %2917 = vmatmul.bf16.gmra.mxu2 %v6384_v36 }
 0x42a   : > { %3092 = vmatpush.bf16.msra.mxu1 %v5317_v51 }
 0x438   : > { %2553 = vmatmul.bf16.gmra.mxu1 %v6416_v1  ;;  %2642 = vmatmul.bf16.gmra.mxu3 %v6416_v1 }
 0x439   : > { %2833 = vmatmul.bf16.gmra.mxu0 %v6416_v1  ;;  %2922 = vmatmul.bf16.gmra.mxu2 %v6416_v1 }
 0x448   : > { %2558 = vmatmul.bf16.gmra.mxu1 %v6512_v20  ;;  %2647 = vmatmul.bf16.gmra.mxu3 %v6512_v20 }
 0x449   : > { %2838 = vmatmul.bf16.gmra.mxu0 %v6512_v20  ;;  %2927 = vmatmul.bf16.gmra.mxu2 %v6512_v20 }
 0x458   : > { %2563 = vmatmul.bf16.gmra.mxu1 %v6544_v34  ;;  %2652 = vmatmul.bf16.gmra.mxu3 %v6544_v34 }
 0x459   : > { %2843 = vmatmul.bf16.gmra.mxu0 %v6544_v34  ;;  %2932 = vmatmul.bf16.gmra.mxu2 %v6544_v34 }
 0x465   : > { %v2809_v48 = vpop.f32.mrf.mxu0 }
 0x468   : > { %2568 = vmatmul.bf16.gmra.mxu1 %v8679_v52  ;;  %2657 = vmatmul.bf16.gmra.mxu3 %v8679_v52 }
 0x469   : > { %2848 = vmatmul.bf16.gmra.mxu0 %v8679_v52  ;;  %2937 = vmatmul.bf16.gmra.mxu2 %v8679_v52 }
 0x46b   : > { %v2898_v56 = vpop.f32.mrf.mxu2 }
 0x46d   : > { %v2811_v17 = vpop.f32.mrf.mxu0 }
 0x473   : > { %v2900_v9 = vpop.f32.mrf.mxu2 }
 0x475   : > { %v2814_v55 = vpop.f32.mrf.mxu0 }
 0x478   : > { %2573 = vmatmul.bf16.gmra.mxu1 %v8680_v57  ;;  %2662 = vmatmul.bf16.gmra.mxu3 %v8680_v57 }
 0x479   : > { %2853 = vmatmul.bf16.gmra.mxu0 %v8680_v57  ;;  %2942 = vmatmul.bf16.gmra.mxu2 %v8680_v57 }
 0x47b   : > { %v2903_v37 = vpop.f32.mrf.mxu2 }
 0x47d   : > { %v2816_v28 = vpop.f32.mrf.mxu0 }
 0x483   : > { %v2905_v10 = vpop.f32.mrf.mxu2 }
 0x485   : > { %v2539_v58 = vpop.f32.mrf.mxu1 }
 0x486   : > { %v7555_v15 = vadd.f32 %v2809_v48, %v2539_v58  ;;  %v2819_v24 = vpop.f32.mrf.mxu0 }
 0x488   : > { %2578 = vmatmul.bf16.gmra.mxu1 %v8683_v31  ;;  %2667 = vmatmul.bf16.gmra.mxu3 %v8683_v31 }
 0x489   : > { %2858 = vmatmul.bf16.gmra.mxu0 %v8683_v31  ;;  %2947 = vmatmul.bf16.gmra.mxu2 %v8683_v31 }
 0x48b   : > { %v2628_v42 = vpop.f32.mrf.mxu3 }
 0x48c   : > { %v7567_v62 = vadd.f32 %v2898_v56, %v2628_v42  ;;  %v2908_v50 = vpop.f32.mrf.mxu2  ;;  %v5438_v42 = vld [vmem:[%s8623_s3 + $0x1f8] sm:$0xf0] }
 0x48d   : > { %v2541_v12 = vpop.f32.mrf.mxu1 }
 0x48e   : > { %v7569_v19 = vadd.f32 %v2811_v17, %v2541_v12  ;;  %v2821_v35 = vpop.f32.mrf.mxu0  ;;  %v5803_v12 = vld [vmem:[%s8623_s3 + $0x114] sm:$0xf] }
 0x48f   : > { %v5313_v51 = vor.u32 %v5803_v12, %v5310_v49  ;;  %v5804_v49 = vld [vmem:[%s8623_s3 + $0x114] sm:$0xf0] }
 0x491   : > { %3182 = vmatpush.bf16.msra.mxu3 %v5313_v51 }
 0x493   : > { %v2630_v43 = vpop.f32.mrf.mxu3 }
 0x494   : > { %v7577_v63 = vadd.f32 %v2900_v9, %v2630_v43  ;;  %v7579_v46 = vpop.f32.mrf.mxu2 }
 0x495   : > { %v2544_v32 = vpop.f32.mrf.mxu1 }
 0x496   : > { %v7581_v2 = vadd.f32 %v2814_v55, %v2544_v32  ;;  %v7583_v48 = vpop.f32.mrf.mxu0  ;;  %v5428_v32 = vld [vmem:[%s8623_s3 + $0x1e0] sm:$0xf] }
 0x498   : > { %2583 = vmatmul.bf16.gmra.mxu1 %v8684_v40  ;;  %2672 = vmatmul.bf16.gmra.mxu3 %v8684_v40 }
 0x499   : > { %2863 = vmatmul.bf16.gmra.mxu0 %v8684_v40  ;;  %2952 = vmatmul.bf16.gmra.mxu2 %v8684_v40 }
 0x49b   : > { %v2633_v53 = vpop.f32.mrf.mxu3 }
 0x49c   : > { %v7589_v22 = vadd.f32 %v2903_v37, %v2633_v53  ;;  %v7591_v56 = vpop.f32.mrf.mxu2  ;;  %v5436_v37 = vld [vmem:[%s8623_s3 + $0x1f0] sm:$0xf]  ;;  %v5830_v53 = vld [vmem:[%s8623_s3 + $0x1e4] sm:$0xf0] }
 0x49d   : > { %v2546_v17 = vpop.f32.mrf.mxu1 }
 0x49e   : > { %v7593_v23 = vadd.f32 %v2816_v28, %v2546_v17  ;;  %v7595_v14 = vpop.f32.mrf.mxu0  ;;  %v5832_v28 = vld [vmem:[%s8623_s3 + $0x1f4] sm:$0xf0]  ;;  %v5829_v17 = vld [vmem:[%s8623_s3 + $0x1e4] sm:$0xf] }
 0x4a3   : > { %v2635_v4 = vpop.f32.mrf.mxu3 }
 0x4a4   : > { %v7597_v9 = vadd.f32 %v2905_v10, %v2635_v4  ;;  %v7599_v55 = vpop.f32.mrf.mxu2  ;;  %v5831_v10 = vld [vmem:[%s8623_s3 + $0x1f4] sm:$0xf] }
 0x4a5   : > { %v2549_v58 = vpop.f32.mrf.mxu1  ;;  %v5441_v41 = vor.u32 %v5831_v10, %v5438_v42 }
 0x4a6   : > { %v7601_v16 = vadd.f32 %v2819_v24, %v2549_v58  ;;  %v7603_v29 = vpop.f32.mrf.mxu0  ;;  %v5437_v24 = vor.u32 %v5832_v28, %v5436_v37  ;;  %v5429_v37 = vor.u32 %v5830_v53, %v5428_v32  ;;  %v5430_v28 = vld [vmem:[%s8623_s3 + $0x1e8] sm:$0xf0]  ;;  %v5422_v32 = vld [vmem:[%s8623_s3 + $0x1d8] sm:$0xf0] }
 0x4a7   : > { %3527 = vmatpush.bf16.msrb.mxu2 %v5441_v41  ;;  %v5420_v41 = vld [vmem:[%s8623_s3 + $0x1d0] sm:$0xf] }
 0x4a8   : > { %2588 = vmatmul.bf16.gmra.mxu1 %v8685_v25  ;;  %2677 = vmatmul.bf16.gmra.mxu3 %v8685_v25 }
 0x4a9   : > { %2868 = vmatmul.bf16.gmra.mxu0 %v8685_v25  ;;  %2957 = vmatmul.bf16.gmra.mxu2 %v8685_v25 }
 0x4aa   : > { %3438 = vmatpush.bf16.msrb.mxu0 %v5437_v24  ;;  %v5433_v24 = vor.u32 %v5829_v17, %v5430_v28  ;;  %v5412_v28 = vld [vmem:[%s8623_s3 + $0x1c0] sm:$0xf] }
 0x4ab   : > { %v2638_v43 = vpop.f32.mrf.mxu3 }
 0x4ac   : > { %v7636_v4 = vadd.f32 %v2908_v50, %v2638_v43  ;;  %v7638_v58 = vpop.f32.mrf.mxu2  ;;  %v5308_v50 = vld [vmem:[%s8623_s3 + $0x110] sm:$0xf]  ;;  %3528 = vmatpush.bf16.msrb.mxu2 %v5433_v24  ;;  %v5827_v43 = vld [vmem:[%s8623_s3 + $0x1d4] sm:$0xf]  ;;  %v5825_v24 = vld [vmem:[%s8623_s3 + $0x1c4] sm:$0xf] }
 0x4ad   : > { %v2551_v10 = vpop.f32.mrf.mxu1  ;;  %v5309_v51 = vor.u32 %v5804_v49, %v5308_v50  ;;  %v5425_v17 = vor.u32 %v5827_v43, %v5422_v32 }
 0x4ae   : > { %v7643_v42 = vadd.f32 %v2821_v35, %v2551_v10  ;;  %v7645_v12 = vpop.f32.mrf.mxu0  ;;  %3439 = vmatpush.bf16.msrb.mxu0 %v5429_v37  ;;  %v5828_v35 = vld [vmem:[%s8623_s3 + $0x1d4] sm:$0xf0]  ;;  %v5826_v10 = vld [vmem:[%s8623_s3 + $0x1c4] sm:$0xf0] }
 0x4af   : > { %v5421_v53 = vor.u32 %v5828_v35, %v5420_v41  ;;  %3093 = vmatpush.bf16.msra.mxu1 %v5309_v51  ;;  %v5413_v41 = vor.u32 %v5826_v10, %v5412_v28  ;;  %v5414_v51 = vld [vmem:[%s8623_s3 + $0x1c8] sm:$0xf0]  ;;  %v5406_v10 = vld [vmem:[%s8623_s3 + $0x1b8] sm:$0xf0] }
 0x4b0   : > { %3529 = vmatpush.bf16.msrb.mxu2 %v5425_v17  ;;  %v5417_v43 = vor.u32 %v5825_v24, %v5414_v51  ;;  %v5824_v17 = vld [vmem:[%s8623_s3 + $0x1b4] sm:$0xf0]  ;;  %v8686_v28 = vld [vmem:[#allocation7_spill] sm:$0xff]  ;;  %v5396_v51 = vld [vmem:[%s8623_s3 + $0x1a0] sm:$0xf] }
 0x4b2   : > { %3440 = vmatpush.bf16.msrb.mxu0 %v5421_v53 }
 0x4b3   : > { %v2640_v37 = vpop.f32.mrf.mxu3 }
 0x4b4   : > { %v7675_v50 = vadd.f32 %v7579_v46, %v2640_v37  ;;  %v7677_v49 = vpop.f32.mrf.mxu2  ;;  %3530 = vmatpush.bf16.msrb.mxu2 %v5417_v43  ;;  %v5404_v46 = vld [vmem:[%s8623_s3 + $0x1b0] sm:$0xf]  ;;  %v5823_v37 = vld [vmem:[%s8623_s3 + $0x1b4] sm:$0xf]  ;;  %v5821_v43 = vld [vmem:[%s8623_s3 + $0x1a4] sm:$0xf] }
 0x4b5   : > { %v2554_v35 = vpop.f32.mrf.mxu1  ;;  %v5409_v24 = vor.u32 %v5823_v37, %v5406_v10 }
 0x4b6   : > { %v7683_v32 = vadd.f32 %v7583_v48, %v2554_v35  ;;  %v7685_v53 = vpop.f32.mrf.mxu0  ;;  %3441 = vmatpush.bf16.msrb.mxu0 %v5413_v41  ;;  %v5405_v48 = vor.u32 %v5824_v17, %v5404_v46  ;;  %v5822_v35 = vld [vmem:[%s8623_s3 + $0x1a4] sm:$0xf0] }
 0x4b7   : > { %v5397_v37 = vor.u32 %v5822_v35, %v5396_v51 }
 0x4b8   : > { %2593 = vmatmul.bf16.gmra.mxu1 %v8686_v28  ;;  %2682 = vmatmul.bf16.gmra.mxu3 %v8686_v28 }
 0x4b9   : > { %2873 = vmatmul.bf16.gmra.mxu0 %v8686_v28  ;;  %2962 = vmatmul.bf16.gmra.mxu2 %v8686_v28 }
 0x4ba   : > { %3442 = vmatpush.bf16.msrb.mxu0 %v5405_v48  ;;  %3531 = vmatpush.bf16.msrb.mxu2 %v5409_v24  ;;  %v5398_v48 = vld [vmem:[%s8623_s3 + $0x1a8] sm:$0xf0] }
 0x4bb   : > { %v2643_v41 = vpop.f32.mrf.mxu3  ;;  %v5401_v24 = vor.u32 %v5821_v43, %v5398_v48  ;;  %v5818_v48 = vld [vmem:[%s8623_s3 + $0x184] sm:$0xf0] }
 0x4bc   : > { %v7713_v46 = vadd.f32 %v7591_v56, %v2643_v41  ;;  %v2923_v17 = vpop.f32.mrf.mxu2  ;;  %v5820_v56 = vld [vmem:[%s8623_s3 + $0x194] sm:$0xf0]  ;;  %v5819_v41 = vld [vmem:[%s8623_s3 + $0x194] sm:$0xf] }
 0x4bd   : > { %v2556_v10 = vpop.f32.mrf.mxu1  ;;  %v5389_v51 = vor.u32 %v5820_v56, %v5388_v38  ;;  %v5817_v38 = vld [vmem:[%s8623_s3 + $0x184] sm:$0xf] }
 0x4be   : > { %v7719_v18 = vadd.f32 %v7595_v14, %v2556_v10  ;;  %v2836_v11 = vpop.f32.mrf.mxu0  ;;  %3443 = vmatpush.bf16.msrb.mxu0 %v5397_v37  ;;  %3532 = vmatpush.bf16.msrb.mxu2 %v5401_v24  ;;  %v5390_v14 = vld [vmem:[%s8623_s3 + $0x198] sm:$0xf0]  ;;  %v5380_v37 = vld [vmem:[%s8623_s3 + $0x180] sm:$0xf] }
 0x4bf   : > { %v5393_v35 = vor.u32 %v5819_v41, %v5390_v14  ;;  %v5381_v56 = vor.u32 %v5818_v48, %v5380_v37  ;;  %v5382_v41 = vld [vmem:[%s8623_s3 + $0x188] sm:$0xf0] }
 0x4c0   : > { %v5385_v14 = vor.u32 %v5817_v38, %v5382_v41 }
 0x4c2   : > { %3444 = vmatpush.bf16.msrb.mxu0 %v5389_v51  ;;  %3533 = vmatpush.bf16.msrb.mxu2 %v5393_v35 }
 0x4c3   : > { %v2645_v43 = vpop.f32.mrf.mxu3 }
 0x4c4   : > { %v7743_v10 = vadd.f32 %v7599_v55, %v2645_v43  ;;  %v2925_v24 = vpop.f32.mrf.mxu2  ;;  %v5801_v55 = vld [vmem:[%s8623_s3 + $0x104] sm:$0xf]  ;;  %v5302_v43 = vld [vmem:[%s8623_s3 + $0x108] sm:$0xf0] }
 0x4c5   : > { %v2559_v51 = vpop.f32.mrf.mxu1 }
 0x4c6   : > { %v7749_v35 = vadd.f32 %v7603_v29, %v2559_v51  ;;  %v2839_v8 = vpop.f32.mrf.mxu0  ;;  %3445 = vmatpush.bf16.msrb.mxu0 %v5381_v56  ;;  %3534 = vmatpush.bf16.msrb.mxu2 %v5385_v14  ;;  %v5305_v29 = vor.u32 %v5801_v55, %v5302_v43  ;;  %v5300_v14 = vld [vmem:[%s8623_s3 + $0x100] sm:$0xf] }
 0x4c7   : > { %v5301_v55 = vor.u32 %v5802_v6, %v5300_v14 }
 0x4c8   : > { %2598 = vmatmul.bf16.gmra.mxu1 %v7000_v0  ;;  %2687 = vmatmul.bf16.gmra.mxu3 %v7000_v0 }
 0x4c9   : > { %2878 = vmatmul.bf16.gmra.mxu0 %v7000_v0  ;;  %2967 = vmatmul.bf16.gmra.mxu2 %v7000_v0 }
 0x4ca   : > { %3183 = vmatpush.bf16.msra.mxu3 %v5305_v29  ;;  %3094 = vmatpush.bf16.msra.mxu1 %v5301_v55 }
 0x4cb   : > { %v2648_v37 = vpop.f32.mrf.mxu3 }
 0x4cc   : > { %v7762_v48 = vadd.f32 %v7638_v58, %v2648_v37  ;;  %v2928_v38 = vpop.f32.mrf.mxu2 }
 0x4cd   : > { %v2561_v56 = vpop.f32.mrf.mxu1 }
 0x4ce   : > { %8687 = vst [vmem:[#allocation4_spill] sm:$0xff] %v7762_v48  ;;  %v7765_v41 = vadd.f32 %v7645_v12, %v2561_v56  ;;  %v2841_v51 = vpop.f32.mrf.mxu0 }
 0x4d0   : > { %8688 = vst [vmem:[#allocation5_spill] sm:$0xff] %v7765_v41 }
 0x4d3   : > { %v2650_v43 = vpop.f32.mrf.mxu3 }
 0x4d4   : > { %v7774_v58 = vadd.f32 %v7677_v49, %v2650_v43  ;;  %v2930_v29 = vpop.f32.mrf.mxu2 }
 0x4d5   : > { %v2564_v37 = vpop.f32.mrf.mxu1 }
 0x4d6   : > { %8689 = vst [vmem:[#allocation6_spill] sm:$0xff] %v7774_v58  ;;  %v7777_v12 = vadd.f32 %v7685_v53, %v2564_v37  ;;  %v2844_v56 = vpop.f32.mrf.mxu0 }
 0x4d8   : > { %8690 = vst [vmem:[#allocation7_spill] sm:$0xff] %v7777_v12  ;;  %2603 = vmatmul.bf16.gmra.mxu1 %v8691_v47  ;;  %2692 = vmatmul.bf16.gmra.mxu3 %v8691_v47 }
 0x4d9   : > { %2883 = vmatmul.bf16.gmra.mxu0 %v8691_v47  ;;  %2972 = vmatmul.bf16.gmra.mxu2 %v8691_v47 }
 0x4db   : > { %v2653_v6 = vpop.f32.mrf.mxu3 }
 0x4dc   : > { %v7783_v14 = vadd.f32 %v2923_v17, %v2653_v6  ;;  %v2933_v55 = vpop.f32.mrf.mxu2 }
 0x4dd   : > { %v2566_v49 = vpop.f32.mrf.mxu1 }
 0x4de   : > { %8692 = vst [vmem:[#allocation8_spill] sm:$0xff] %v7783_v14  ;;  %v7785_v43 = vadd.f32 %v2836_v11, %v2566_v49  ;;  %v2846_v61 = vpop.f32.mrf.mxu0  ;;  %v5847_v11 = vld [vmem:[%s8623_s3 + $0x274] sm:$0xf] }
 0x4e0   : > { %8693 = vst [vmem:[#allocation28_spill] sm:$0xff] %v7785_v43  ;;  %v5848_v43 = vld [vmem:[%s8623_s3 + $0x274] sm:$0xf0] }
 0x4e3   : > { %v2655_v33 = vpop.f32.mrf.mxu3 }
 0x4e4   : > { %v7787_v53 = vadd.f32 %v2925_v24, %v2655_v33  ;;  %v2935_v37 = vpop.f32.mrf.mxu2  ;;  %v5518_v33 = vld [vmem:[%s8623_s3 + $0x278] sm:$0xf0] }
 0x4e5   : > { %v2569_v12 = vpop.f32.mrf.mxu1  ;;  %v5521_v17 = vor.u32 %v5847_v11, %v5518_v33 }
 0x4e6   : > { %8694 = vst [vmem:[#allocation29_spill] sm:$0xff] %v7787_v53  ;;  %v7789_v58 = vadd.f32 %v2839_v8, %v2569_v12  ;;  %v2849_v41 = vpop.f32.mrf.mxu0  ;;  %v5516_v53 = vld [vmem:[%s8623_s3 + $0x270] sm:$0xf] }
 0x4e7   : > { %3878 = vmatpush.bf16.msrb.mxu3 %v5521_v17  ;;  %v5517_v14 = vor.u32 %v5848_v43, %v5516_v53 }
 0x4e8   : > { %8695 = vst [vmem:[#allocation30_spill] sm:$0xff] %v7789_v58  ;;  %2608 = vmatmul.bf16.gmra.mxu1 %v8696_v54  ;;  %2697 = vmatmul.bf16.gmra.mxu3 %v8696_v54 }
 0x4e9   : > { %3446 = vmatmul.bf16.vlgmr.msrb.gmra.mxu0 %v6512_v20  ;;  %3535 = vmatmul.bf16.vlgmr.msrb.gmra.mxu2 %v6512_v20 }
 0x4ea   : > { %3789 = vmatpush.bf16.msrb.mxu1 %v5517_v14 }
 0x4eb   : > { %v2658_v8 = vpop.f32.mrf.mxu3 }
 0x4ec   : > { %v7801_v24 = vadd.f32 %v2928_v38, %v2658_v8  ;;  %v2938_v12 = vpop.f32.mrf.mxu2 }
 0x4ed   : > { %v2571_v6 = vpop.f32.mrf.mxu1 }
 0x4ee   : > { %8697 = vst [vmem:[#allocation9_spill] sm:$0xff] %v7801_v24  ;;  %v7803_v49 = vadd.f32 %v2841_v51, %v2571_v6  ;;  %v2851_v58 = vpop.f32.mrf.mxu0  ;;  %v8701_v6 = vld [vmem:[#allocation10_spill] sm:$0xff] }
 0x4f0   : > { %8698 = vst [vmem:[#allocation31_spill] sm:$0xff] %v7803_v49 }
 0x4f3   : > { %v2660_v11 = vpop.f32.mrf.mxu3 }
 0x4f4   : > { %v7811_v33 = vadd.f32 %v2930_v29, %v2660_v11  ;;  %v2940_v38 = vpop.f32.mrf.mxu2 }
 0x4f5   : > { %v2574_v8 = vpop.f32.mrf.mxu1 }
 0x4f6   : > { %8699 = vst [vmem:[#allocation32_spill] sm:$0xff] %v7811_v33  ;;  %v7813_v17 = vadd.f32 %v2844_v56, %v2574_v8  ;;  %v2854_v51 = vpop.f32.mrf.mxu0 }
 0x4f8   : > { %8700 = vst [vmem:[#allocation33_spill] sm:$0xff] %v7813_v17  ;;  %2613 = vmatmul.bf16.gmra.mxu1 %v8701_v6  ;;  %2702 = vmatmul.bf16.gmra.mxu3 %v8701_v6 }
 0x4f9   : > { %3451 = vmatmul.bf16.gmra.mxu0 %v6544_v34  ;;  %3540 = vmatmul.bf16.gmra.mxu2 %v6544_v34 }
 0x4fb   : > { %v2663_v49 = vpop.f32.mrf.mxu3 }
 0x4fc   : > { %v7819_v24 = vadd.f32 %v2933_v55, %v2663_v49  ;;  %v2943_v14 = vpop.f32.mrf.mxu2  ;;  %v5510_v55 = vld [vmem:[%s8623_s3 + $0x268] sm:$0xf0] }
 0x4fd   : > { %v2576_v43 = vpop.f32.mrf.mxu1 }
 0x4fe   : > { %v7821_v29 = vadd.f32 %v2846_v61, %v2576_v43  ;;  %v2856_v53 = vpop.f32.mrf.mxu0  ;;  %v5845_v61 = vld [vmem:[%s8623_s3 + $0x264] sm:$0xf] }
 0x500   : > { %8702 = vst [vmem:[#allocation10_spill] sm:$0xff] %v7821_v29 }
 0x503   : > { %v2665_v11 = vpop.f32.mrf.mxu3 }
 0x504   : > { %v7823_v56 = vadd.f32 %v2935_v37, %v2665_v11  ;;  %v2945_v8 = vpop.f32.mrf.mxu2  ;;  %v5513_v37 = vor.u32 %v5845_v61, %v5510_v55 }
 0x505   : > { %v2579_v17 = vpop.f32.mrf.mxu1 }
 0x506   : > { %8703 = vst [vmem:[#allocation34_spill] sm:$0xff] %v7823_v56  ;;  %v7825_v33 = vadd.f32 %v2849_v41, %v2579_v17  ;;  %v2859_v48 = vpop.f32.mrf.mxu0  ;;  %3879 = vmatpush.bf16.msrb.mxu3 %v5513_v37  ;;  %v5846_v56 = vld [vmem:[%s8623_s3 + $0x264] sm:$0xf0] }
 0x508   : > { %8704 = vst [vmem:[#allocation35_spill] sm:$0xff] %v7825_v33  ;;  %3095 = vmatmul.bf16.vlgmr.msra.gmra.mxu1 %v6384_v36  ;;  %3184 = vmatmul.bf16.vlgmr.msra.gmra.mxu3 %v6384_v36  ;;  %v5508_v33 = vld [vmem:[%s8623_s3 + $0x260] sm:$0xf] }
 0x509   : > { %3456 = vmatmul.bf16.gmra.mxu0 %v8679_v52  ;;  %3545 = vmatmul.bf16.gmra.mxu2 %v8679_v52  ;;  %v5509_v29 = vor.u32 %v5846_v56, %v5508_v33 }
 0x50b   : > { %v2668_v41 = vpop.f32.mrf.mxu3  ;;  %3790 = vmatpush.bf16.msrb.mxu1 %v5509_v29 }
 0x50c   : > { %v7837_v49 = vadd.f32 %v2938_v12, %v2668_v41  ;;  %v2948_v17 = vpop.f32.mrf.mxu2 }
 0x50d   : > { %v2581_v43 = vpop.f32.mrf.mxu1 }
 0x50e   : > { %v7839_v36 = vadd.f32 %v2851_v58, %v2581_v43  ;;  %v2861_v11 = vpop.f32.mrf.mxu0 }
 0x510   : > { %8705 = vst [vmem:[#allocation36_spill] sm:$0xff] %v7839_v36 }
 0x513   : > { %v2670_v61 = vpop.f32.mrf.mxu3 }
 0x514   : > { %v7847_v55 = vadd.f32 %v2940_v38, %v2670_v61  ;;  %v2950_v12 = vpop.f32.mrf.mxu2 }
 0x515   : > { %v2584_v41 = vpop.f32.mrf.mxu1 }
 0x516   : > { %8706 = vst [vmem:[#allocation37_spill] sm:$0xff] %v7847_v55  ;;  %v7849_v37 = vadd.f32 %v2854_v51, %v2584_v41  ;;  %v2864_v58 = vpop.f32.mrf.mxu0 }
 0x518   : > { %8707 = vst [vmem:[#allocation38_spill] sm:$0xff] %v7849_v37  ;;  %3100 = vmatmul.bf16.gmra.mxu1 %v6416_v1  ;;  %3189 = vmatmul.bf16.gmra.mxu3 %v6416_v1 }
 0x519   : > { %3461 = vmatmul.bf16.gmra.mxu0 %v8680_v57  ;;  %3550 = vmatmul.bf16.gmra.mxu2 %v8680_v57 }
 0x51b   : > { %v2673_v43 = vpop.f32.mrf.mxu3 }
 0x51c   : > { %v7855_v36 = vadd.f32 %v2943_v14, %v2673_v43  ;;  %v2953_v33 = vpop.f32.mrf.mxu2  ;;  %v5843_v14 = vld [vmem:[%s8623_s3 + $0x254] sm:$0xf] }
 0x51d   : > { %v2586_v29 = vpop.f32.mrf.mxu1 }
 0x51e   : > { %v7857_v38 = vadd.f32 %v2856_v53, %v2586_v29  ;;  %v2866_v56 = vpop.f32.mrf.mxu0  ;;  %v5502_v53 = vld [vmem:[%s8623_s3 + $0x258] sm:$0xf0]  ;;  %v5500_v29 = vld [vmem:[%s8623_s3 + $0x250] sm:$0xf] }
 0x520   : > { %8708 = vst [vmem:[#allocation39_spill] sm:$0xff] %v7857_v38 }
 0x523   : > { %v2675_v61 = vpop.f32.mrf.mxu3 }
 0x524   : > { %v7859_v51 = vadd.f32 %v2945_v8, %v2675_v61  ;;  %v2955_v41 = vpop.f32.mrf.mxu2  ;;  %v5505_v8 = vor.u32 %v5843_v14, %v5502_v53  ;;  %v5844_v61 = vld [vmem:[%s8623_s3 + $0x254] sm:$0xf0] }
 0x525   : > { %v2589_v37 = vpop.f32.mrf.mxu1 }
 0x526   : > { %8709 = vst [vmem:[#allocation40_spill] sm:$0xff] %v7859_v51  ;;  %v7861_v55 = vadd.f32 %v2859_v48, %v2589_v37  ;;  %v2869_v1 = vpop.f32.mrf.mxu0  ;;  %3880 = vmatpush.bf16.msrb.mxu3 %v5505_v8  ;;  %v5501_v51 = vor.u32 %v5844_v61, %v5500_v29 }
 0x528   : > { %8710 = vst [vmem:[#allocation41_spill] sm:$0xff] %v7861_v55  ;;  %3105 = vmatmul.bf16.gmra.mxu1 %v6512_v20  ;;  %3194 = vmatmul.bf16.gmra.mxu3 %v6512_v20 }
 0x529   : > { %3466 = vmatmul.bf16.gmra.mxu0 %v8683_v31  ;;  %3555 = vmatmul.bf16.gmra.mxu2 %v8683_v31 }
 0x52a   : > { %3791 = vmatpush.bf16.msrb.mxu1 %v5501_v51 }
 0x52b   : > { %v2678_v48 = vpop.f32.mrf.mxu3 }
 0x52c   : > { %v7873_v37 = vadd.f32 %v2948_v17, %v2678_v48  ;;  %v2958_v55 = vpop.f32.mrf.mxu2 }
 0x52d   : > { %v2591_v43 = vpop.f32.mrf.mxu1 }
 0x52e   : > { %v7875_v20 = vadd.f32 %v2861_v11, %v2591_v43  ;;  %v2871_v38 = vpop.f32.mrf.mxu0 }
 0x533   : > { %v2680_v14 = vpop.f32.mrf.mxu3 }
 0x534   : > { %v7883_v53 = vadd.f32 %v2950_v12, %v2680_v14  ;;  %v2960_v11 = vpop.f32.mrf.mxu2 }
 0x535   : > { %v2594_v17 = vpop.f32.mrf.mxu1 }
 0x536   : > { %v7885_v8 = vadd.f32 %v2864_v58, %v2594_v17  ;;  %v2874_v51 = vpop.f32.mrf.mxu0 }
 0x538   : > { %8711 = vst [vmem:[#allocation42_spill] sm:$0xff] %v7885_v8  ;;  %3110 = vmatmul.bf16.gmra.mxu1 %v6544_v34  ;;  %3199 = vmatmul.bf16.gmra.mxu3 %v6544_v34 }
 0x539   : > { %3471 = vmatmul.bf16.gmra.mxu0 %v8684_v40  ;;  %3560 = vmatmul.bf16.gmra.mxu2 %v8684_v40 }
 0x53b   : > { %v2683_v48 = vpop.f32.mrf.mxu3 }
 0x53c   : > { %v7891_v43 = vadd.f32 %v2953_v33, %v2683_v48  ;;  %v2963_v12 = vpop.f32.mrf.mxu2  ;;  %v5841_v33 = vld [vmem:[%s8623_s3 + $0x244] sm:$0xf] }
 0x53d   : > { %v2596_v29 = vpop.f32.mrf.mxu1 }
 0x53e   : > { %8712 = vst [vmem:[#allocation43_spill] sm:$0xff] %v7891_v43  ;;  %v7893_v61 = vadd.f32 %v2866_v56, %v2596_v29  ;;  %v2876_v34 = vpop.f32.mrf.mxu0  ;;  %v5494_v56 = vld [vmem:[%s8623_s3 + $0x248] sm:$0xf0] }
 0x540   : > { %8713 = vst [vmem:[#allocation44_spill] sm:$0xff] %v7893_v61 }
 0x543   : > { %v2685_v14 = vpop.f32.mrf.mxu3 }
 0x544   : > { %v7895_v58 = vadd.f32 %v2955_v41, %v2685_v14  ;;  %v5497_v41 = vor.u32 %v5841_v33, %v5494_v56  ;;  %v2965_v29 = vpop.f32.mrf.mxu2 }
 0x545   : > { %v2599_v17 = vpop.f32.mrf.mxu1 }
 0x546   : > { %8714 = vst [vmem:[#allocation45_spill] sm:$0xff] %v7895_v58  ;;  %v7897_v8 = vadd.f32 %v2869_v1, %v2599_v17  ;;  %3881 = vmatpush.bf16.msrb.mxu3 %v5497_v41  ;;  %v5842_v58 = vld [vmem:[%s8623_s3 + $0x244] sm:$0xf0]  ;;  %v2879_v43 = vpop.f32.mrf.mxu0 }
 0x548   : > { %8715 = vst [vmem:[#allocation46_spill] sm:$0xff] %v7897_v8  ;;  %3115 = vmatmul.bf16.gmra.mxu1 %v8679_v52  ;;  %3204 = vmatmul.bf16.gmra.mxu3 %v8679_v52  ;;  %v5492_v8 = vld [vmem:[%s8623_s3 + $0x240] sm:$0xf] }
 0x549   : > { %3476 = vmatmul.bf16.gmra.mxu0 %v8685_v25  ;;  %3565 = vmatmul.bf16.gmra.mxu2 %v8685_v25  ;;  %v5493_v61 = vor.u32 %v5842_v58, %v5492_v8 }
 0x54b   : > { %v2688_v1 = vpop.f32.mrf.mxu3  ;;  %3792 = vmatpush.bf16.msrb.mxu1 %v5493_v61 }
 0x54c   : > { %v7909_v48 = vadd.f32 %v2958_v55, %v2688_v1  ;;  %v2968_v1 = vpop.f32.mrf.mxu2 }
 0x54d   : > { %v2601_v14 = vpop.f32.mrf.mxu1 }
 0x54e   : > { %v7911_v17 = vadd.f32 %v2871_v38, %v2601_v14  ;;  %v2881_v38 = vpop.f32.mrf.mxu0 }
 0x553   : > { %v2690_v33 = vpop.f32.mrf.mxu3 }
 0x554   : > { %v7919_v56 = vadd.f32 %v2960_v11, %v2690_v33  ;;  %v2970_v11 = vpop.f32.mrf.mxu2 }
 0x555   : > { %v2604_v55 = vpop.f32.mrf.mxu1 }
 0x556   : > { %8716 = vst [vmem:[#allocation47_spill] sm:$0xff] %v7919_v56  ;;  %v7921_v41 = vadd.f32 %v2874_v51, %v2604_v55  ;;  %v2884_v55 = vpop.f32.mrf.mxu0 }
 0x558   : > { %8717 = vst [vmem:[#allocation48_spill] sm:$0xff] %v7921_v41  ;;  %3120 = vmatmul.bf16.gmra.mxu1 %v8680_v57  ;;  %3209 = vmatmul.bf16.gmra.mxu3 %v8680_v57 }
 0x559   : > { %3481 = vmatmul.bf16.gmra.mxu0 %v8686_v28  ;;  %3570 = vmatmul.bf16.gmra.mxu2 %v8686_v28 }
 0x55b   : > { %v2693_v14 = vpop.f32.mrf.mxu3 }
 0x55c   : > { %v7927_v8 = vadd.f32 %v2963_v12, %v2693_v14  ;;  %v5839_v12 = vld [vmem:[%s8623_s3 + $0x234] sm:$0xf]  ;;  %v2973_v14 = vpop.f32.mrf.mxu2 }
 0x55d   : > { %v2606_v61 = vpop.f32.mrf.mxu1 }
 0x55e   : > { %8718 = vst [vmem:[#allocation49_spill] sm:$0xff] %v7927_v8  ;;  %v7929_v58 = vadd.f32 %v2876_v34, %v2606_v61  ;;  %v5486_v34 = vld [vmem:[%s8623_s3 + $0x238] sm:$0xf0] }
 0x560   : > { %8719 = vst [vmem:[#allocation50_spill] sm:$0xff] %v7929_v58  ;;  %v2886_v58 = vpop.f32.mrf.mxu0 }
 0x563   : > { %v2695_v33 = vpop.f32.mrf.mxu3 }
 0x564   : > { %v7931_v51 = vadd.f32 %v2965_v29, %v2695_v33  ;;  %v5489_v29 = vor.u32 %v5839_v12, %v5486_v34 }
 0x565   : > { %v2609_v41 = vpop.f32.mrf.mxu1 }
 0x566   : > { %8720 = vst [vmem:[#allocation51_spill] sm:$0xff] %v7931_v51  ;;  %v7933_v56 = vadd.f32 %v2879_v43, %v2609_v41  ;;  %3882 = vmatpush.bf16.msrb.mxu3 %v5489_v29  ;;  %v5840_v51 = vld [vmem:[%s8623_s3 + $0x234] sm:$0xf0] }
 0x568   : > { %8721 = vst [vmem:[#allocation52_spill] sm:$0xff] %v7933_v56  ;;  %3125 = vmatmul.bf16.gmra.mxu1 %v8683_v31  ;;  %3214 = vmatmul.bf16.gmra.mxu3 %v8683_v31  ;;  %v5484_v56 = vld [vmem:[%s8623_s3 + $0x230] sm:$0xf] }
 0x569   : > { %3486 = vmatmul.bf16.gmra.mxu0 %v7000_v0  ;;  %3575 = vmatmul.bf16.gmra.mxu2 %v7000_v0  ;;  %v5485_v8 = vor.u32 %v5840_v51, %v5484_v56 }
 0x56b   : > { %v2698_v43 = vpop.f32.mrf.mxu3  ;;  %3793 = vmatpush.bf16.msrb.mxu1 %v5485_v8 }
 0x56c   : > { %v7945_v41 = vadd.f32 %v2968_v1, %v2698_v43  ;;  %v2975_v1 = vpop.f32.mrf.mxu2 }
 0x56d   : > { %v2611_v61 = vpop.f32.mrf.mxu1 }
 0x56e   : > { %8722 = vst [vmem:[#allocation53_spill] sm:$0xff] %v7945_v41  ;;  %v7947_v33 = vadd.f32 %v2881_v38, %v2611_v61  ;;  %v3447_v38 = vpop.f32.mrf.mxu0 }
 0x570   : > { %8723 = vst [vmem:[#allocation54_spill] sm:$0xff] %v7947_v33 }
 0x573   : > { %v2700_v12 = vpop.f32.mrf.mxu3 }
 0x574   : > { %v7955_v34 = vadd.f32 %v2970_v11, %v2700_v12  ;;  %v3536_v11 = vpop.f32.mrf.mxu2 }
 0x575   : > { %v2614_v43 = vpop.f32.mrf.mxu1 }
 0x576   : > { %8724 = vst [vmem:[#allocation55_spill] sm:$0xff] %v7955_v34  ;;  %v7957_v29 = vadd.f32 %v2884_v55, %v2614_v43  ;;  %v3449_v51 = vpop.f32.mrf.mxu0 }
 0x578   : > { %8725 = vst [vmem:[#allocation56_spill] sm:$0xff] %v7957_v29  ;;  %3130 = vmatmul.bf16.gmra.mxu1 %v8684_v40  ;;  %3219 = vmatmul.bf16.gmra.mxu3 %v8684_v40 }
 0x579   : > { %3491 = vmatmul.bf16.gmra.mxu0 %v8691_v47  ;;  %3580 = vmatmul.bf16.gmra.mxu2 %v8691_v47 }
 0x57b   : > { %v2703_v61 = vpop.f32.mrf.mxu3 }
 0x57c   : > { %v7963_v33 = vadd.f32 %v2973_v14, %v2703_v61  ;;  %v3538_v41 = vpop.f32.mrf.mxu2  ;;  %v5478_v14 = vld [vmem:[%s8623_s3 + $0x228] sm:$0xf0] }
 0x57d   : > { %v2616_v56 = vpop.f32.mrf.mxu1 }
 0x57e   : > { %v7965_v8 = vadd.f32 %v2886_v58, %v2616_v56  ;;  %v5837_v58 = vld [vmem:[%s8623_s3 + $0x224] sm:$0xf] }
 0x580   : > { %8726 = vst [vmem:[#allocation57_spill] sm:$0xff] %v7965_v8 }
 0x583   : > { %v2705_v12 = vpop.f32.mrf.mxu3 }
 0x584   : > { %v7967_v55 = vadd.f32 %v2975_v1, %v2705_v12  ;;  %v5476_v12 = vld [vmem:[%s8623_s3 + $0x220] sm:$0xf] }
 0x585   : > { %v3096_v43 = vpop.f32.mrf.mxu1 }
 0x586   : > { %8727 = vst [vmem:[#allocation58_spill] sm:$0xff] %v7967_v55  ;;  %v3265_v29 = vadd.f32 %v3096_v43, %v7555_v15  ;;  %v5481_v15 = vor.u32 %v5837_v58, %v5478_v14  ;;  %v5838_v43 = vld [vmem:[%s8623_s3 + $0x224] sm:$0xf0] }
 0x587   : > { %v5477_v55 = vor.u32 %v5838_v43, %v5476_v12 }
 0x588   : > { %3135 = vmatmul.bf16.gmra.mxu1 %v8685_v25  ;;  %3224 = vmatmul.bf16.gmra.mxu3 %v8685_v25  ;;  %v7972_v34 = vadd.f32 %v3447_v38, %v3265_v29  ;;  %v3452_v29 = vpop.f32.mrf.mxu0 }
 0x589   : > { %3496 = vmatmul.bf16.gmra.mxu0 %v8696_v54  ;;  %3585 = vmatmul.bf16.gmra.mxu2 %v8696_v54 }
 0x58a   : > { %8728 = vst [vmem:[#allocation59_spill] sm:$0xff] %v7972_v34  ;;  %3883 = vmatpush.bf16.msrb.mxu3 %v5481_v15  ;;  %3794 = vmatpush.bf16.msrb.mxu1 %v5477_v55 }
 0x58b   : > { %v3185_v1 = vpop.f32.mrf.mxu3 }
 0x58c   : > { %v3266_v61 = vadd.f32 %v3185_v1, %v7567_v62  ;;  %v3541_v62 = vpop.f32.mrf.mxu2 }
 0x58d   : > { %v3098_v38 = vpop.f32.mrf.mxu1 }
 0x58e   : > { %v3267_v56 = vadd.f32 %v3098_v38, %v7569_v19  ;;  %v7990_v34 = vadd.f32 %v3536_v11, %v3266_v61 }
 0x590   : > { %v7992_v58 = vadd.f32 %v3449_v51, %v3267_v56  ;;  %v3454_v8 = vpop.f32.mrf.mxu0 }
 0x593   : > { %v3187_v14 = vpop.f32.mrf.mxu3 }
 0x594   : > { %v3268_v15 = vadd.f32 %v3187_v14, %v7577_v63  ;;  %v3543_v63 = vpop.f32.mrf.mxu2 }
 0x595   : > { %v3101_v1 = vpop.f32.mrf.mxu1 }
 0x596   : > { %v3269_v19 = vadd.f32 %v3101_v1, %v7581_v2  ;;  %v7996_v38 = vadd.f32 %v3538_v41, %v3268_v15 }
 0x598   : > { %3140 = vmatmul.bf16.gmra.mxu1 %v8686_v28  ;;  %3229 = vmatmul.bf16.gmra.mxu3 %v8686_v28  ;;  %v8000_v11 = vadd.f32 %v3452_v29, %v3269_v19  ;;  %v3457_v12 = vpop.f32.mrf.mxu0 }
 0x599   : > { %3501 = vmatmul.bf16.gmra.mxu0 %v8701_v6  ;;  %3590 = vmatmul.bf16.gmra.mxu2 %v8701_v6 }
 0x59b   : > { %v3190_v51 = vpop.f32.mrf.mxu3 }
 0x59c   : > { %v3270_v55 = vadd.f32 %v3190_v51, %v7589_v22  ;;  %v3546_v19 = vpop.f32.mrf.mxu2 }
 0x59d   : > { %v3103_v61 = vpop.f32.mrf.mxu1 }
 0x59e   : > { %v3271_v2 = vadd.f32 %v3103_v61, %v7593_v23  ;;  %v8006_v41 = vadd.f32 %v3541_v62, %v3270_v55  ;;  %v5835_v23 = vld [vmem:[%s8623_s3 + $0x214] sm:$0xf]  ;;  %v5468_v61 = vld [vmem:[%s8623_s3 + $0x210] sm:$0xf] }
 0x5a0   : > { %v8008_v56 = vadd.f32 %v3454_v8, %v3271_v2  ;;  %v3459_v8 = vpop.f32.mrf.mxu0  ;;  %v5836_v2 = vld [vmem:[%s8623_s3 + $0x214] sm:$0xf0] }
 0x5a3   : > { %v3192_v43 = vpop.f32.mrf.mxu3 }
 0x5a4   : > { %v3272_v29 = vadd.f32 %v3192_v43, %v7597_v9  ;;  %v5470_v9 = vld [vmem:[%s8623_s3 + $0x218] sm:$0xf0]  ;;  %v5469_v43 = vor.u32 %v5836_v2, %v5468_v61 }
 0x5a5   : > { %v3106_v14 = vpop.f32.mrf.mxu1 }
 0x5a6   : > { %v3273_v15 = vadd.f32 %v3106_v14, %v7601_v16  ;;  %v8012_v1 = vadd.f32 %v3543_v63, %v3272_v29  ;;  %v5473_v16 = vor.u32 %v5835_v23, %v5470_v9  ;;  %v3548_v14 = vpop.f32.mrf.mxu2  ;;  %3795 = vmatpush.bf16.msrb.mxu1 %v5469_v43  ;;  %v1302_v43 = vadd.f32 %v7213_v45, %v6186_v30 }
 0x5a8   : > { %3145 = vmatmul.bf16.gmra.mxu1 %v7000_v0  ;;  %3234 = vmatmul.bf16.gmra.mxu3 %v7000_v0  ;;  %v8016_v22 = vadd.f32 %v3457_v12, %v3273_v15  ;;  %v3462_v23 = vpop.f32.mrf.mxu0 }
 0x5a9   : > { %3506 = vmatmul.bf16.gmra.mxu0 %v7185_v60  ;;  %3595 = vmatmul.bf16.gmra.mxu2 %v7185_v60 }
 0x5aa   : > { %3884 = vmatpush.bf16.msrb.mxu3 %v5473_v16 }
 0x5ab   : > { %v3195_v62 = vpop.f32.mrf.mxu3 }
 0x5ac   : > { %v3274_v51 = vadd.f32 %v3195_v62, %v7636_v4 }
 0x5ad   : > { %v3108_v55 = vpop.f32.mrf.mxu1 }
 0x5ae   : > { %v3275_v63 = vadd.f32 %v3108_v55, %v7643_v42  ;;  %v8034_v12 = vadd.f32 %v3546_v19, %v3274_v51  ;;  %v1312_v55 = vadd.f32 %v7248_v27, %v6186_v30 }
 0x5b0   : > { %v8036_v29 = vadd.f32 %v3459_v8, %v3275_v63  ;;  %v1810_v8 = vadd.f32 %v7256_v59, %v6195_v44 }
 0x5b2   : > { %v2059_v59 = vadd.f32 %v7243_v26, %v1810_v8 }
 0x5b3   : > { %v3197_v4 = vpop.f32.mrf.mxu3 }
 0x5b4   : > { %v3276_v15 = vadd.f32 %v3197_v4, %v7675_v50  ;;  %v3551_v50 = vpop.f32.mrf.mxu2 }
 0x5b5   : > { %v3111_v42 = vpop.f32.mrf.mxu1 }
 0x5b6   : > { %v3277_v9 = vadd.f32 %v3111_v42, %v7683_v32  ;;  %v8040_v16 = vadd.f32 %v3548_v14, %v3276_v15  ;;  %v1800_v32 = vadd.f32 %v7230_v5, %v6195_v44  ;;  %v3464_v14 = vpop.f32.mrf.mxu0  ;;  %v1561_v5 = vadd.f32 %v7238_v13, %v1312_v55 }
 0x5b7   : > { %v1551_v15 = vadd.f32 %v7194_v3, %v1302_v43  ;;  %v5833_v3 = vld [vmem:[%s8623_s3 + $0x204] sm:$0xf] }
 0x5b8   : > { %3150 = vmatmul.bf16.gmra.mxu1 %v8691_v47  ;;  %3239 = vmatmul.bf16.gmra.mxu3 %v8691_v47  ;;  %v8044_v19 = vadd.f32 %v3462_v23, %v3277_v9  ;;  %v2168_v27 = vmax.f32 %v1561_v5, %v2059_v59  ;;  %v5460_v59 = vld [vmem:[%s8623_s3 + $0x200] sm:$0xf] }
 0x5b9   : > { %3511 = vmatmul.bf16.gmra.mxu0 %v7202_v39  ;;  %3600 = vmatmul.bf16.gmra.mxu2 %v7202_v39 }
 0x5bb   : > { %v3200_v62 = vpop.f32.mrf.mxu3 }
 0x5bc   : > { %v3278_v51 = vadd.f32 %v3200_v62, %v7713_v46  ;;  %v2049_v46 = vadd.f32 %v7197_v21, %v1800_v32  ;;  %v3553_v9 = vpop.f32.mrf.mxu2  ;;  %v5462_v21 = vld [vmem:[%s8623_s3 + $0x208] sm:$0xf0]  ;;  %v8729_v62 = vld [vmem:[#allocation4_spill] sm:$0xff] }
 0x5bd   : > { %v3113_v63 = vpop.f32.mrf.mxu1  ;;  %v5465_v13 = vor.u32 %v5833_v3, %v5462_v21  ;;  %v8730_v32 = vld [vmem:[#allocation11_spill] sm:$0xff] }
 0x5be   : > { %v3279_v61 = vadd.f32 %v3113_v63, %v7719_v18  ;;  %v8056_v2 = vadd.f32 %v3551_v50, %v3278_v51  ;;  %v2164_v42 = vmax.f32 %v1551_v15, %v2049_v46  ;;  %v2267_v55 = vmax.f32 %v8730_v32, 0.0  ;;  %v8735_v32 = vld [vmem:[#allocation28_spill] sm:$0xff] }
 0x5bf   : > { %3885 = vmatpush.bf16.msrb.mxu3 %v5465_v13 }
 0x5c0   : > { %v8061_v4 = vadd.f32 %v3464_v14, %v3279_v61  ;;  %v2220_v8 = vmax.f32 %v2164_v42, %v2168_v27  ;;  %v8731_v61 = vld [vmem:[#allocation5_spill] sm:$0xff]  ;;  %v5834_v14 = vld [vmem:[%s8623_s3 + $0x204] sm:$0xf0]  ;;  %v2315_v15 = vpack.c.bf16 %v2267_v55, %v2267_v55 }
 0x5c1   : > { %v5461_v5 = vor.u32 %v5834_v14, %v5460_v59 }
 0x5c3   : > { %v3202_v23 = vpop.f32.mrf.mxu3  ;;  %3796 = vmatpush.bf16.msrb.mxu1 %v5461_v5 }
 0x5c4   : > { %v3280_v18 = vadd.f32 %v3202_v23, %v7743_v10  ;;  %v2268_v10 = vmax.f32 %v2220_v8, 0.0  ;;  %v8733_v8 = vld [vmem:[#allocation7_spill] sm:$0xff] }
 0x5c5   : > { %v3116_v50 = vpop.f32.mrf.mxu1 }
 0x5c6   : > { %v8068_v45 = vadd.f32 %v3116_v50, %v7749_v35  ;;  %v8070_v26 = vadd.f32 %v3553_v9, %v3280_v18  ;;  %v2316_v46 = vpack.c.bf16 %v2268_v10, %v2268_v10  ;;  %v8732_v18 = vld [vmem:[#allocation6_spill] sm:$0xff]  ;;  %v3352_v9 = vunpack.c.l.b16 %v2315_v15  ;;  %v8734_v10 = vld [vmem:[#allocation8_spill] sm:$0xff] }
 0x5c8   : > { %3155 = vmatmul.bf16.gmra.mxu1 %v8696_v54  ;;  %3244 = vmatmul.bf16.gmra.mxu3 %v8696_v54  ;;  %v3353_v27 = vunpack.c.l.b16 %v2316_v46  ;;  %v8737_v46 = vld [vmem:[#allocation30_spill] sm:$0xff] }
 0x5c9   : > { %3516 = vmatmul.bf16.gmra.mxu0 %v7254_v7  ;;  %3605 = vmatmul.bf16.gmra.mxu2 %v7254_v7 }
 0x5ca   : > { %v8101_v21 = vpack.c.b16 %v3353_v27, %v3352_v9  ;;  %v8738_v27 = vld [vmem:[#allocation9_spill] sm:$0xff]  ;;  %v8739_v9 = vld [vmem:[#allocation31_spill] sm:$0xff] }
 0x5cb   : > { %v3205_v35 = vpop.f32.mrf.mxu3 }
 0x5cc   : > { %v8083_v51 = vadd.f32 %v3205_v35, %v8729_v62 }
 0x5cd   : > { %v3118_v63 = vpop.f32.mrf.mxu1 }
 0x5ce   : > { %v8087_v43 = vadd.f32 %v3118_v63, %v8731_v61  ;;  %v8736_v61 = vld [vmem:[#allocation29_spill] sm:$0xff] }
 0x5d3   : > { %v3207_v23 = vpop.f32.mrf.mxu3 }
 0x5d4   : > { %v8096_v42 = vadd.f32 %v3207_v23, %v8732_v18 }
 0x5d5   : > { %v3121_v50 = vpop.f32.mrf.mxu1 }
 0x5d6   : > { %v8099_v3 = vadd.f32 %v3121_v50, %v8733_v8 }
 0x5d8   : > { %3160 = vmatmul.bf16.gmra.mxu1 %v8701_v6  ;;  %3249 = vmatmul.bf16.gmra.mxu3 %v8701_v6 }
 0x5d9   : > { %3521 = vmatmul.bf16.gmra.mxu0 %v8101_v21  ;;  %3610 = vmatmul.bf16.gmra.mxu2 %v8101_v21 }
 0x5db   : > { %v3210_v13 = vpop.f32.mrf.mxu3 }
 0x5dc   : > { %v8108_v35 = vadd.f32 %v3210_v13, %v8734_v10  ;;  %v8740_v13 = vld [vmem:[#allocation32_spill] sm:$0xff] }
 0x5dd   : > { %v3123_v62 = vpop.f32.mrf.mxu1 }
 0x5de   : > { %v8111_v55 = vadd.f32 %v3123_v62, %v8735_v32  ;;  %v8742_v32 = vld [vmem:[#allocation33_spill] sm:$0xff] }
 0x5e3   : > { %v3212_v63 = vpop.f32.mrf.mxu3 }
 0x5e4   : > { %v8114_v59 = vadd.f32 %v3212_v63, %v8736_v61 }
 0x5e5   : > { %v3126_v14 = vpop.f32.mrf.mxu1 }
 0x5e6   : > { %v8117_v5 = vadd.f32 %v3126_v14, %v8737_v46 }
 0x5e8   : > { %3165 = vmatmul.bf16.gmra.mxu1 %v7185_v60  ;;  %3254 = vmatmul.bf16.gmra.mxu3 %v7185_v60 }
 0x5eb   : > { %v3215_v15 = vpop.f32.mrf.mxu3 }
 0x5ec   : > { %v8122_v23 = vadd.f32 %v3215_v15, %v8738_v27  ;;  %v8744_v15 = vld [vmem:[#allocation10_spill] sm:$0xff] }
 0x5ed   : > { %v3128_v18 = vpop.f32.mrf.mxu1 }
 0x5ee   : > { %v8125_v50 = vadd.f32 %v3128_v18, %v8739_v9  ;;  %v8746_v9 = vld [vmem:[#allocation34_spill] sm:$0xff] }
 0x5f3   : > { %v3217_v8 = vpop.f32.mrf.mxu3 }
 0x5f4   : > { %v8128_v10 = vadd.f32 %v3217_v8, %v8740_v13 }
 0x5f5   : > { %v3131_v62 = vpop.f32.mrf.mxu1 }
 0x5f6   : > { %8741 = vst [vmem:[#allocation4_spill] sm:$0xff] %v8128_v10  ;;  %v8131_v63 = vadd.f32 %v3131_v62, %v8742_v32  ;;  %v8748_v10 = vld [vmem:[#allocation35_spill] sm:$0xff] }
 0x5f8   : > { %3170 = vmatmul.bf16.gmra.mxu1 %v7202_v39  ;;  %3259 = vmatmul.bf16.gmra.mxu3 %v7202_v39 }
 0x5fb   : > { %v3220_v61 = vpop.f32.mrf.mxu3 }
 0x5fc   : > { %v8136_v14 = vadd.f32 %v3220_v61, %v7819_v24 }
 0x5fd   : > { %v3133_v46 = vpop.f32.mrf.mxu1 }
 0x5fe   : > { %8743 = vst [vmem:[#allocation11_spill] sm:$0xff] %v8136_v14  ;;  %v8139_v27 = vadd.f32 %v3133_v46, %v8744_v15  ;;  %v8749_v14 = vld [vmem:[#allocation36_spill] sm:$0xff] }
 0x600   : > { %8745 = vst [vmem:[#allocation5_spill] sm:$0xff] %v8139_v27  ;;  %v8751_v27 = vld [vmem:[#allocation37_spill] sm:$0xff] }
 0x603   : > { %v3222_v18 = vpop.f32.mrf.mxu3 }
 0x604   : > { %v8142_v8 = vadd.f32 %v3222_v18, %v8746_v9 }
 0x605   : > { %v3136_v13 = vpop.f32.mrf.mxu1 }
 0x606   : > { %8747 = vst [vmem:[#allocation6_spill] sm:$0xff] %v8142_v8  ;;  %v8145_v62 = vadd.f32 %v3136_v13, %v8748_v10  ;;  %v8753_v8 = vld [vmem:[#allocation38_spill] sm:$0xff] }
 0x608   : > { %3797 = vmatmul.bf16.vlgmr.msrb.gmra.mxu1 %v8679_v52  ;;  %3886 = vmatmul.bf16.vlgmr.msrb.gmra.mxu3 %v8679_v52 }
 0x60b   : > { %v3225_v32 = vpop.f32.mrf.mxu3 }
 0x60c   : > { %v8150_v24 = vadd.f32 %v3225_v32, %v7837_v49  ;;  %v8754_v32 = vld [vmem:[#allocation39_spill] sm:$0xff] }
 0x60d   : > { %v3138_v61 = vpop.f32.mrf.mxu1 }
 0x60e   : > { %v8153_v46 = vadd.f32 %v3138_v61, %v8749_v14 }
 0x610   : > { %8750 = vst [vmem:[#allocation7_spill] sm:$0xff] %v8153_v46  ;;  %v8755_v46 = vld [vmem:[#allocation40_spill] sm:$0xff] }
 0x613   : > { %v3227_v15 = vpop.f32.mrf.mxu3 }
 0x614   : > { %v8156_v18 = vadd.f32 %v3227_v15, %v8751_v27 }
 0x615   : > { %v3141_v9 = vpop.f32.mrf.mxu1 }
 0x616   : > { %8752 = vst [vmem:[#allocation8_spill] sm:$0xff] %v8156_v18  ;;  %v8159_v10 = vadd.f32 %v3141_v9, %v8753_v8  ;;  %v8756_v18 = vld [vmem:[#allocation41_spill] sm:$0xff] }
 0x618   : > { %3802 = vmatmul.bf16.gmra.mxu1 %v8680_v57  ;;  %3891 = vmatmul.bf16.gmra.mxu3 %v8680_v57 }
 0x61b   : > { %v3230_v52 = vpop.f32.mrf.mxu3 }
 0x61c   : > { %v8164_v49 = vadd.f32 %v3230_v52, %v7855_v36 }
 0x61d   : > { %v3143_v13 = vpop.f32.mrf.mxu1 }
 0x61e   : > { %v8167_v14 = vadd.f32 %v3143_v13, %v8754_v32 }
 0x623   : > { %v3232_v61 = vpop.f32.mrf.mxu3 }
 0x624   : > { %v8170_v27 = vadd.f32 %v3232_v61, %v8755_v46  ;;  %v8758_v61 = vld [vmem:[#allocation42_spill] sm:$0xff] }
 0x625   : > { %v3146_v15 = vpop.f32.mrf.mxu1 }
 0x626   : > { %v8173_v8 = vadd.f32 %v3146_v15, %v8756_v18  ;;  %v8759_v15 = vld [vmem:[#allocation43_spill] sm:$0xff] }
 0x628   : > { %3807 = vmatmul.bf16.gmra.mxu1 %v8683_v31  ;;  %3896 = vmatmul.bf16.gmra.mxu3 %v8683_v31 }
 0x62b   : > { %v3235_v57 = vpop.f32.mrf.mxu3 }
 0x62c   : > { %v8178_v36 = vadd.f32 %v3235_v57, %v7873_v37 }
 0x62d   : > { %v3148_v9 = vpop.f32.mrf.mxu1 }
 0x62e   : > { %8757 = vst [vmem:[#allocation28_spill] sm:$0xff] %v8178_v36  ;;  %v8181_v52 = vadd.f32 %v3148_v9, %v7875_v20  ;;  %v8761_v36 = vld [vmem:[#allocation44_spill] sm:$0xff] }
 0x633   : > { %v3237_v13 = vpop.f32.mrf.mxu3 }
 0x634   : > { %v8184_v46 = vadd.f32 %v3237_v13, %v7883_v53  ;;  %v5864_v53 = vld [vmem:[%s8625_s5 + $0x78] sm:$0xff] }
 0x635   : > { %v3151_v32 = vpop.f32.mrf.mxu1  ;;  %4452 = vmatpush.bf16.msra.mxu2 %v5864_v53  ;;  %v8763_v13 = vld [vmem:[#allocation45_spill] sm:$0xff] }
 0x636   : > { %v8187_v18 = vadd.f32 %v3151_v32, %v8758_v61 }
 0x638   : > { %3812 = vmatmul.bf16.gmra.mxu1 %v8684_v40  ;;  %3901 = vmatmul.bf16.gmra.mxu3 %v8684_v40  ;;  %v5856_v40 = vld [vmem:[%s8625_s5 + $0x38] sm:$0xff] }
 0x639   : > { %4433 = vmatpush.bf16.msra.mxu0 %v5856_v40  ;;  %v8771_v40 = vld [vmem:[#allocation49_spill] sm:$0xff] }
 0x63b   : > { %v3240_v31 = vpop.f32.mrf.mxu3 }
 0x63c   : > { %v8192_v37 = vadd.f32 %v3240_v31, %v8759_v15  ;;  %v8765_v31 = vld [vmem:[#allocation46_spill] sm:$0xff] }
 0x63d   : > { %v3153_v57 = vpop.f32.mrf.mxu1 }
 0x63e   : > { %8760 = vst [vmem:[#allocation29_spill] sm:$0xff] %v8192_v37  ;;  %v8195_v20 = vadd.f32 %v3153_v57, %v8761_v36 }
 0x640   : > { %8762 = vst [vmem:[#allocation30_spill] sm:$0xff] %v8195_v20 }
 0x643   : > { %v3242_v9 = vpop.f32.mrf.mxu3 }
 0x644   : > { %v8201_v32 = vadd.f32 %v3242_v9, %v8763_v13 }
 0x645   : > { %v3156_v61 = vpop.f32.mrf.mxu1 }
 0x646   : > { %8764 = vst [vmem:[#allocation9_spill] sm:$0xff] %v8201_v32  ;;  %v8207_v15 = vadd.f32 %v3156_v61, %v8765_v31  ;;  %v8767_v32 = vld [vmem:[#allocation47_spill] sm:$0xff]  ;;  %v8769_v61 = vld [vmem:[#allocation48_spill] sm:$0xff] }
 0x648   : > { %3817 = vmatmul.bf16.gmra.mxu1 %v8685_v25  ;;  %3906 = vmatmul.bf16.gmra.mxu3 %v8685_v25 }
 0x64b   : > { %v3245_v36 = vpop.f32.mrf.mxu3 }
 0x64c   : > { %v8212_v57 = vadd.f32 %v3245_v36, %v7909_v48 }
 0x64d   : > { %v3158_v53 = vpop.f32.mrf.mxu1 }
 0x64e   : > { %8766 = vst [vmem:[#allocation31_spill] sm:$0xff] %v8212_v57  ;;  %v8215_v9 = vadd.f32 %v3158_v53, %v7911_v17  ;;  %v8773_v57 = vld [vmem:[#allocation50_spill] sm:$0xff] }
 0x653   : > { %v3247_v13 = vpop.f32.mrf.mxu3 }
 0x654   : > { %v8218_v20 = vadd.f32 %v3247_v13, %v8767_v32  ;;  %v5863_v32 = vld [vmem:[%s8625_s5 + $0x70] sm:$0xff] }
 0x655   : > { %v3161_v37 = vpop.f32.mrf.mxu1  ;;  %4453 = vmatpush.bf16.msra.mxu2 %v5863_v32 }
 0x656   : > { %8768 = vst [vmem:[#allocation32_spill] sm:$0xff] %v8218_v20  ;;  %v8221_v31 = vadd.f32 %v3161_v37, %v8769_v61  ;;  %v8775_v37 = vld [vmem:[#allocation51_spill] sm:$0xff] }
 0x658   : > { %8770 = vst [vmem:[#allocation33_spill] sm:$0xff] %v8221_v31  ;;  %3822 = vmatmul.bf16.gmra.mxu1 %v8686_v28  ;;  %3911 = vmatmul.bf16.gmra.mxu3 %v8686_v28  ;;  %v5855_v28 = vld [vmem:[%s8625_s5 + $0x30] sm:$0xff] }
 0x659   : > { %4434 = vmatpush.bf16.msra.mxu0 %v5855_v28 }
 0x65b   : > { %v3250_v25 = vpop.f32.mrf.mxu3 }
 0x65c   : > { %v8226_v48 = vadd.f32 %v3250_v25, %v8771_v40  ;;  %v8777_v25 = vld [vmem:[#allocation52_spill] sm:$0xff] }
 0x65d   : > { %v3163_v36 = vpop.f32.mrf.mxu1 }
 0x65e   : > { %8772 = vst [vmem:[#allocation10_spill] sm:$0xff] %v8226_v48  ;;  %v8229_v17 = vadd.f32 %v3163_v36, %v8773_v57  ;;  %v8778_v36 = vld [vmem:[#allocation53_spill] sm:$0xff]  ;;  %v8781_v48 = vld [vmem:[#allocation55_spill] sm:$0xff] }
 0x660   : > { %8774 = vst [vmem:[#allocation34_spill] sm:$0xff] %v8229_v17 }
 0x663   : > { %v3252_v53 = vpop.f32.mrf.mxu3 }
 0x664   : > { %v8235_v13 = vadd.f32 %v3252_v53, %v8775_v37  ;;  %v8779_v53 = vld [vmem:[#allocation54_spill] sm:$0xff] }
 0x665   : > { %v3166_v61 = vpop.f32.mrf.mxu1 }
 0x666   : > { %8776 = vst [vmem:[#allocation35_spill] sm:$0xff] %v8235_v13  ;;  %v8241_v40 = vadd.f32 %v3166_v61, %v8777_v25  ;;  %v8783_v61 = vld [vmem:[#allocation56_spill] sm:$0xff] }
 0x668   : > { %3827 = vmatmul.bf16.gmra.mxu1 %v7000_v0  ;;  %3916 = vmatmul.bf16.gmra.mxu3 %v7000_v0 }
 0x66b   : > { %v3255_v57 = vpop.f32.mrf.mxu3 }
 0x66c   : > { %v8246_v32 = vadd.f32 %v3255_v57, %v8778_v36  ;;  %v8786_v36 = vld [vmem:[#allocation57_spill] sm:$0xff] }
 0x66d   : > { %v3168_v17 = vpop.f32.mrf.mxu1 }
 0x66e   : > { %v8249_v37 = vadd.f32 %v3168_v17, %v8779_v53 }
 0x670   : > { %8780 = vst [vmem:[#allocation36_spill] sm:$0xff] %v8249_v37 }
 0x673   : > { %v3257_v13 = vpop.f32.mrf.mxu3 }
 0x674   : > { %v8252_v31 = vadd.f32 %v3257_v13, %v8781_v48  ;;  %v5862_v48 = vld [vmem:[%s8625_s5 + $0x68] sm:$0xff] }
 0x675   : > { %v3171_v20 = vpop.f32.mrf.mxu1  ;;  %4454 = vmatpush.bf16.msra.mxu2 %v5862_v48 }
 0x676   : > { %8782 = vst [vmem:[#allocation37_spill] sm:$0xff] %v8252_v31  ;;  %v8255_v25 = vadd.f32 %v3171_v20, %v8783_v61  ;;  %v8788_v20 = vld [vmem:[#allocation58_spill] sm:$0xff] }
 0x678   : > { %8784 = vst [vmem:[#allocation38_spill] sm:$0xff] %v8255_v25  ;;  %3832 = vmatmul.bf16.gmra.mxu1 %v8691_v47  ;;  %3921 = vmatmul.bf16.gmra.mxu3 %v8691_v47  ;;  %v4031_v47 = vld [vmem:[%s8624_s4] sm:$0x3] }
 0x679   : > { %v8282_v48 = vperm.slane %v4031_v47, 1 }
 0x67b   : > { %v3260_v0 = vpop.f32.mrf.mxu3 }
 0x67c   : > { %v8260_v28 = vadd.f32 %v3260_v0, %v7963_v33  ;;  %v5854_v33 = vld [vmem:[%s8625_s5 + $0x28] sm:$0xff] }
 0x67d   : > { %v3173_v57 = vpop.f32.mrf.mxu1  ;;  %v8790_v0 = vld [vmem:[#allocation59_spill] sm:$0xff]  ;;  %4435 = vmatpush.bf16.msra.mxu0 %v5854_v33 }
 0x67e   : > { %8785 = vst [vmem:[#allocation39_spill] sm:$0xff] %v8260_v28  ;;  %v8263_v17 = vadd.f32 %v3173_v57, %v8786_v36  ;;  %v8280_v36 = vperm.slane %v4031_v47, 0 }
 0x680   : > { %8787 = vst [vmem:[#allocation40_spill] sm:$0xff] %v8263_v17 }
 0x683   : > { %v3262_v13 = vpop.f32.mrf.mxu3 }
 0x684   : > { %v8269_v53 = vadd.f32 %v3262_v13, %v8788_v20 }
 0x685   : > { %v3798_v61 = vpop.f32.mrf.mxu1 }
 0x686   : > { %8789 = vst [vmem:[#allocation41_spill] sm:$0xff] %v8269_v53  ;;  %v3967_v57 = vadd.f32 %v3798_v61, %v8790_v0  ;;  %v5853_v53 = vld [vmem:[%s8625_s5 + $0x20] sm:$0xff]  ;;  %v5852_v61 = vld [vmem:[%s8625_s5 + $0x18] sm:$0xff]  ;;  %v5851_v0 = vld [vmem:[%s8625_s5 + $0x10] sm:$0xff] }
 0x687   : > { %4436 = vmatpush.bf16.msra.mxu0 %v5853_v53 }
 0x688   : > { %3837 = vmatmul.bf16.gmra.mxu1 %v8696_v54  ;;  %3926 = vmatmul.bf16.gmra.mxu3 %v8696_v54  ;;  %v4037_v54 = vadd.f32 %v8280_v36, %v3967_v57 }
 0x68b   : > { %v3887_v13 = vpop.f32.mrf.mxu3  ;;  %4437 = vmatpush.bf16.msra.mxu0 %v5852_v61 }
 0x68c   : > { %v3968_v20 = vadd.f32 %v3887_v13, %v7990_v34 }
 0x68d   : > { %v3800_v17 = vpop.f32.mrf.mxu1 }
 0x68e   : > { %v4038_v28 = vadd.f32 %v8282_v48, %v3968_v20  ;;  %v3969_v47 = vadd.f32 %v3800_v17, %v7992_v58  ;;  %v5850_v58 = vld [vmem:[%s8625_s5 + $0x8] sm:$0xff]  ;;  %v8308_v20 = vpop.f32.mrf.mxu2 }
 0x68f   : > { %4438 = vmatpush.bf16.msra.mxu0 %v5851_v0 }
 0x690   : > { %v4101_v25 = vmax.f32 %v4037_v54, %v4038_v28  ;;  %v4039_v57 = vadd.f32 %v8280_v36, %v3969_v47  ;;  %v5849_v47 = vld [vmem:[%s8625_s5] sm:$0xff] }
 0x693   : > { %v3889_v33 = vpop.f32.mrf.mxu3  ;;  %4439 = vmatpush.bf16.msra.mxu0 %v5850_v58 }
 0x694   : > { %v3970_v34 = vadd.f32 %v3889_v33, %v7996_v38  ;;  %v8305_v38 = vpop.f32.mrf.mxu0 }
 0x695   : > { %v3803_v13 = vpop.f32.mrf.mxu1 }
 0x696   : > { %v4040_v53 = vadd.f32 %v8282_v48, %v3970_v34  ;;  %v3971_v17 = vadd.f32 %v3803_v13, %v8000_v11  ;;  %v5861_v11 = vld [vmem:[%s8625_s5 + $0x60] sm:$0xff]  ;;  %v8323_v58 = vpop.f32.mrf.mxu2 }
 0x697   : > { %4440 = vmatpush.bf16.msra.mxu0 %v5849_v47  ;;  %4455 = vmatpush.bf16.msra.mxu2 %v5861_v11 }
 0x698   : > { %v4102_v28 = vmax.f32 %v4039_v57, %v4040_v53  ;;  %3842 = vmatmul.bf16.gmra.mxu1 %v8701_v6  ;;  %3931 = vmatmul.bf16.gmra.mxu3 %v8701_v6  ;;  %v4041_v6 = vadd.f32 %v8280_v36, %v3971_v17 }
 0x69b   : > { %v3892_v54 = vpop.f32.mrf.mxu3 }
 0x69c   : > { %v3972_v61 = vadd.f32 %v3892_v54, %v8006_v41  ;;  %v8320_v57 = vpop.f32.mrf.mxu0 }
 0x69d   : > { %v3805_v33 = vpop.f32.mrf.mxu1 }
 0x69e   : > { %v4042_v34 = vadd.f32 %v8282_v48, %v3972_v61  ;;  %v3973_v13 = vadd.f32 %v3805_v33, %v8008_v56 }
 0x6a0   : > { %v4103_v0 = vmax.f32 %v4041_v6, %v4042_v34  ;;  %v4043_v17 = vadd.f32 %v8280_v36, %v3973_v13  ;;  %v8335_v13 = vpop.f32.mrf.mxu2 }
 0x6a3   : > { %v3894_v41 = vpop.f32.mrf.mxu3 }
 0x6a4   : > { %v3974_v53 = vadd.f32 %v3894_v41, %v8012_v1  ;;  %v8331_v34 = vpop.f32.mrf.mxu0 }
 0x6a5   : > { %v3808_v54 = vpop.f32.mrf.mxu1 }
 0x6a6   : > { %v4044_v61 = vadd.f32 %v8282_v48, %v3974_v53  ;;  %v3975_v56 = vadd.f32 %v3808_v54, %v8016_v22 }
 0x6a8   : > { %v4104_v47 = vmax.f32 %v4043_v17, %v4044_v61  ;;  %3847 = vmatmul.bf16.gmra.mxu1 %v7185_v60  ;;  %3936 = vmatmul.bf16.gmra.mxu3 %v7185_v60  ;;  %v4045_v11 = vadd.f32 %v8280_v36, %v3975_v56  ;;  %v8345_v56 = vpop.f32.mrf.mxu2 }
 0x6ab   : > { %v3897_v33 = vpop.f32.mrf.mxu3 }
 0x6ac   : > { %v3976_v6 = vadd.f32 %v3897_v33, %v8034_v12  ;;  %v8341_v33 = vpop.f32.mrf.mxu0 }
 0x6ad   : > { %v3810_v1 = vpop.f32.mrf.mxu1 }
 0x6ae   : > { %v4046_v41 = vadd.f32 %v8282_v48, %v3976_v6  ;;  %v3977_v61 = vadd.f32 %v3810_v1, %v8036_v29 }
 0x6b0   : > { %v4105_v53 = vmax.f32 %v4045_v11, %v4046_v41  ;;  %v4047_v54 = vadd.f32 %v8280_v36, %v3977_v61 }
 0x6b2   : > { %v4133_v17 = vmax.f32 %v4101_v25, %v4105_v53 }
 0x6b3   : > { %v3899_v31 = vpop.f32.mrf.mxu3 }
 0x6b4   : > { %v3978_v60 = vadd.f32 %v3899_v31, %v8040_v16  ;;  %v4137_v1 = vmax.f32 %v4133_v17, 0.0  ;;  %v8357_v17 = vpop.f32.mrf.mxu2 }
 0x6b5   : > { %v3813_v22 = vpop.f32.mrf.mxu1 }
 0x6b6   : > { %v4048_v12 = vadd.f32 %v8282_v48, %v3978_v60  ;;  %v3979_v29 = vadd.f32 %v3813_v22, %v8044_v19 }
 0x6b8   : > { %v4106_v37 = vmax.f32 %v4047_v54, %v4048_v12  ;;  %3852 = vmatmul.bf16.gmra.mxu1 %v7202_v39  ;;  %3941 = vmatmul.bf16.gmra.mxu3 %v7202_v39  ;;  %v4049_v53 = vadd.f32 %v8280_v36, %v3979_v29  ;;  %v5860_v39 = vld [vmem:[%s8625_s5 + $0x58] sm:$0xff] }
 0x6b9   : > { %4456 = vmatpush.bf16.msra.mxu2 %v5860_v39  ;;  %v8794_v39 = vld [vmem:[#allocation14_spill] sm:$0xff] }
 0x6ba   : > { %v4134_v25 = vmax.f32 %v4102_v28, %v4106_v37  ;;  %v8354_v37 = vpop.f32.mrf.mxu0 }
 0x6bb   : > { %v3902_v6 = vpop.f32.mrf.mxu3 }
 0x6bc   : > { %v4138_v16 = vmax.f32 %v4134_v25, 0.0  ;;  %v3980_v31 = vadd.f32 %v3902_v6, %v8056_v2  ;;  %v3632_v6 = vadd.f32 %v8305_v38, %v8068_v45  ;;  %v8793_v45 = vld [vmem:[#allocation20_spill] sm:$0xff] }
 0x6bd   : > { %v3815_v11 = vpop.f32.mrf.mxu1  ;;  %v1327_v38 = vadd.f32 %v8793_v45, %v6186_v30 }
 0x6be   : > { %v4165_v41 = vpack.c.bf16 %v4138_v16, %v4137_v1  ;;  %v4050_v61 = vadd.f32 %v8282_v48, %v3980_v31  ;;  %v3981_v19 = vadd.f32 %v3815_v11, %v8061_v4  ;;  %v8791_v4 = vld [vmem:[#allocation24_spill] sm:$0xff]  ;;  %v8792_v31 = vld [vmem:[#allocation15_spill] sm:$0xff] }
 0x6bf   : > { %v1815_v11 = vadd.f32 %v8792_v31, %v6195_v44 }
 0x6c0   : > { %v4107_v60 = vmax.f32 %v4049_v53, %v4050_v61  ;;  %4441 = vmatmul.bf16.vlgmr.msra.gmra.mxu0 %v4165_v41  ;;  %v4051_v12 = vadd.f32 %v8280_v36, %v3981_v19  ;;  %v1317_v19 = vadd.f32 %v8794_v39, %v6186_v30 }
 0x6c2   : > { %v4135_v28 = vmax.f32 %v4103_v0, %v4107_v60  ;;  %v1825_v0 = vadd.f32 %v8791_v4, %v6195_v44  ;;  %v8372_v41 = vpop.f32.mrf.mxu0 }
 0x6c3   : > { %v3904_v2 = vpop.f32.mrf.mxu3 }
 0x6c4   : > { %v3982_v22 = vadd.f32 %v3904_v2, %v8070_v26  ;;  %v3633_v26 = vadd.f32 %v8308_v20, %v8083_v51  ;;  %v4139_v60 = vmax.f32 %v4135_v28, 0.0  ;;  %v8378_v2 = vpop.f32.mrf.mxu2  ;;  %v8795_v51 = vld [vmem:[#allocation22_spill] sm:$0xff] }
 0x6c5   : > { %v3818_v54 = vpop.f32.mrf.mxu1  ;;  %v2074_v20 = vadd.f32 %v8795_v51, %v1825_v0 }
 0x6c6   : > { %v4052_v25 = vadd.f32 %v8282_v48, %v3982_v22  ;;  %v3983_v1 = vadd.f32 %v3818_v54, %v3632_v6  ;;  %v8797_v6 = vld [vmem:[#allocation21_spill] sm:$0xff] }
 0x6c7   : > { %v1576_v28 = vadd.f32 %v8797_v6, %v1327_v38  ;;  %v8800_v6 = vld [vmem:[#allocation19_spill] sm:$0xff] }
 0x6c8   : > { %v4108_v29 = vmax.f32 %v4051_v12, %v4052_v25  ;;  %3857 = vmatmul.bf16.gmra.mxu1 %v7254_v7  ;;  %3946 = vmatmul.bf16.gmra.mxu3 %v7254_v7  ;;  %v8796_v25 = vld [vmem:[#allocation13_spill] sm:$0xff] }
 0x6c9   : > { %v2174_v31 = vmax.f32 %v1576_v28, %v2074_v20  ;;  %v8799_v20 = vld [vmem:[#allocation27_spill] sm:$0xff] }
 0x6ca   : > { %v4136_v16 = vmax.f32 %v4104_v47, %v4108_v29  ;;  %v8382_v47 = vadd.f32 %v8280_v36, %v3983_v1  ;;  %v2064_v29 = vadd.f32 %v8796_v25, %v1815_v11  ;;  %v5859_v11 = vld [vmem:[%s8625_s5 + $0x50] sm:$0xff]  ;;  %v8399_v38 = vpop.f32.mrf.mxu0  ;;  %v8801_v28 = vld [vmem:[#allocation23_spill] sm:$0xff] }
 0x6cb   : > { %v3907_v53 = vpop.f32.mrf.mxu3  ;;  %4457 = vmatpush.bf16.msra.mxu2 %v5859_v11  ;;  %v8805_v11 = vld [vmem:[#allocation18_spill] sm:$0xff] }
 0x6cc   : > { %v3984_v61 = vadd.f32 %v3907_v53, %v3633_v26  ;;  %v4140_v7 = vmax.f32 %v4136_v16, 0.0  ;;  %v3634_v26 = vadd.f32 %v8320_v57, %v8087_v43  ;;  %v8798_v16 = vld [vmem:[#allocation12_spill] sm:$0xff]  ;;  %v3635_v53 = vadd.f32 %v8323_v58, %v8096_v42 }
 0x6cd   : > { %v3820_v22 = vpop.f32.mrf.mxu1  ;;  %v1566_v0 = vadd.f32 %v8798_v16, %v1317_v19  ;;  %v8407_v19 = vpop.f32.mrf.mxu2  ;;  %v3636_v58 = vadd.f32 %v8331_v34, %v8099_v3  ;;  %v1820_v3 = vadd.f32 %v8800_v6, %v6195_v44 }
 0x6ce   : > { %v8385_v54 = vadd.f32 %v8282_v48, %v3984_v61  ;;  %v4169_v12 = vpack.c.bf16 %v4140_v7, %v4139_v60  ;;  %v3985_v1 = vadd.f32 %v3820_v22, %v3634_v26  ;;  %v5858_v22 = vld [vmem:[%s8625_s5 + $0x48] sm:$0xff]  ;;  %v2269_v26 = vmax.f32 %v8801_v28, 0.0 }
 0x6cf   : > { %v2170_v61 = vmax.f32 %v1566_v0, %v2064_v29  ;;  %v3637_v29 = vadd.f32 %v8335_v13, %v8108_v35  ;;  %4458 = vmatpush.bf16.msra.mxu2 %v5858_v22  ;;  %v8804_v35 = vld [vmem:[#allocation3_spill] sm:$0xff]  ;;  %v8806_v22 = vld [vmem:[#allocation2_spill] sm:$0xff] }
 0x6d0   : > { %v4109_v4 = vmax.f32 %v8382_v47, %v8385_v54  ;;  %4446 = vmatmul.bf16.gmra.mxu0 %v4169_v12  ;;  %v8402_v43 = vadd.f32 %v8280_v36, %v3985_v1  ;;  %v1830_v12 = vadd.f32 %v8799_v20, %v6195_v44  ;;  %v8803_v1 = vld [vmem:[#allocation17_spill] sm:$0xff]  ;;  %v3644_v47 = vadd.f32 %v8399_v38, %v8131_v63 }
 0x6d1   : > { %v2222_v39 = vmax.f32 %v2170_v61, %v2174_v31  ;;  %v5857_v31 = vld [vmem:[%s8625_s5 + $0x40] sm:$0xff] }
 0x6d2   : > { %v2079_v13 = vadd.f32 %v8804_v35, %v1830_v12  ;;  %v3638_v12 = vadd.f32 %v8341_v33, %v8111_v55 }
 0x6d3   : > { %v3909_v45 = vpop.f32.mrf.mxu3  ;;  %v2270_v51 = vmax.f32 %v2222_v39, 0.0  ;;  %4459 = vmatpush.bf16.msra.mxu2 %v5857_v31  ;;  %v8440_v39 = vpop.f32.mrf.mxu0 }
 0x6d4   : > { %v3986_v60 = vadd.f32 %v3909_v45, %v3635_v53  ;;  %v1322_v53 = vadd.f32 %v8803_v1, %v6186_v30 }
 0x6d5   : > { %v3823_v7 = vpop.f32.mrf.mxu1  ;;  %v8448_v6 = vpop.f32.mrf.mxu2 }
 0x6d6   : > { %v8405_v57 = vadd.f32 %v8282_v48, %v3986_v60  ;;  %v3987_v25 = vadd.f32 %v3823_v7, %v3636_v58  ;;  %v2318_v60 = vpack.c.bf16 %v2270_v51, %v2270_v51  ;;  %v2069_v7 = vadd.f32 %v8805_v11, %v1820_v3 }
 0x6d7   : > { %v2317_v58 = vpack.c.bf16 %v2269_v26, %v2269_v26  ;;  %v3639_v3 = vadd.f32 %v8345_v56, %v8114_v59  ;;  %v3640_v59 = vadd.f32 %v8354_v37, %v8117_v5 }
 0x6d8   : > { %v4110_v42 = vmax.f32 %v8402_v43, %v8405_v57  ;;  %3862 = vmatmul.bf16.gmra.mxu1 %v8101_v21  ;;  %3951 = vmatmul.bf16.gmra.mxu3 %v8101_v21  ;;  %v8802_v21 = vld [vmem:[#allocation25_spill] sm:$0xff]  ;;  %v8434_v61 = vadd.f32 %v8280_v36, %v3987_v25  ;;  %v8807_v25 = vld [vmem:[#allocation16_spill] sm:$0xff]  ;;  %v3702_v28 = vunpack.c.l.b16 %v2318_v60  ;;  %v3641_v60 = vadd.f32 %v8357_v17, %v8122_v23 }
 0x6d9   : > { %v1332_v16 = vadd.f32 %v8802_v21, %v6186_v30  ;;  %v5872_v57 = vld [vmem:[%s8625_s5 + $0xb8] sm:$0xff] }
 0x6da   : > { %4471 = vmatpush.bf16.msrb.mxu0 %v5872_v57 }
 0x6db   : > { %v3912_v34 = vpop.f32.mrf.mxu3  ;;  %v1581_v20 = vadd.f32 %v8806_v22, %v1332_v16  ;;  %v3701_v16 = vunpack.c.l.b16 %v2317_v58  ;;  %v3487_v56 = vpop.f32.mrf.mxu0  ;;  %v8808_v58 = vld [vmem:[#allocation26_spill] sm:$0xff] }
 0x6dc   : > { %v3988_v0 = vadd.f32 %v3912_v34, %v3637_v29  ;;  %v1571_v29 = vadd.f32 %v8807_v25, %v1322_v53  ;;  %v2271_v22 = vmax.f32 %v8808_v58, 0.0 }
 0x6dd   : > { %v3825_v45 = vpop.f32.mrf.mxu1  ;;  %v2176_v34 = vmax.f32 %v1581_v20, %v2079_v13  ;;  %v3705_v33 = vpack.c.b16 %v3702_v28, %v3701_v16  ;;  %v3576_v11 = vpop.f32.mrf.mxu2 }
 0x6de   : > { %v8437_v44 = vadd.f32 %v8282_v48, %v3988_v0  ;;  %v3989_v51 = vadd.f32 %v3825_v45, %v3638_v12  ;;  %v2172_v26 = vmax.f32 %v1571_v29, %v2069_v7  ;;  %v2319_v5 = vpack.c.bf16 %v2271_v22, %v2271_v22 }
 0x6e0   : > { %v4111_v30 = vmax.f32 %v8434_v61, %v8437_v44  ;;  %v2224_v1 = vmax.f32 %v2172_v26, %v2176_v34  ;;  %v8453_v35 = vadd.f32 %v8280_v36, %v3989_v51  ;;  %v3642_v51 = vadd.f32 %v8372_v41, %v8125_v50  ;;  %v5870_v61 = vld [vmem:[%s8625_s5 + $0xa8] sm:$0xff] }
 0x6e2   : > { %v2272_v45 = vmax.f32 %v2224_v1, 0.0 }
 0x6e3   : > { %v3914_v21 = vpop.f32.mrf.mxu3  ;;  %v3489_v26 = vpop.f32.mrf.mxu0 }
 0x6e4   : > { %v3990_v0 = vadd.f32 %v3914_v21, %v3639_v3  ;;  %v2320_v34 = vpack.c.bf16 %v2272_v45, %v2272_v45  ;;  %v8809_v3 = vld [vmem:[#allocation4_spill] sm:$0xff] }
 0x6e5   : > { %v3828_v31 = vpop.f32.mrf.mxu1  ;;  %v3643_v28 = vadd.f32 %v8378_v2, %v8809_v3  ;;  %v3578_v1 = vpop.f32.mrf.mxu2 }
 0x6e6   : > { %v8456_v55 = vadd.f32 %v8282_v48, %v3990_v0  ;;  %v3991_v13 = vadd.f32 %v3828_v31, %v3640_v59  ;;  %v3704_v21 = vunpack.c.l.b16 %v2320_v34  ;;  %v3703_v31 = vunpack.c.l.b16 %v2319_v5  ;;  %v8811_v5 = vld [vmem:[#allocation5_spill] sm:$0xff] }
 0x6e7   : > { %v3646_v43 = vadd.f32 %v8440_v39, %v8811_v5  ;;  %v5871_v39 = vld [vmem:[%s8625_s5 + $0xb0] sm:$0xff] }
 0x6e8   : > { %v4112_v53 = vmax.f32 %v8453_v35, %v8456_v55  ;;  %3867 = vmatmul.bf16.gmra.mxu1 %v3705_v33  ;;  %3956 = vmatmul.bf16.gmra.mxu3 %v3705_v33  ;;  %v4061_v25 = vadd.f32 %v8280_v36, %v3991_v13  ;;  %v3706_v50 = vpack.c.b16 %v3704_v21, %v3703_v31  ;;  %v5868_v55 = vld [vmem:[%s8625_s5 + $0x98] sm:$0xff] }
 0x6e9   : > { %4472 = vmatpush.bf16.msrb.mxu0 %v5871_v39  ;;  %v3649_v31 = vadd.f32 %v3576_v11, %v8150_v24  ;;  %v8813_v11 = vld [vmem:[#allocation7_spill] sm:$0xff] }
 0x6ea   : > { %v3650_v35 = vadd.f32 %v3489_v26, %v8813_v11 }
 0x6eb   : > { %v3917_v7 = vpop.f32.mrf.mxu3 }
 0x6ec   : > { %v3992_v20 = vadd.f32 %v3917_v7, %v3641_v60 }
 0x6ed   : > { %v3830_v12 = vpop.f32.mrf.mxu1  ;;  %v3581_v38 = vpop.f32.mrf.mxu2  ;;  %4473 = vmatpush.bf16.msrb.mxu0 %v5870_v61 }
 0x6ee   : > { %v4062_v29 = vadd.f32 %v8282_v48, %v3992_v20  ;;  %v3993_v17 = vadd.f32 %v3830_v12, %v3642_v51  ;;  %v3492_v20 = vpop.f32.mrf.mxu0 }
 0x6f0   : > { %v4113_v37 = vmax.f32 %v4061_v25, %v4062_v29  ;;  %v4063_v59 = vadd.f32 %v8280_v36, %v3993_v17 }
 0x6f2   : > { %v4141_v23 = vmax.f32 %v4109_v4, %v4113_v37  ;;  %v8810_v4 = vld [vmem:[#allocation11_spill] sm:$0xff] }
 0x6f3   : > { %v3919_v0 = vpop.f32.mrf.mxu3  ;;  %v3645_v13 = vadd.f32 %v8407_v19, %v8810_v4 }
 0x6f4   : > { %v3994_v16 = vadd.f32 %v3919_v0, %v3643_v28  ;;  %v4145_v7 = vmax.f32 %v4141_v23, 0.0 }
 0x6f5   : > { %v3833_v33 = vpop.f32.mrf.mxu1  ;;  %v3583_v44 = vpop.f32.mrf.mxu2 }
 0x6f6   : > { %v4064_v45 = vadd.f32 %v8282_v48, %v3994_v16  ;;  %v3995_v54 = vadd.f32 %v3833_v33, %v3644_v47  ;;  %v3494_v0 = vpop.f32.mrf.mxu0 }
 0x6f7   : > { %v3654_v39 = vadd.f32 %v3494_v0, %v8167_v14 }
 0x6f8   : > { %v4114_v41 = vmax.f32 %v4063_v59, %v4064_v45  ;;  %3872 = vmatmul.bf16.gmra.mxu1 %v3706_v50  ;;  %3961 = vmatmul.bf16.gmra.mxu3 %v3706_v50  ;;  %v4065_v29 = vadd.f32 %v8280_v36, %v3995_v54 }
 0x6fa   : > { %v4142_v2 = vmax.f32 %v4110_v42, %v4114_v41  ;;  %v8812_v42 = vld [vmem:[#allocation6_spill] sm:$0xff] }
 0x6fb   : > { %v3922_v60 = vpop.f32.mrf.mxu3  ;;  %v3647_v37 = vadd.f32 %v8448_v6, %v8812_v42  ;;  %v3648_v6 = vadd.f32 %v3487_v56, %v8145_v62  ;;  %v5869_v62 = vld [vmem:[%s8625_s5 + $0xa0] sm:$0xff] }
 0x6fc   : > { %v4146_v58 = vmax.f32 %v4142_v2, 0.0  ;;  %v3996_v22 = vadd.f32 %v3922_v60, %v3645_v13  ;;  %4474 = vmatpush.bf16.msrb.mxu0 %v5869_v62  ;;  %v8814_v13 = vld [vmem:[#allocation8_spill] sm:$0xff] }
 0x6fd   : > { %v3835_v12 = vpop.f32.mrf.mxu1  ;;  %v3651_v60 = vadd.f32 %v3578_v1, %v8814_v13  ;;  %v5866_v1 = vld [vmem:[%s8625_s5 + $0x88] sm:$0xff] }
 0x6fe   : > { %v4166_v25 = vpack.c.bf16 %v4146_v58, %v4145_v7  ;;  %v4066_v63 = vadd.f32 %v8282_v48, %v3996_v22  ;;  %v3997_v19 = vadd.f32 %v3835_v12, %v3646_v43  ;;  %v3586_v7 = vpop.f32.mrf.mxu2  ;;  %v5867_v12 = vld [vmem:[%s8625_s5 + $0x90] sm:$0xff]  ;;  %v3653_v43 = vadd.f32 %v3581_v38, %v8164_v49 }
 0x6ff   : > { %v3655_v49 = vadd.f32 %v3583_v44, %v8170_v27 }
 0x700   : > { %v4115_v34 = vmax.f32 %v4065_v29, %v4066_v63  ;;  %4460 = vmatmul.bf16.vlgmr.msra.gmra.mxu2 %v4166_v25  ;;  %v4067_v28 = vadd.f32 %v8280_v36, %v3997_v19  ;;  %4475 = vmatpush.bf16.msrb.mxu0 %v5868_v55 }
 0x702   : > { %v4143_v51 = vmax.f32 %v4111_v30, %v4115_v34  ;;  %v3652_v34 = vadd.f32 %v3492_v20, %v8159_v10 }
 0x703   : > { %v3924_v23 = vpop.f32.mrf.mxu3 }
 0x704   : > { %v3998_v17 = vadd.f32 %v3924_v23, %v3647_v37  ;;  %v4147_v50 = vmax.f32 %v4143_v51, 0.0  ;;  %4476 = vmatpush.bf16.msrb.mxu0 %v5867_v12  ;;  %v5865_v37 = vld [vmem:[%s8625_s5 + $0x80] sm:$0xff] }
 0x705   : > { %v3838_v3 = vpop.f32.mrf.mxu1 }
 0x706   : > { %v4068_v21 = vadd.f32 %v8282_v48, %v3998_v17  ;;  %v3999_v30 = vadd.f32 %v3838_v3, %v3648_v6  ;;  %v3588_v51 = vpop.f32.mrf.mxu2 }
 0x708   : > { %v4116_v16 = vmax.f32 %v4067_v28, %v4068_v21  ;;  %v4069_v47 = vadd.f32 %v8280_v36, %v3999_v30  ;;  %4477 = vmatpush.bf16.msrb.mxu0 %v5866_v1 }
 0x70a   : > { %v4144_v33 = vmax.f32 %v4112_v53, %v4116_v16  ;;  %v3497_v53 = vpop.f32.mrf.mxu0 }
 0x70b   : > { %v3927_v59 = vpop.f32.mrf.mxu3 }
 0x70c   : > { %v4000_v45 = vadd.f32 %v3927_v59, %v3649_v31  ;;  %v4148_v41 = vmax.f32 %v4144_v33, 0.0  ;;  %4478 = vmatpush.bf16.msrb.mxu0 %v5865_v37  ;;  %v3656_v33 = vadd.f32 %v3497_v53, %v8173_v8 }
 0x70d   : > { %v3840_v56 = vpop.f32.mrf.mxu1 }
 0x70e   : > { %v4070_v2 = vadd.f32 %v8282_v48, %v4000_v45  ;;  %v4170_v54 = vpack.c.bf16 %v4148_v41, %v4147_v50  ;;  %v4001_v4 = vadd.f32 %v3840_v56, %v3650_v35  ;;  %v3591_v30 = vpop.f32.mrf.mxu2  ;;  %v8815_v45 = vld [vmem:[#allocation28_spill] sm:$0xff]  ;;  %v3659_v35 = vadd.f32 %v3588_v51, %v8184_v46  ;;  %v8818_v51 = vld [vmem:[#allocation9_spill] sm:$0xff] }
 0x70f   : > { %v3657_v50 = vadd.f32 %v3586_v7, %v8815_v45 }
 0x710   : > { %v4117_v24 = vmax.f32 %v4069_v47, %v4070_v2  ;;  %4465 = vmatmul.bf16.gmra.mxu2 %v4170_v54  ;;  %v4071_v26 = vadd.f32 %v8280_v36, %v4001_v4 }
 0x712   : > { %v3499_v57 = vpop.f32.mrf.mxu0 }
 0x713   : > { %v3929_v58 = vpop.f32.mrf.mxu3  ;;  %v3658_v47 = vadd.f32 %v3499_v57, %v8181_v52 }
 0x714   : > { %v4002_v22 = vadd.f32 %v3929_v58, %v3651_v60 }
 0x715   : > { %v3843_v25 = vpop.f32.mrf.mxu1 }
 0x716   : > { %v4072_v29 = vadd.f32 %v8282_v48, %v4002_v22  ;;  %v4003_v5 = vadd.f32 %v3843_v25, %v3652_v34  ;;  %v3593_v2 = vpop.f32.mrf.mxu2  ;;  %v8816_v25 = vld [vmem:[#allocation29_spill] sm:$0xff] }
 0x717   : > { %v3661_v52 = vadd.f32 %v3591_v30, %v8816_v25 }
 0x718   : > { %v4118_v63 = vmax.f32 %v4071_v26, %v4072_v29  ;;  %v4073_v17 = vadd.f32 %v8280_v36, %v4003_v5 }
 0x71a   : > { %v3502_v21 = vpop.f32.mrf.mxu0 }
 0x71b   : > { %v3932_v19 = vpop.f32.mrf.mxu3  ;;  %v3660_v7 = vadd.f32 %v3502_v21, %v8187_v18  ;;  %v5880_v18 = vld [vmem:[%s8625_s5 + $0xf8] sm:$0xff] }
 0x71c   : > { %v4004_v42 = vadd.f32 %v3932_v19, %v3653_v43  ;;  %4490 = vmatpush.bf16.msrb.mxu2 %v5880_v18 }
 0x71d   : > { %v3845_v23 = vpop.f32.mrf.mxu1 }
 0x71e   : > { %v4074_v10 = vadd.f32 %v8282_v48, %v4004_v42  ;;  %v4005_v3 = vadd.f32 %v3845_v23, %v3654_v39  ;;  %v3596_v26 = vpop.f32.mrf.mxu2  ;;  %v8817_v42 = vld [vmem:[#allocation30_spill] sm:$0xff]  ;;  %v3663_v23 = vadd.f32 %v3593_v2, %v8818_v51 }
 0x720   : > { %v4119_v20 = vmax.f32 %v4073_v17, %v4074_v10  ;;  %v4075_v6 = vadd.f32 %v8280_v36, %v4005_v3 }
 0x722   : > { %v3504_v62 = vpop.f32.mrf.mxu0 }
 0x723   : > { %v3934_v38 = vpop.f32.mrf.mxu3  ;;  %v3662_v37 = vadd.f32 %v3504_v62, %v8817_v42 }
 0x724   : > { %v4006_v28 = vadd.f32 %v3934_v38, %v3655_v49  ;;  %v5879_v49 = vld [vmem:[%s8625_s5 + $0xf0] sm:$0xff] }
 0x725   : > { %v3848_v16 = vpop.f32.mrf.mxu1  ;;  %4491 = vmatpush.bf16.msrb.mxu2 %v5879_v49 }
 0x726   : > { %v4076_v61 = vadd.f32 %v8282_v48, %v4006_v28  ;;  %v4007_v59 = vadd.f32 %v3848_v16, %v3656_v33  ;;  %v3598_v38 = vpop.f32.mrf.mxu2  ;;  %v8819_v33 = vld [vmem:[#allocation31_spill] sm:$0xff] }
 0x728   : > { %v4120_v31 = vmax.f32 %v4075_v6, %v4076_v61  ;;  %v4077_v27 = vadd.f32 %v8280_v36, %v4007_v59  ;;  %v3665_v59 = vadd.f32 %v3596_v26, %v8819_v33 }
 0x72a   : > { %v3507_v58 = vpop.f32.mrf.mxu0 }
 0x72b   : > { %v3937_v41 = vpop.f32.mrf.mxu3  ;;  %v3664_v61 = vadd.f32 %v3507_v58, %v8207_v15 }
 0x72c   : > { %v4008_v14 = vadd.f32 %v3937_v41, %v3657_v50 }
 0x72d   : > { %v3850_v0 = vpop.f32.mrf.mxu1 }
 0x72e   : > { %v4078_v44 = vadd.f32 %v8282_v48, %v4008_v14  ;;  %v4009_v11 = vadd.f32 %v3850_v0, %v3658_v47  ;;  %v3601_v2 = vpop.f32.mrf.mxu2 }
 0x730   : > { %v4121_v56 = vmax.f32 %v4077_v27, %v4078_v44  ;;  %v4079_v4 = vadd.f32 %v8280_v36, %v4009_v11  ;;  %v5877_v27 = vld [vmem:[%s8625_s5 + $0xe0] sm:$0xff]  ;;  %v5876_v11 = vld [vmem:[%s8625_s5 + $0xd8] sm:$0xff] }
 0x732   : > { %v4149_v54 = vmax.f32 %v4117_v24, %v4121_v56  ;;  %v3509_v10 = vpop.f32.mrf.mxu0 }
 0x733   : > { %v3939_v8 = vpop.f32.mrf.mxu3 }
 0x734   : > { %v4010_v55 = vadd.f32 %v3939_v8, %v3659_v35  ;;  %v4153_v29 = vmax.f32 %v4149_v54, 0.0  ;;  %v8820_v8 = vld [vmem:[#allocation32_spill] sm:$0xff] }
 0x735   : > { %v3853_v53 = vpop.f32.mrf.mxu1 }
 0x736   : > { %v4080_v13 = vadd.f32 %v8282_v48, %v4010_v55  ;;  %v4011_v12 = vadd.f32 %v3853_v53, %v3660_v7  ;;  %v3667_v55 = vadd.f32 %v3598_v38, %v8820_v8  ;;  %v3603_v26 = vpop.f32.mrf.mxu2 }
 0x738   : > { %v4122_v60 = vmax.f32 %v4079_v4, %v4080_v13  ;;  %v4081_v43 = vadd.f32 %v8280_v36, %v4011_v12  ;;  %v5875_v13 = vld [vmem:[%s8625_s5 + $0xd0] sm:$0xff]  ;;  %v8821_v12 = vld [vmem:[#allocation33_spill] sm:$0xff] }
 0x73a   : > { %v4150_v22 = vmax.f32 %v4118_v63, %v4122_v60  ;;  %v3512_v44 = vpop.f32.mrf.mxu0 }
 0x73b   : > { %v3942_v24 = vpop.f32.mrf.mxu3  ;;  %v3668_v25 = vadd.f32 %v3512_v44, %v8821_v12 }
 0x73c   : > { %v4154_v34 = vmax.f32 %v4150_v22, 0.0  ;;  %v4012_v46 = vadd.f32 %v3942_v24, %v3661_v52  ;;  %v5874_v52 = vld [vmem:[%s8625_s5 + $0xc8] sm:$0xff] }
 0x73d   : > { %v3855_v1 = vpop.f32.mrf.mxu1 }
 0x73e   : > { %v4167_v5 = vpack.c.bf16 %v4154_v34, %v4153_v29  ;;  %v4082_v57 = vadd.f32 %v8282_v48, %v4012_v46  ;;  %v4013_v63 = vadd.f32 %v3855_v1, %v3662_v37  ;;  %v8822_v29 = vld [vmem:[#allocation10_spill] sm:$0xff] }
 0x73f   : > { %v3669_v34 = vadd.f32 %v3601_v2, %v8822_v29  ;;  %v8823_v37 = vld [vmem:[#allocation34_spill] sm:$0xff] }
 0x740   : > { %v4123_v19 = vmax.f32 %v4081_v43, %v4082_v57  ;;  %4479 = vmatmul.bf16.vlgmr.msrb.gmra.mxu0 %v4167_v5  ;;  %v4083_v21 = vadd.f32 %v8280_v36, %v4013_v63  ;;  %v5873_v5 = vld [vmem:[%s8625_s5 + $0xc0] sm:$0xff] }
 0x742   : > { %v4151_v17 = vmax.f32 %v4119_v20, %v4123_v19  ;;  %v5878_v20 = vld [vmem:[%s8625_s5 + $0xe8] sm:$0xff]  ;;  %v3514_v58 = vpop.f32.mrf.mxu0 }
 0x743   : > { %v3944_v39 = vpop.f32.mrf.mxu3  ;;  %4492 = vmatpush.bf16.msrb.mxu2 %v5878_v20  ;;  %v3670_v18 = vadd.f32 %v3514_v58, %v8823_v37 }
 0x744   : > { %v4014_v3 = vadd.f32 %v3944_v39, %v3663_v23  ;;  %v4155_v14 = vmax.f32 %v4151_v17, 0.0  ;;  %v8824_v23 = vld [vmem:[#allocation35_spill] sm:$0xff] }
 0x745   : > { %v3858_v28 = vpop.f32.mrf.mxu1  ;;  %v3671_v17 = vadd.f32 %v3603_v26, %v8824_v23 }
 0x746   : > { %v4084_v16 = vadd.f32 %v8282_v48, %v4014_v3  ;;  %v4015_v30 = vadd.f32 %v3858_v28, %v3664_v61 }
 0x747   : > { %4493 = vmatpush.bf16.msrb.mxu2 %v5877_v27 }
 0x748   : > { %v4124_v6 = vmax.f32 %v4083_v21, %v4084_v16  ;;  %v4085_v15 = vadd.f32 %v8280_v36, %v4015_v30 }
 0x74a   : > { %v4152_v45 = vmax.f32 %v4120_v31, %v4124_v6  ;;  %v3666_v31 = vadd.f32 %v3509_v10, %v8215_v9  ;;  %v3517_v63 = vpop.f32.mrf.mxu0  ;;  %v3606_v10 = vpop.f32.mrf.mxu2 }
 0x74b   : > { %v3947_v50 = vpop.f32.mrf.mxu3  ;;  %4494 = vmatpush.bf16.msrb.mxu2 %v5876_v11  ;;  %v3672_v16 = vadd.f32 %v3517_v63, %v8241_v40  ;;  %v3673_v61 = vadd.f32 %v3606_v10, %v8246_v32 }
 0x74c   : > { %v4016_v41 = vadd.f32 %v3947_v50, %v3665_v59  ;;  %v4156_v0 = vmax.f32 %v4152_v45, 0.0 }
 0x74d   : > { %v3860_v62 = vpop.f32.mrf.mxu1 }
 0x74e   : > { %v4086_v56 = vadd.f32 %v8282_v48, %v4016_v41  ;;  %v4171_v47 = vpack.c.bf16 %v4156_v0, %v4155_v14  ;;  %v4017_v35 = vadd.f32 %v3860_v62, %v3666_v31  ;;  %v8825_v0 = vld [vmem:[#allocation36_spill] sm:$0xff] }
 0x74f   : > { %4495 = vmatpush.bf16.msrb.mxu2 %v5875_v13 }
 0x750   : > { %v4125_v54 = vmax.f32 %v4085_v15, %v4086_v56  ;;  %4484 = vmatmul.bf16.gmra.mxu0 %v4171_v47  ;;  %v4087_v7 = vadd.f32 %v8280_v36, %v4017_v35  ;;  %v8826_v15 = vld [vmem:[#allocation37_spill] sm:$0xff] }
 0x752   : > { %v3519_v20 = vpop.f32.mrf.mxu0  ;;  %v3608_v59 = vpop.f32.mrf.mxu2 }
 0x753   : > { %v3949_v53 = vpop.f32.mrf.mxu3  ;;  %4496 = vmatpush.bf16.msrb.mxu2 %v5874_v52  ;;  %v3674_v27 = vadd.f32 %v3519_v20, %v8825_v0  ;;  %v3675_v56 = vadd.f32 %v3608_v59, %v8826_v15 }
 0x754   : > { %v4018_v4 = vadd.f32 %v3949_v53, %v3667_v55  ;;  %v8827_v55 = vld [vmem:[#allocation38_spill] sm:$0xff] }
 0x755   : > { %v3863_v60 = vpop.f32.mrf.mxu1 }
 0x756   : > { %v4088_v9 = vadd.f32 %v8282_v48, %v4018_v4  ;;  %v4019_v24 = vadd.f32 %v3863_v60, %v3668_v25  ;;  %v8828_v60 = vld [vmem:[#allocation39_spill] sm:$0xff] }
 0x757   : > { %4497 = vmatpush.bf16.msrb.mxu2 %v5873_v5 }
 0x758   : > { %v4126_v22 = vmax.f32 %v4087_v7, %v4088_v9  ;;  %v4089_v57 = vadd.f32 %v8280_v36, %v4019_v24 }
 0x75a   : > { %v3522_v2 = vpop.f32.mrf.mxu0  ;;  %v3611_v35 = vpop.f32.mrf.mxu2 }
 0x75b   : > { %v3952_v46 = vpop.f32.mrf.mxu3  ;;  %v3676_v53 = vadd.f32 %v3522_v2, %v8827_v55  ;;  %v3677_v7 = vadd.f32 %v3611_v35, %v8828_v60 }
 0x75c   : > { %v4020_v1 = vadd.f32 %v3952_v46, %v3669_v34  ;;  %v8829_v46 = vld [vmem:[#allocation40_spill] sm:$0xff] }
 0x75d   : > { %v3865_v43 = vpop.f32.mrf.mxu1 }
 0x75e   : > { %v4090_v19 = vadd.f32 %v8282_v48, %v4020_v1  ;;  %v4021_v51 = vadd.f32 %v3865_v43, %v3670_v18  ;;  %v8830_v43 = vld [vmem:[#allocation41_spill] sm:$0xff] }
 0x760   : > { %v4127_v42 = vmax.f32 %v4089_v57, %v4090_v19  ;;  %v4091_v38 = vadd.f32 %v8280_v36, %v4021_v51 }
 0x762   : > { %v3524_v24 = vpop.f32.mrf.mxu0  ;;  %v3613_v5 = vpop.f32.mrf.mxu2 }
 0x763   : > { %v3954_v39 = vpop.f32.mrf.mxu3  ;;  %v3678_v1 = vadd.f32 %v3524_v24, %v8829_v46  ;;  %v3679_v57 = vadd.f32 %v3613_v5, %v8830_v43 }
 0x764   : > { %v4022_v3 = vadd.f32 %v3954_v39, %v3671_v17 }
 0x765   : > { %v3868_v49 = vpop.f32.mrf.mxu1 }
 0x766   : > { %v4092_v28 = vadd.f32 %v8282_v48, %v4022_v3  ;;  %v4023_v6 = vadd.f32 %v3868_v49, %v3672_v16 }
 0x768   : > { %v4128_v21 = vmax.f32 %v4091_v38, %v4092_v28  ;;  %v4093_v50 = vadd.f32 %v8280_v36, %v4023_v6 }
 0x76a   : > { %v4442_v49 = vpop.f32.mrf.mxu0 }
 0x76b   : > { %v3957_v30 = vpop.f32.mrf.mxu3 }
 0x76c   : > { %v4024_v33 = vadd.f32 %v3957_v30, %v3673_v61 }
 0x76d   : > { %v3870_v45 = vpop.f32.mrf.mxu1 }
 0x76e   : > { %v4094_v41 = vadd.f32 %v8282_v48, %v4024_v33  ;;  %v4025_v62 = vadd.f32 %v3870_v45, %v3674_v27 }
 0x770   : > { %v4129_v14 = vmax.f32 %v4093_v50, %v4094_v41  ;;  %v4095_v31 = vadd.f32 %v8280_v36, %v4025_v62 }
 0x772   : > { %v4157_v44 = vmax.f32 %v4125_v54, %v4129_v14  ;;  %v4444_v38 = vpop.f32.mrf.mxu0 }
 0x773   : > { %v3959_v40 = vpop.f32.mrf.mxu3 }
 0x774   : > { %v4026_v47 = vadd.f32 %v3959_v40, %v3675_v56  ;;  %v4161_v9 = vmax.f32 %v4157_v44, 0.0 }
 0x775   : > { %v3873_v32 = vpop.f32.mrf.mxu1 }
 0x776   : > { %v4096_v11 = vadd.f32 %v8282_v48, %v4026_v47  ;;  %v4027_v13 = vadd.f32 %v3873_v32, %v3676_v53 }
 0x778   : > { %v4130_v8 = vmax.f32 %v4095_v31, %v4096_v11  ;;  %v4097_v52 = vadd.f32 %v8280_v36, %v4027_v13 }
 0x77a   : > { %v4158_v4 = vmax.f32 %v4126_v22, %v4130_v8  ;;  %v4447_v16 = vpop.f32.mrf.mxu0 }
 0x77b   : > { %v3962_v54 = vpop.f32.mrf.mxu3 }
 0x77c   : > { %v4162_v58 = vmax.f32 %v4158_v4, 0.0  ;;  %v4028_v12 = vadd.f32 %v3962_v54, %v3677_v7 }
 0x77d   : > { %v3875_v29 = vpop.f32.mrf.mxu1 }
 0x77e   : > { %v4168_v25 = vpack.c.bf16 %v4162_v58, %v4161_v9  ;;  %v4098_v26 = vadd.f32 %v8282_v48, %v4028_v12  ;;  %v4029_v22 = vadd.f32 %v3875_v29, %v3678_v1 }
 0x780   : > { %v4131_v34 = vmax.f32 %v4097_v52, %v4098_v26  ;;  %4498 = vmatmul.bf16.vlgmr.msrb.gmra.mxu2 %v4168_v25  ;;  %v4099_v63 = vadd.f32 %v8280_v36, %v4029_v22  ;;  %v5893_v36 = vld [vmem:[%s8626_s6] ss:$0 sm:$0xff] }
 0x781   : > { %v4445_v41 = vadd.f32 %v5893_v36, %v4444_v38  ;;  %v4448_v15 = vadd.f32 %v5893_v36, %v4447_v16 }
 0x782   : > { %v4159_v19 = vmax.f32 %v4127_v42, %v4131_v34  ;;  %v4449_v61 = vpop.f32.mrf.mxu0 }
 0x783   : > { %v3964_v37 = vpop.f32.mrf.mxu3  ;;  %v4461_v28 = vpop.f32.mrf.mxu2  ;;  %v4450_v32 = vadd.f32 %v5893_v36, %v4449_v61 }
 0x784   : > { %v4030_v18 = vadd.f32 %v3964_v37, %v3679_v57  ;;  %v4163_v10 = vmax.f32 %v4159_v19, 0.0 }
 0x786   : > { %v4100_v51 = vadd.f32 %v8282_v48, %v4030_v18 }
 0x788   : > { %v4132_v23 = vmax.f32 %v4099_v63, %v4100_v51 }
 0x78a   : > { %v4160_v17 = vmax.f32 %v4128_v21, %v4132_v23  ;;  %v4443_v21 = vadd.f32 %v5893_v36, %v4442_v49 }
 0x78b   : > { %v4463_v6 = vpop.f32.mrf.mxu2 }
 0x78c   : > { %v4164_v39 = vmax.f32 %v4160_v17, 0.0  ;;  %v4462_v30 = vadd.f32 %v4461_v28, %v4443_v21  ;;  %v4464_v14 = vadd.f32 %v4463_v6, %v4445_v41 }
 0x78e   : > { %v4172_v3 = vpack.c.bf16 %v4164_v39, %v4163_v10 }
 0x790   : > { %4503 = vmatmul.bf16.gmra.mxu2 %v4172_v3 }
 0x793   : > { %v4466_v42 = vpop.f32.mrf.mxu2 }
 0x794   : > { %v4467_v56 = vadd.f32 %v4466_v42, %v4448_v15 }
 0x79b   : > { %v4468_v48 = vpop.f32.mrf.mxu2 }
 0x79c   : > { %v4469_v11 = vadd.f32 %v4468_v48, %v4450_v32 }
 0x7bd   : > { %v4480_v20 = vpop.f32.mrf.mxu0 }
 0x7be   : > { %v4481_v33 = vadd.f32 %v4480_v20, %v4462_v30 }
 0x7c5   : > { %v4482_v59 = vpop.f32.mrf.mxu0 }
 0x7c6   : > { %v4483_v0 = vadd.f32 %v4482_v59, %v4464_v14 }
 0x7cd   : > { %v4485_v62 = vpop.f32.mrf.mxu0 }
 0x7ce   : > { %v4486_v40 = vadd.f32 %v4485_v62, %v4467_v56 }
 0x7d5   : > { %v4487_v31 = vpop.f32.mrf.mxu0 }
 0x7d6   : > { %v4488_v35 = vadd.f32 %v4487_v31, %v4469_v11 }
 0x803   : > { %v4499_v45 = vpop.f32.mrf.mxu2 }
 0x804   : > { %v4500_v50 = vadd.f32 %v4499_v45, %v4481_v33 }
 0x806   : > { %4509 = vst [vmem:[%s283_s13] sm:$0xff] %v4500_v50 }
 0x80b   : > { %v4501_v27 = vpop.f32.mrf.mxu2 }
 0x80c   : > { %v4502_v44 = vadd.f32 %v4501_v27, %v4483_v0 }
 0x80e   : > { %4510 = vst [vmem:[%s283_s13 + $0x8] sm:$0xff] %v4502_v44 }
 0x813   : > { %v4504_v47 = vpop.f32.mrf.mxu2 }
 0x814   : > { %v4505_v2 = vadd.f32 %v4504_v47, %v4486_v40 }
 0x816   : > { %4511 = vst [vmem:[%s283_s13 + $0x10] sm:$0xff] %v4505_v2 }
 0x81b   : > { %v4506_v8 = vpop.f32.mrf.mxu2 }
 0x81c   : > { %v4507_v55 = vadd.f32 %v4506_v8, %v4488_v35 }
 0x81e   : > { %4512 = vst [vmem:[%s283_s13 + $0x18] sm:$0xff] %v4507_v55 }
 0x81f PF: > { %s17_s24 = sadd.s32 1, %s5900_s24  }
 0x820   : > { %p14_p5 = scmp.ge.s32.totalorder %s17_s24, 4  }
 0x822   :  { %16 = sbr.rel (!%p14_p5) target bundleno = 1 (0x1), region = 82 }

</bundles_post_ra>
